<compile_context>
chip_gen: v7x
topology: tpu7x:2x2x1
jax: 0.10.0
libtpu: 0.0.40
codegen_flags: <defaults>
</compile_context>

<pallas_src>
import math

import jax
import jax.numpy as jnp
from jax.experimental import pallas as pl
from jax.experimental.pallas import tpu as pltpu

# ---- small synthetic BERT config (stands in for AutoModel.from_pretrained) ----
VOCAB = 64          # tokenizer_len after resize_token_embeddings
MAX_POS = 16        # args.max_seq_length
TYPE_VOCAB = 2
HIDDEN = 32
HEADS = 4
HEAD_DIM = HIDDEN // HEADS
INTER = 64
LAYERS = 2
LN_EPS = 1e-12
ATT_SCALE = 1.0 / math.sqrt(HEAD_DIM)


def _vmem():
    return pl.BlockSpec(memory_space=pltpu.MemorySpace.VMEM)


# ----------------------------- in-kernel helpers -----------------------------

def _layernorm(x, g, b):
    mu = jnp.mean(x, axis=-1, keepdims=True)
    d = x - mu
    var = jnp.mean(d * d, axis=-1, keepdims=True)
    return d * jax.lax.rsqrt(var + LN_EPS) * g + b


def _gelu_tanh(x):
    # TODO(synk): HF BERT default is exact (erf) GELU; tanh approximation used here.
    return 0.5 * x * (1.0 + jnp.tanh(0.7978845608028654 * (x + 0.044715 * x * x * x)))


def _dense(x_f32, w_bf16, b_f32):
    # bf16 MXU matmul, f32 accumulation, f32 epilogue.
    return jnp.dot(x_f32.astype(jnp.bfloat16), w_bf16,
                   preferred_element_type=jnp.float32) + b_f32


def _make_encoder_kernel(B, S):
    """Fully fused BERT encoder + pooler kernel for static (B, S)."""
    BS = B * S

    def kernel(emb_ref, ext_ref, eg_ref, eb_ref,
               wqkv_ref, bqkv_ref, wo_ref, bo_ref, ln1g_ref, ln1b_ref,
               wi_ref, bi_ref, wo2_ref, bo2_ref, ln2g_ref, ln2b_ref,
               pw_ref, pb_ref,
               enc_ref, pool_ref,
               ctx_buf):
        h = _layernorm(emb_ref[...], eg_ref[...], eb_ref[...])      # (BS, D) f32
        ext = ext_ref[...]                                          # (B, S) additive mask

        for l in range(LAYERS):
            # --- self attention (fused QKV, all heads in this one step) ---
            qkv = _dense(h, wqkv_ref[l], bqkv_ref[l])               # (BS, 3D)
            wo_l = wo_ref[l]                                        # (D, D) bf16

            for b in range(B):
                r0, r1 = b * S, (b + 1) * S
                mrow = ext[b:b + 1, :]                              # (1, S) -> bcast over q
                acc = jnp.zeros((S, HIDDEN), jnp.float32)
                for hh in range(HEADS):
                    c0 = hh * HEAD_DIM
                    qh = qkv[r0:r1, c0:c0 + HEAD_DIM].astype(jnp.bfloat16)
                    kh = qkv[r0:r1, HIDDEN + c0:HIDDEN + c0 + HEAD_DIM].astype(jnp.bfloat16)
                    vh = qkv[r0:r1, 2 * HIDDEN + c0:2 * HIDDEN + c0 + HEAD_DIM].astype(jnp.bfloat16)
                    # q @ k^T by contracting the Dh axis directly (no .T).
                    s = jax.lax.dot_general(
                        qh, kh, (((1,), (1,)), ((), ())),
                        preferred_element_type=jnp.float32) * ATT_SCALE
                    s = s + mrow
                    s = s - jnp.max(s, axis=-1, keepdims=True)
                    p = jnp.exp(s)
                    p = p * pl.reciprocal(jnp.sum(p, axis=-1, keepdims=True),
                                          approx=True)
                    ctx_h = jnp.dot(p.astype(jnp.bfloat16), vh,
                                    preferred_element_type=jnp.float32)   # (S, Dh)
                    # head-merge fused into the output projection.
                    acc = acc + jnp.dot(ctx_h.astype(jnp.bfloat16),
                                        wo_l[c0:c0 + HEAD_DIM, :],
                                        preferred_element_type=jnp.float32)
                ctx_buf[r0:r1, :] = acc

            attn_out = ctx_buf[...] + bo_ref[l]                     # (BS, D)
            h = _layernorm(h + attn_out, ln1g_ref[l], ln1b_ref[l])

            # --- feed forward ---
            inter = _gelu_tanh(_dense(h, wi_ref[l], bi_ref[l]))     # (BS, INTER)
            ffn = _dense(inter, wo2_ref[l], bo2_ref[l])             # (BS, D)
            h = _layernorm(h + ffn, ln2g_ref[l], ln2b_ref[l])

        enc_ref[...] = h

        # --- pooler fused into the same kernel (dense + tanh on CLS rows) ---
        pooled_all = jnp.tanh(_dense(h, pw_ref[...], pb_ref[...]))  # (BS, D)
        for b in range(B):
            pool_ref[b:b + 1, :] = pooled_all[b * S:b * S + 1, :]

    return kernel


# ----------------------- parameter init (deterministic) -----------------------

def _w(key, shape):
    # weights stored in bf16 for the MXU; biases / LN params stay f32.
    return (0.02 * jax.random.normal(key, shape, jnp.float32)).astype(jnp.bfloat16)


def init_params(key):
    ks = jax.random.split(key, 8)
    D, I, L = HIDDEN, INTER, LAYERS
    return {
        "word_emb": 0.02 * jax.random.normal(ks[0], (VOCAB, D), jnp.float32),
        "pos_emb": 0.02 * jax.random.normal(ks[1], (MAX_POS, D), jnp.float32),
        "type_emb": 0.02 * jax.random.normal(ks[2], (TYPE_VOCAB, D), jnp.float32),
        "emb_ln_g": jnp.ones((1, D), jnp.float32),
        "emb_ln_b": jnp.zeros((1, D), jnp.float32),
        # per-layer weights stacked on a leading L axis; Q|K|V concatenated.
        "wqkv": _w(ks[3], (L, D, 3 * D)),
        "bqkv": jnp.zeros((L, 1, 3 * D), jnp.float32),
        "wo":   _w(ks[4], (L, D, D)),
        "bo":   jnp.zeros((L, 1, D), jnp.float32),
        "ln1_g": jnp.ones((L, 1, D), jnp.float32),
        "ln1_b": jnp.zeros((L, 1, D), jnp.float32),
        "wi":   _w(ks[5], (L, D, I)),
        "bi":   jnp.zeros((L, 1, I), jnp.float32),
        "wo2":  _w(ks[6], (L, I, D)),
        "bo2":  jnp.zeros((L, 1, D), jnp.float32),
        "ln2_g": jnp.ones((L, 1, D), jnp.float32),
        "ln2_b": jnp.zeros((L, 1, D), jnp.float32),
        "pool_w": _w(ks[7], (D, D)),
        "pool_b": jnp.zeros((1, D), jnp.float32),
    }


# ----------------------- forward pass (BertModule.forward) -----------------------

def bert_forward(params, token_ids, token_segments, attention_mask):
    B, S = token_ids.shape

    # Embedding gathers are data-dependent lookups -> plain-JAX glue.
    we = jnp.take(params["word_emb"], token_ids, axis=0)            # (B, S, D)
    pe = params["pos_emb"][:S][None, :, :]                          # (1, S, D)
    te = jnp.take(params["type_emb"], token_segments, axis=0)       # (B, S, D)
    emb = (we + pe + te).reshape(B * S, HIDDEN).astype(jnp.float32)

    # HF extended additive mask convention: (1 - mask) * -10000, shape (B, S).
    ext = (1.0 - attention_mask.astype(jnp.float32)) * -10000.0

    kernel = _make_encoder_kernel(B, S)
    enc2d, pooled = pl.pallas_call(
        kernel,
        out_shape=(jax.ShapeDtypeStruct((B * S, HIDDEN), jnp.float32),
                   jax.ShapeDtypeStruct((B, HIDDEN), jnp.float32)),
        in_specs=[_vmem()] * 18,
        out_specs=(_vmem(), _vmem()),
        scratch_shapes=[pltpu.VMEM((B * S, HIDDEN), jnp.float32)],
        compiler_params=pltpu.CompilerParams(vmem_limit_bytes=32 * 1024 * 1024),
    )(emb, ext,
      params["emb_ln_g"], params["emb_ln_b"],
      params["wqkv"], params["bqkv"], params["wo"], params["bo"],
      params["ln1_g"], params["ln1_b"],
      params["wi"], params["bi"], params["wo2"], params["bo2"],
      params["ln2_g"], params["ln2_b"],
      params["pool_w"], params["pool_b"])

    enc_layer = enc2d.reshape(B, S, HIDDEN)
    return enc_layer, pooled


if __name__ == "__main__":
    B, S = 2, 8
    key = jax.random.PRNGKey(0)
    kp, kt = jax.random.split(key)
    params = init_params(kp)

    token_ids = jax.random.randint(kt, (B, S), 0, VOCAB, dtype=jnp.int32)
    token_segments = jnp.zeros((B, S), jnp.int32)
    attention_mask = jnp.ones((B, S), jnp.int32)

    enc_layer, pooled_output = jax.jit(bert_forward)(
        params, token_ids, token_segments, attention_mask)
    jax.block_until_ready((enc_layer, pooled_output))
    assert enc_layer.shape == (B, S, HIDDEN)
    assert pooled_output.shape == (B, HIDDEN)
    print("KERNEL_OK")
</pallas_src>

<mosaic_0001>
module attributes {stable_mosaic.version = 11 : i64} {
  func.func @kernel(%arg0: memref<16x32xf32, #tpu.memory_space<vmem>>, %arg1: memref<2x8xf32, #tpu.memory_space<vmem>>, %arg2: memref<1x32xf32, #tpu.memory_space<vmem>>, %arg3: memref<1x32xf32, #tpu.memory_space<vmem>>, %arg4: memref<2x32x96xbf16, #tpu.memory_space<vmem>>, %arg5: memref<2x1x96xf32, #tpu.memory_space<vmem>>, %arg6: memref<2x32x32xbf16, #tpu.memory_space<vmem>>, %arg7: memref<2x1x32xf32, #tpu.memory_space<vmem>>, %arg8: memref<2x1x32xf32, #tpu.memory_space<vmem>>, %arg9: memref<2x1x32xf32, #tpu.memory_space<vmem>>, %arg10: memref<2x32x64xbf16, #tpu.memory_space<vmem>>, %arg11: memref<2x1x64xf32, #tpu.memory_space<vmem>>, %arg12: memref<2x64x32xbf16, #tpu.memory_space<vmem>>, %arg13: memref<2x1x32xf32, #tpu.memory_space<vmem>>, %arg14: memref<2x1x32xf32, #tpu.memory_space<vmem>>, %arg15: memref<2x1x32xf32, #tpu.memory_space<vmem>>, %arg16: memref<32x32xbf16, #tpu.memory_space<vmem>>, %arg17: memref<1x32xf32, #tpu.memory_space<vmem>>, %arg18: memref<16x32xf32, #tpu.memory_space<vmem>>, %arg19: memref<2x32xf32, #tpu.memory_space<vmem>>, %arg20: memref<16x32xf32, #tpu.memory_space<vmem>>) attributes {dimension_semantics = [], scalar_prefetch = 0 : i64, scratch_operands = 1 : i64, tpu.core_type = #tpu.core_type<tc>} {
    %c0 = arith.constant 0 : index
    %c0_0 = arith.constant 0 : index
    %0 = vector.load %arg0[%c0, %c0_0] : memref<16x32xf32, #tpu.memory_space<vmem>>, vector<16x32xf32>
    %c0_1 = arith.constant 0 : index
    %c0_2 = arith.constant 0 : index
    %1 = vector.load %arg2[%c0_1, %c0_2] : memref<1x32xf32, #tpu.memory_space<vmem>>, vector<1x32xf32>
    %c0_3 = arith.constant 0 : index
    %c0_4 = arith.constant 0 : index
    %2 = vector.load %arg3[%c0_3, %c0_4] : memref<1x32xf32, #tpu.memory_space<vmem>>, vector<1x32xf32>
    %cst = arith.constant dense<0.000000e+00> : vector<16xf32>
    %3 = vector.multi_reduction <add>, %0, %cst [1] : vector<16x32xf32> to vector<16xf32>
    %4 = vector.shape_cast %3 : vector<16xf32> to vector<16x1xf32>
    %cst_5 = arith.constant 3.200000e+01 : f32
    %5 = vector.broadcast %cst_5 : f32 to vector<16x1xf32>
    %6 = arith.divf %4, %5 : vector<16x1xf32>
    %7 = vector.broadcast %6 : vector<16x1xf32> to vector<16x32xf32>
    %8 = arith.subf %0, %7 : vector<16x32xf32>
    %9 = arith.mulf %8, %8 : vector<16x32xf32>
    %cst_6 = arith.constant dense<0.000000e+00> : vector<16xf32>
    %10 = vector.multi_reduction <add>, %9, %cst_6 [1] : vector<16x32xf32> to vector<16xf32>
    %11 = vector.shape_cast %10 : vector<16xf32> to vector<16x1xf32>
    %cst_7 = arith.constant 3.200000e+01 : f32
    %12 = vector.broadcast %cst_7 : f32 to vector<16x1xf32>
    %13 = arith.divf %11, %12 : vector<16x1xf32>
    %cst_8 = arith.constant 9.99999996E-13 : f32
    %14 = vector.broadcast %cst_8 : f32 to vector<16x1xf32>
    %15 = arith.addf %13, %14 : vector<16x1xf32>
    %16 = math.rsqrt %15 : vector<16x1xf32>
    %17 = vector.broadcast %16 : vector<16x1xf32> to vector<16x32xf32>
    %18 = arith.mulf %8, %17 : vector<16x32xf32>
    %19 = vector.broadcast %1 : vector<1x32xf32> to vector<16x32xf32>
    %20 = arith.mulf %18, %19 : vector<16x32xf32>
    %21 = vector.broadcast %2 : vector<1x32xf32> to vector<16x32xf32>
    %22 = arith.addf %20, %21 : vector<16x32xf32>
    %c0_9 = arith.constant 0 : index
    %c0_10 = arith.constant 0 : index
    %23 = vector.load %arg1[%c0_9, %c0_10] : memref<2x8xf32, #tpu.memory_space<vmem>>, vector<2x8xf32>
    %c0_11 = arith.constant 0 : index
    %c0_12 = arith.constant 0 : index
    %c0_13 = arith.constant 0 : index
    %24 = vector.load %arg4[%c0_11, %c0_12, %c0_13] : memref<2x32x96xbf16, #tpu.memory_space<vmem>>, vector<1x32x96xbf16>
    %25 = vector.shape_cast %24 : vector<1x32x96xbf16> to vector<32x96xbf16>
    %c0_14 = arith.constant 0 : index
    %c0_15 = arith.constant 0 : index
    %c0_16 = arith.constant 0 : index
    %26 = vector.load %arg5[%c0_14, %c0_15, %c0_16] : memref<2x1x96xf32, #tpu.memory_space<vmem>>, vector<1x1x96xf32>
    %27 = vector.shape_cast %26 : vector<1x1x96xf32> to vector<1x96xf32>
    %28 = arith.truncf %22 : vector<16x32xf32> to vector<16x32xbf16>
    %cst_17 = arith.constant dense<0.000000e+00> : vector<16x96xf32>
    %29 = tpu.matmul %28, %25, %cst_17 {dimension_numbers = #tpu.dot_dimension_numbers<[1], [0], [0], [1], [0, 0, 1, 1], [], []>} : vector<16x32xbf16>, vector<32x96xbf16>, vector<16x96xf32> -> vector<16x96xf32>
    %30 = vector.broadcast %27 : vector<1x96xf32> to vector<16x96xf32>
    %31 = arith.addf %29, %30 : vector<16x96xf32>
    %c0_18 = arith.constant 0 : index
    %c0_19 = arith.constant 0 : index
    %c0_20 = arith.constant 0 : index
    %32 = vector.load %arg6[%c0_18, %c0_19, %c0_20] : memref<2x32x32xbf16, #tpu.memory_space<vmem>>, vector<1x32x32xbf16>
    %33 = vector.shape_cast %32 : vector<1x32x32xbf16> to vector<32x32xbf16>
    %34 = vector.extract_strided_slice %23 {offsets = [0, 0], sizes = [1, 8], strides = [1, 1]} : vector<2x8xf32> to vector<1x8xf32>
    %cst_21 = arith.constant 0.000000e+00 : f32
    %35 = vector.broadcast %cst_21 : f32 to vector<8x32xf32>
    %36 = vector.extract_strided_slice %31 {offsets = [0, 0], sizes = [8, 8], strides = [1, 1]} : vector<16x96xf32> to vector<8x8xf32>
    %37 = arith.truncf %36 : vector<8x8xf32> to vector<8x8xbf16>
    %38 = vector.extract_strided_slice %31 {offsets = [0, 32], sizes = [8, 8], strides = [1, 1]} : vector<16x96xf32> to vector<8x8xf32>
    %39 = arith.truncf %38 : vector<8x8xf32> to vector<8x8xbf16>
    %40 = vector.extract_strided_slice %31 {offsets = [0, 64], sizes = [8, 8], strides = [1, 1]} : vector<16x96xf32> to vector<8x8xf32>
    %41 = arith.truncf %40 : vector<8x8xf32> to vector<8x8xbf16>
    %cst_22 = arith.constant dense<0.000000e+00> : vector<8x8xf32>
    %42 = tpu.matmul %37, %39, %cst_22 {dimension_numbers = #tpu.dot_dimension_numbers<[1], [1], [0], [0], [0, 0, 1, 0], [], []>} : vector<8x8xbf16>, vector<8x8xbf16>, vector<8x8xf32> -> vector<8x8xf32>
    %cst_23 = arith.constant 0.353553385 : f32
    %43 = vector.broadcast %cst_23 : f32 to vector<8x8xf32>
    %44 = arith.mulf %42, %43 : vector<8x8xf32>
    %45 = vector.broadcast %34 : vector<1x8xf32> to vector<8x8xf32>
    %46 = arith.addf %44, %45 : vector<8x8xf32>
    %cst_24 = arith.constant dense<0xFF800000> : vector<8xf32>
    %47 = vector.multi_reduction <maximumf>, %46, %cst_24 [1] : vector<8x8xf32> to vector<8xf32>
    %48 = vector.shape_cast %47 : vector<8xf32> to vector<8x1xf32>
    %49 = vector.broadcast %48 : vector<8x1xf32> to vector<8x8xf32>
    %50 = arith.subf %46, %49 : vector<8x8xf32>
    %51 = math.exp %50 : vector<8x8xf32>
    %cst_25 = arith.constant dense<0.000000e+00> : vector<8xf32>
    %52 = vector.multi_reduction <add>, %51, %cst_25 [1] : vector<8x8xf32> to vector<8xf32>
    %53 = vector.shape_cast %52 : vector<8xf32> to vector<8x1xf32>
    %54 = tpu.reciprocal %53 {approx = true} : vector<8x1xf32> -> vector<8x1xf32>
    %55 = vector.broadcast %54 : vector<8x1xf32> to vector<8x8xf32>
    %56 = arith.mulf %51, %55 : vector<8x8xf32>
    %57 = arith.truncf %56 : vector<8x8xf32> to vector<8x8xbf16>
    %cst_26 = arith.constant dense<0.000000e+00> : vector<8x8xf32>
    %58 = tpu.matmul %57, %41, %cst_26 {dimension_numbers = #tpu.dot_dimension_numbers<[1], [0], [0], [1], [0, 0, 1, 1], [], []>} : vector<8x8xbf16>, vector<8x8xbf16>, vector<8x8xf32> -> vector<8x8xf32>
    %59 = arith.truncf %58 : vector<8x8xf32> to vector<8x8xbf16>
    %60 = vector.extract_strided_slice %33 {offsets = [0, 0], sizes = [8, 32], strides = [1, 1]} : vector<32x32xbf16> to vector<8x32xbf16>
    %cst_27 = arith.constant dense<0.000000e+00> : vector<8x32xf32>
    %61 = tpu.matmul %59, %60, %cst_27 {dimension_numbers = #tpu.dot_dimension_numbers<[1], [0], [0], [1], [0, 0, 1, 1], [], []>} : vector<8x8xbf16>, vector<8x32xbf16>, vector<8x32xf32> -> vector<8x32xf32>
    %62 = arith.addf %35, %61 : vector<8x32xf32>
    %63 = vector.extract_strided_slice %31 {offsets = [0, 8], sizes = [8, 8], strides = [1, 1]} : vector<16x96xf32> to vector<8x8xf32>
    %64 = arith.truncf %63 : vector<8x8xf32> to vector<8x8xbf16>
    %65 = vector.extract_strided_slice %31 {offsets = [0, 40], sizes = [8, 8], strides = [1, 1]} : vector<16x96xf32> to vector<8x8xf32>
    %66 = arith.truncf %65 : vector<8x8xf32> to vector<8x8xbf16>
    %67 = vector.extract_strided_slice %31 {offsets = [0, 72], sizes = [8, 8], strides = [1, 1]} : vector<16x96xf32> to vector<8x8xf32>
    %68 = arith.truncf %67 : vector<8x8xf32> to vector<8x8xbf16>
    %cst_28 = arith.constant dense<0.000000e+00> : vector<8x8xf32>
    %69 = tpu.matmul %64, %66, %cst_28 {dimension_numbers = #tpu.dot_dimension_numbers<[1], [1], [0], [0], [0, 0, 1, 0], [], []>} : vector<8x8xbf16>, vector<8x8xbf16>, vector<8x8xf32> -> vector<8x8xf32>
    %cst_29 = arith.constant 0.353553385 : f32
    %70 = vector.broadcast %cst_29 : f32 to vector<8x8xf32>
    %71 = arith.mulf %69, %70 : vector<8x8xf32>
    %72 = vector.broadcast %34 : vector<1x8xf32> to vector<8x8xf32>
    %73 = arith.addf %71, %72 : vector<8x8xf32>
    %cst_30 = arith.constant dense<0xFF800000> : vector<8xf32>
    %74 = vector.multi_reduction <maximumf>, %73, %cst_30 [1] : vector<8x8xf32> to vector<8xf32>
    %75 = vector.shape_cast %74 : vector<8xf32> to vector<8x1xf32>
    %76 = vector.broadcast %75 : vector<8x1xf32> to vector<8x8xf32>
    %77 = arith.subf %73, %76 : vector<8x8xf32>
    %78 = math.exp %77 : vector<8x8xf32>
    %cst_31 = arith.constant dense<0.000000e+00> : vector<8xf32>
    %79 = vector.multi_reduction <add>, %78, %cst_31 [1] : vector<8x8xf32> to vector<8xf32>
    %80 = vector.shape_cast %79 : vector<8xf32> to vector<8x1xf32>
    %81 = tpu.reciprocal %80 {approx = true} : vector<8x1xf32> -> vector<8x1xf32>
    %82 = vector.broadcast %81 : vector<8x1xf32> to vector<8x8xf32>
    %83 = arith.mulf %78, %82 : vector<8x8xf32>
    %84 = arith.truncf %83 : vector<8x8xf32> to vector<8x8xbf16>
    %cst_32 = arith.constant dense<0.000000e+00> : vector<8x8xf32>
    %85 = tpu.matmul %84, %68, %cst_32 {dimension_numbers = #tpu.dot_dimension_numbers<[1], [0], [0], [1], [0, 0, 1, 1], [], []>} : vector<8x8xbf16>, vector<8x8xbf16>, vector<8x8xf32> -> vector<8x8xf32>
    %86 = arith.truncf %85 : vector<8x8xf32> to vector<8x8xbf16>
    %87 = vector.extract_strided_slice %33 {offsets = [8, 0], sizes = [8, 32], strides = [1, 1]} : vector<32x32xbf16> to vector<8x32xbf16>
    %cst_33 = arith.constant dense<0.000000e+00> : vector<8x32xf32>
    %88 = tpu.matmul %86, %87, %cst_33 {dimension_numbers = #tpu.dot_dimension_numbers<[1], [0], [0], [1], [0, 0, 1, 1], [], []>} : vector<8x8xbf16>, vector<8x32xbf16>, vector<8x32xf32> -> vector<8x32xf32>
    %89 = arith.addf %62, %88 : vector<8x32xf32>
    %90 = vector.extract_strided_slice %31 {offsets = [0, 16], sizes = [8, 8], strides = [1, 1]} : vector<16x96xf32> to vector<8x8xf32>
    %91 = arith.truncf %90 : vector<8x8xf32> to vector<8x8xbf16>
    %92 = vector.extract_strided_slice %31 {offsets = [0, 48], sizes = [8, 8], strides = [1, 1]} : vector<16x96xf32> to vector<8x8xf32>
    %93 = arith.truncf %92 : vector<8x8xf32> to vector<8x8xbf16>
    %94 = vector.extract_strided_slice %31 {offsets = [0, 80], sizes = [8, 8], strides = [1, 1]} : vector<16x96xf32> to vector<8x8xf32>
    %95 = arith.truncf %94 : vector<8x8xf32> to vector<8x8xbf16>
    %cst_34 = arith.constant dense<0.000000e+00> : vector<8x8xf32>
    %96 = tpu.matmul %91, %93, %cst_34 {dimension_numbers = #tpu.dot_dimension_numbers<[1], [1], [0], [0], [0, 0, 1, 0], [], []>} : vector<8x8xbf16>, vector<8x8xbf16>, vector<8x8xf32> -> vector<8x8xf32>
    %cst_35 = arith.constant 0.353553385 : f32
    %97 = vector.broadcast %cst_35 : f32 to vector<8x8xf32>
    %98 = arith.mulf %96, %97 : vector<8x8xf32>
    %99 = vector.broadcast %34 : vector<1x8xf32> to vector<8x8xf32>
    %100 = arith.addf %98, %99 : vector<8x8xf32>
    %cst_36 = arith.constant dense<0xFF800000> : vector<8xf32>
    %101 = vector.multi_reduction <maximumf>, %100, %cst_36 [1] : vector<8x8xf32> to vector<8xf32>
    %102 = vector.shape_cast %101 : vector<8xf32> to vector<8x1xf32>
    %103 = vector.broadcast %102 : vector<8x1xf32> to vector<8x8xf32>
    %104 = arith.subf %100, %103 : vector<8x8xf32>
    %105 = math.exp %104 : vector<8x8xf32>
    %cst_37 = arith.constant dense<0.000000e+00> : vector<8xf32>
    %106 = vector.multi_reduction <add>, %105, %cst_37 [1] : vector<8x8xf32> to vector<8xf32>
    %107 = vector.shape_cast %106 : vector<8xf32> to vector<8x1xf32>
    %108 = tpu.reciprocal %107 {approx = true} : vector<8x1xf32> -> vector<8x1xf32>
    %109 = vector.broadcast %108 : vector<8x1xf32> to vector<8x8xf32>
    %110 = arith.mulf %105, %109 : vector<8x8xf32>
    %111 = arith.truncf %110 : vector<8x8xf32> to vector<8x8xbf16>
    %cst_38 = arith.constant dense<0.000000e+00> : vector<8x8xf32>
    %112 = tpu.matmul %111, %95, %cst_38 {dimension_numbers = #tpu.dot_dimension_numbers<[1], [0], [0], [1], [0, 0, 1, 1], [], []>} : vector<8x8xbf16>, vector<8x8xbf16>, vector<8x8xf32> -> vector<8x8xf32>
    %113 = arith.truncf %112 : vector<8x8xf32> to vector<8x8xbf16>
    %114 = vector.extract_strided_slice %33 {offsets = [16, 0], sizes = [8, 32], strides = [1, 1]} : vector<32x32xbf16> to vector<8x32xbf16>
    %cst_39 = arith.constant dense<0.000000e+00> : vector<8x32xf32>
    %115 = tpu.matmul %113, %114, %cst_39 {dimension_numbers = #tpu.dot_dimension_numbers<[1], [0], [0], [1], [0, 0, 1, 1], [], []>} : vector<8x8xbf16>, vector<8x32xbf16>, vector<8x32xf32> -> vector<8x32xf32>
    %116 = arith.addf %89, %115 : vector<8x32xf32>
    %117 = vector.extract_strided_slice %31 {offsets = [0, 24], sizes = [8, 8], strides = [1, 1]} : vector<16x96xf32> to vector<8x8xf32>
    %118 = arith.truncf %117 : vector<8x8xf32> to vector<8x8xbf16>
    %119 = vector.extract_strided_slice %31 {offsets = [0, 56], sizes = [8, 8], strides = [1, 1]} : vector<16x96xf32> to vector<8x8xf32>
    %120 = arith.truncf %119 : vector<8x8xf32> to vector<8x8xbf16>
    %121 = vector.extract_strided_slice %31 {offsets = [0, 88], sizes = [8, 8], strides = [1, 1]} : vector<16x96xf32> to vector<8x8xf32>
    %122 = arith.truncf %121 : vector<8x8xf32> to vector<8x8xbf16>
    %cst_40 = arith.constant dense<0.000000e+00> : vector<8x8xf32>
    %123 = tpu.matmul %118, %120, %cst_40 {dimension_numbers = #tpu.dot_dimension_numbers<[1], [1], [0], [0], [0, 0, 1, 0], [], []>} : vector<8x8xbf16>, vector<8x8xbf16>, vector<8x8xf32> -> vector<8x8xf32>
    %cst_41 = arith.constant 0.353553385 : f32
    %124 = vector.broadcast %cst_41 : f32 to vector<8x8xf32>
    %125 = arith.mulf %123, %124 : vector<8x8xf32>
    %126 = vector.broadcast %34 : vector<1x8xf32> to vector<8x8xf32>
    %127 = arith.addf %125, %126 : vector<8x8xf32>
    %cst_42 = arith.constant dense<0xFF800000> : vector<8xf32>
    %128 = vector.multi_reduction <maximumf>, %127, %cst_42 [1] : vector<8x8xf32> to vector<8xf32>
    %129 = vector.shape_cast %128 : vector<8xf32> to vector<8x1xf32>
    %130 = vector.broadcast %129 : vector<8x1xf32> to vector<8x8xf32>
    %131 = arith.subf %127, %130 : vector<8x8xf32>
    %132 = math.exp %131 : vector<8x8xf32>
    %cst_43 = arith.constant dense<0.000000e+00> : vector<8xf32>
    %133 = vector.multi_reduction <add>, %132, %cst_43 [1] : vector<8x8xf32> to vector<8xf32>
    %134 = vector.shape_cast %133 : vector<8xf32> to vector<8x1xf32>
    %135 = tpu.reciprocal %134 {approx = true} : vector<8x1xf32> -> vector<8x1xf32>
    %136 = vector.broadcast %135 : vector<8x1xf32> to vector<8x8xf32>
    %137 = arith.mulf %132, %136 : vector<8x8xf32>
    %138 = arith.truncf %137 : vector<8x8xf32> to vector<8x8xbf16>
    %cst_44 = arith.constant dense<0.000000e+00> : vector<8x8xf32>
    %139 = tpu.matmul %138, %122, %cst_44 {dimension_numbers = #tpu.dot_dimension_numbers<[1], [0], [0], [1], [0, 0, 1, 1], [], []>} : vector<8x8xbf16>, vector<8x8xbf16>, vector<8x8xf32> -> vector<8x8xf32>
    %140 = arith.truncf %139 : vector<8x8xf32> to vector<8x8xbf16>
    %141 = vector.extract_strided_slice %33 {offsets = [24, 0], sizes = [8, 32], strides = [1, 1]} : vector<32x32xbf16> to vector<8x32xbf16>
    %cst_45 = arith.constant dense<0.000000e+00> : vector<8x32xf32>
    %142 = tpu.matmul %140, %141, %cst_45 {dimension_numbers = #tpu.dot_dimension_numbers<[1], [0], [0], [1], [0, 0, 1, 1], [], []>} : vector<8x8xbf16>, vector<8x32xbf16>, vector<8x32xf32> -> vector<8x32xf32>
    %143 = arith.addf %116, %142 : vector<8x32xf32>
    %c0_46 = arith.constant 0 : index
    %c0_47 = arith.constant 0 : index
    %144 = vector.load %arg20[%c0_46, %c0_47] : memref<16x32xf32, #tpu.memory_space<vmem>>, vector<8x32xf32>
    tpu.vector_store %arg20[%c0_46, %c0_47], %143 {strides = array<i32>} : memref<16x32xf32, #tpu.memory_space<vmem>>, vector<8x32xf32>,
    %145 = vector.extract_strided_slice %23 {offsets = [1, 0], sizes = [1, 8], strides = [1, 1]} : vector<2x8xf32> to vector<1x8xf32>
    %cst_48 = arith.constant 0.000000e+00 : f32
    %146 = vector.broadcast %cst_48 : f32 to vector<8x32xf32>
    %147 = vector.extract_strided_slice %31 {offsets = [8, 0], sizes = [8, 8], strides = [1, 1]} : vector<16x96xf32> to vector<8x8xf32>
    %148 = arith.truncf %147 : vector<8x8xf32> to vector<8x8xbf16>
    %149 = vector.extract_strided_slice %31 {offsets = [8, 32], sizes = [8, 8], strides = [1, 1]} : vector<16x96xf32> to vector<8x8xf32>
    %150 = arith.truncf %149 : vector<8x8xf32> to vector<8x8xbf16>
    %151 = vector.extract_strided_slice %31 {offsets = [8, 64], sizes = [8, 8], strides = [1, 1]} : vector<16x96xf32> to vector<8x8xf32>
    %152 = arith.truncf %151 : vector<8x8xf32> to vector<8x8xbf16>
    %cst_49 = arith.constant dense<0.000000e+00> : vector<8x8xf32>
    %153 = tpu.matmul %148, %150, %cst_49 {dimension_numbers = #tpu.dot_dimension_numbers<[1], [1], [0], [0], [0, 0, 1, 0], [], []>} : vector<8x8xbf16>, vector<8x8xbf16>, vector<8x8xf32> -> vector<8x8xf32>
    %cst_50 = arith.constant 0.353553385 : f32
    %154 = vector.broadcast %cst_50 : f32 to vector<8x8xf32>
    %155 = arith.mulf %153, %154 : vector<8x8xf32>
    %156 = vector.broadcast %145 : vector<1x8xf32> to vector<8x8xf32>
    %157 = arith.addf %155, %156 : vector<8x8xf32>
    %cst_51 = arith.constant dense<0xFF800000> : vector<8xf32>
    %158 = vector.multi_reduction <maximumf>, %157, %cst_51 [1] : vector<8x8xf32> to vector<8xf32>
    %159 = vector.shape_cast %158 : vector<8xf32> to vector<8x1xf32>
    %160 = vector.broadcast %159 : vector<8x1xf32> to vector<8x8xf32>
    %161 = arith.subf %157, %160 : vector<8x8xf32>
    %162 = math.exp %161 : vector<8x8xf32>
    %cst_52 = arith.constant dense<0.000000e+00> : vector<8xf32>
    %163 = vector.multi_reduction <add>, %162, %cst_52 [1] : vector<8x8xf32> to vector<8xf32>
    %164 = vector.shape_cast %163 : vector<8xf32> to vector<8x1xf32>
    %165 = tpu.reciprocal %164 {approx = true} : vector<8x1xf32> -> vector<8x1xf32>
    %166 = vector.broadcast %165 : vector<8x1xf32> to vector<8x8xf32>
    %167 = arith.mulf %162, %166 : vector<8x8xf32>
    %168 = arith.truncf %167 : vector<8x8xf32> to vector<8x8xbf16>
    %cst_53 = arith.constant dense<0.000000e+00> : vector<8x8xf32>
    %169 = tpu.matmul %168, %152, %cst_53 {dimension_numbers = #tpu.dot_dimension_numbers<[1], [0], [0], [1], [0, 0, 1, 1], [], []>} : vector<8x8xbf16>, vector<8x8xbf16>, vector<8x8xf32> -> vector<8x8xf32>
    %170 = arith.truncf %169 : vector<8x8xf32> to vector<8x8xbf16>
    %171 = vector.extract_strided_slice %33 {offsets = [0, 0], sizes = [8, 32], strides = [1, 1]} : vector<32x32xbf16> to vector<8x32xbf16>
    %cst_54 = arith.constant dense<0.000000e+00> : vector<8x32xf32>
    %172 = tpu.matmul %170, %171, %cst_54 {dimension_numbers = #tpu.dot_dimension_numbers<[1], [0], [0], [1], [0, 0, 1, 1], [], []>} : vector<8x8xbf16>, vector<8x32xbf16>, vector<8x32xf32> -> vector<8x32xf32>
    %173 = arith.addf %146, %172 : vector<8x32xf32>
    %174 = vector.extract_strided_slice %31 {offsets = [8, 8], sizes = [8, 8], strides = [1, 1]} : vector<16x96xf32> to vector<8x8xf32>
    %175 = arith.truncf %174 : vector<8x8xf32> to vector<8x8xbf16>
    %176 = vector.extract_strided_slice %31 {offsets = [8, 40], sizes = [8, 8], strides = [1, 1]} : vector<16x96xf32> to vector<8x8xf32>
    %177 = arith.truncf %176 : vector<8x8xf32> to vector<8x8xbf16>
    %178 = vector.extract_strided_slice %31 {offsets = [8, 72], sizes = [8, 8], strides = [1, 1]} : vector<16x96xf32> to vector<8x8xf32>
    %179 = arith.truncf %178 : vector<8x8xf32> to vector<8x8xbf16>
    %cst_55 = arith.constant dense<0.000000e+00> : vector<8x8xf32>
    %180 = tpu.matmul %175, %177, %cst_55 {dimension_numbers = #tpu.dot_dimension_numbers<[1], [1], [0], [0], [0, 0, 1, 0], [], []>} : vector<8x8xbf16>, vector<8x8xbf16>, vector<8x8xf32> -> vector<8x8xf32>
    %cst_56 = arith.constant 0.353553385 : f32
    %181 = vector.broadcast %cst_56 : f32 to vector<8x8xf32>
    %182 = arith.mulf %180, %181 : vector<8x8xf32>
    %183 = vector.broadcast %145 : vector<1x8xf32> to vector<8x8xf32>
    %184 = arith.addf %182, %183 : vector<8x8xf32>
    %cst_57 = arith.constant dense<0xFF800000> : vector<8xf32>
    %185 = vector.multi_reduction <maximumf>, %184, %cst_57 [1] : vector<8x8xf32> to vector<8xf32>
    %186 = vector.shape_cast %185 : vector<8xf32> to vector<8x1xf32>
    %187 = vector.broadcast %186 : vector<8x1xf32> to vector<8x8xf32>
    %188 = arith.subf %184, %187 : vector<8x8xf32>
    %189 = math.exp %188 : vector<8x8xf32>
    %cst_58 = arith.constant dense<0.000000e+00> : vector<8xf32>
    %190 = vector.multi_reduction <add>, %189, %cst_58 [1] : vector<8x8xf32> to vector<8xf32>
    %191 = vector.shape_cast %190 : vector<8xf32> to vector<8x1xf32>
    %192 = tpu.reciprocal %191 {approx = true} : vector<8x1xf32> -> vector<8x1xf32>
    %193 = vector.broadcast %192 : vector<8x1xf32> to vector<8x8xf32>
    %194 = arith.mulf %189, %193 : vector<8x8xf32>
    %195 = arith.truncf %194 : vector<8x8xf32> to vector<8x8xbf16>
    %cst_59 = arith.constant dense<0.000000e+00> : vector<8x8xf32>
    %196 = tpu.matmul %195, %179, %cst_59 {dimension_numbers = #tpu.dot_dimension_numbers<[1], [0], [0], [1], [0, 0, 1, 1], [], []>} : vector<8x8xbf16>, vector<8x8xbf16>, vector<8x8xf32> -> vector<8x8xf32>
    %197 = arith.truncf %196 : vector<8x8xf32> to vector<8x8xbf16>
    %198 = vector.extract_strided_slice %33 {offsets = [8, 0], sizes = [8, 32], strides = [1, 1]} : vector<32x32xbf16> to vector<8x32xbf16>
    %cst_60 = arith.constant dense<0.000000e+00> : vector<8x32xf32>
    %199 = tpu.matmul %197, %198, %cst_60 {dimension_numbers = #tpu.dot_dimension_numbers<[1], [0], [0], [1], [0, 0, 1, 1], [], []>} : vector<8x8xbf16>, vector<8x32xbf16>, vector<8x32xf32> -> vector<8x32xf32>
    %200 = arith.addf %173, %199 : vector<8x32xf32>
    %201 = vector.extract_strided_slice %31 {offsets = [8, 16], sizes = [8, 8], strides = [1, 1]} : vector<16x96xf32> to vector<8x8xf32>
    %202 = arith.truncf %201 : vector<8x8xf32> to vector<8x8xbf16>
    %203 = vector.extract_strided_slice %31 {offsets = [8, 48], sizes = [8, 8], strides = [1, 1]} : vector<16x96xf32> to vector<8x8xf32>
    %204 = arith.truncf %203 : vector<8x8xf32> to vector<8x8xbf16>
    %205 = vector.extract_strided_slice %31 {offsets = [8, 80], sizes = [8, 8], strides = [1, 1]} : vector<16x96xf32> to vector<8x8xf32>
    %206 = arith.truncf %205 : vector<8x8xf32> to vector<8x8xbf16>
    %cst_61 = arith.constant dense<0.000000e+00> : vector<8x8xf32>
    %207 = tpu.matmul %202, %204, %cst_61 {dimension_numbers = #tpu.dot_dimension_numbers<[1], [1], [0], [0], [0, 0, 1, 0], [], []>} : vector<8x8xbf16>, vector<8x8xbf16>, vector<8x8xf32> -> vector<8x8xf32>
    %cst_62 = arith.constant 0.353553385 : f32
    %208 = vector.broadcast %cst_62 : f32 to vector<8x8xf32>
    %209 = arith.mulf %207, %208 : vector<8x8xf32>
    %210 = vector.broadcast %145 : vector<1x8xf32> to vector<8x8xf32>
    %211 = arith.addf %209, %210 : vector<8x8xf32>
    %cst_63 = arith.constant dense<0xFF800000> : vector<8xf32>
    %212 = vector.multi_reduction <maximumf>, %211, %cst_63 [1] : vector<8x8xf32> to vector<8xf32>
    %213 = vector.shape_cast %212 : vector<8xf32> to vector<8x1xf32>
    %214 = vector.broadcast %213 : vector<8x1xf32> to vector<8x8xf32>
    %215 = arith.subf %211, %214 : vector<8x8xf32>
    %216 = math.exp %215 : vector<8x8xf32>
    %cst_64 = arith.constant dense<0.000000e+00> : vector<8xf32>
    %217 = vector.multi_reduction <add>, %216, %cst_64 [1] : vector<8x8xf32> to vector<8xf32>
    %218 = vector.shape_cast %217 : vector<8xf32> to vector<8x1xf32>
    %219 = tpu.reciprocal %218 {approx = true} : vector<8x1xf32> -> vector<8x1xf32>
    %220 = vector.broadcast %219 : vector<8x1xf32> to vector<8x8xf32>
    %221 = arith.mulf %216, %220 : vector<8x8xf32>
    %222 = arith.truncf %221 : vector<8x8xf32> to vector<8x8xbf16>
    %cst_65 = arith.constant dense<0.000000e+00> : vector<8x8xf32>
    %223 = tpu.matmul %222, %206, %cst_65 {dimension_numbers = #tpu.dot_dimension_numbers<[1], [0], [0], [1], [0, 0, 1, 1], [], []>} : vector<8x8xbf16>, vector<8x8xbf16>, vector<8x8xf32> -> vector<8x8xf32>
    %224 = arith.truncf %223 : vector<8x8xf32> to vector<8x8xbf16>
    %225 = vector.extract_strided_slice %33 {offsets = [16, 0], sizes = [8, 32], strides = [1, 1]} : vector<32x32xbf16> to vector<8x32xbf16>
    %cst_66 = arith.constant dense<0.000000e+00> : vector<8x32xf32>
    %226 = tpu.matmul %224, %225, %cst_66 {dimension_numbers = #tpu.dot_dimension_numbers<[1], [0], [0], [1], [0, 0, 1, 1], [], []>} : vector<8x8xbf16>, vector<8x32xbf16>, vector<8x32xf32> -> vector<8x32xf32>
    %227 = arith.addf %200, %226 : vector<8x32xf32>
    %228 = vector.extract_strided_slice %31 {offsets = [8, 24], sizes = [8, 8], strides = [1, 1]} : vector<16x96xf32> to vector<8x8xf32>
    %229 = arith.truncf %228 : vector<8x8xf32> to vector<8x8xbf16>
    %230 = vector.extract_strided_slice %31 {offsets = [8, 56], sizes = [8, 8], strides = [1, 1]} : vector<16x96xf32> to vector<8x8xf32>
    %231 = arith.truncf %230 : vector<8x8xf32> to vector<8x8xbf16>
    %232 = vector.extract_strided_slice %31 {offsets = [8, 88], sizes = [8, 8], strides = [1, 1]} : vector<16x96xf32> to vector<8x8xf32>
    %233 = arith.truncf %232 : vector<8x8xf32> to vector<8x8xbf16>
    %cst_67 = arith.constant dense<0.000000e+00> : vector<8x8xf32>
    %234 = tpu.matmul %229, %231, %cst_67 {dimension_numbers = #tpu.dot_dimension_numbers<[1], [1], [0], [0], [0, 0, 1, 0], [], []>} : vector<8x8xbf16>, vector<8x8xbf16>, vector<8x8xf32> -> vector<8x8xf32>
    %cst_68 = arith.constant 0.353553385 : f32
    %235 = vector.broadcast %cst_68 : f32 to vector<8x8xf32>
    %236 = arith.mulf %234, %235 : vector<8x8xf32>
    %237 = vector.broadcast %145 : vector<1x8xf32> to vector<8x8xf32>
    %238 = arith.addf %236, %237 : vector<8x8xf32>
    %cst_69 = arith.constant dense<0xFF800000> : vector<8xf32>
    %239 = vector.multi_reduction <maximumf>, %238, %cst_69 [1] : vector<8x8xf32> to vector<8xf32>
    %240 = vector.shape_cast %239 : vector<8xf32> to vector<8x1xf32>
    %241 = vector.broadcast %240 : vector<8x1xf32> to vector<8x8xf32>
    %242 = arith.subf %238, %241 : vector<8x8xf32>
    %243 = math.exp %242 : vector<8x8xf32>
    %cst_70 = arith.constant dense<0.000000e+00> : vector<8xf32>
    %244 = vector.multi_reduction <add>, %243, %cst_70 [1] : vector<8x8xf32> to vector<8xf32>
    %245 = vector.shape_cast %244 : vector<8xf32> to vector<8x1xf32>
    %246 = tpu.reciprocal %245 {approx = true} : vector<8x1xf32> -> vector<8x1xf32>
    %247 = vector.broadcast %246 : vector<8x1xf32> to vector<8x8xf32>
    %248 = arith.mulf %243, %247 : vector<8x8xf32>
    %249 = arith.truncf %248 : vector<8x8xf32> to vector<8x8xbf16>
    %cst_71 = arith.constant dense<0.000000e+00> : vector<8x8xf32>
    %250 = tpu.matmul %249, %233, %cst_71 {dimension_numbers = #tpu.dot_dimension_numbers<[1], [0], [0], [1], [0, 0, 1, 1], [], []>} : vector<8x8xbf16>, vector<8x8xbf16>, vector<8x8xf32> -> vector<8x8xf32>
    %251 = arith.truncf %250 : vector<8x8xf32> to vector<8x8xbf16>
    %252 = vector.extract_strided_slice %33 {offsets = [24, 0], sizes = [8, 32], strides = [1, 1]} : vector<32x32xbf16> to vector<8x32xbf16>
    %cst_72 = arith.constant dense<0.000000e+00> : vector<8x32xf32>
    %253 = tpu.matmul %251, %252, %cst_72 {dimension_numbers = #tpu.dot_dimension_numbers<[1], [0], [0], [1], [0, 0, 1, 1], [], []>} : vector<8x8xbf16>, vector<8x32xbf16>, vector<8x32xf32> -> vector<8x32xf32>
    %254 = arith.addf %227, %253 : vector<8x32xf32>
    %c8 = arith.constant 8 : index
    %c0_73 = arith.constant 0 : index
    %255 = vector.load %arg20[%c8, %c0_73] : memref<16x32xf32, #tpu.memory_space<vmem>>, vector<8x32xf32>
    tpu.vector_store %arg20[%c8, %c0_73], %254 {strides = array<i32>} : memref<16x32xf32, #tpu.memory_space<vmem>>, vector<8x32xf32>,
    %c0_74 = arith.constant 0 : index
    %c0_75 = arith.constant 0 : index
    %256 = vector.load %arg20[%c0_74, %c0_75] : memref<16x32xf32, #tpu.memory_space<vmem>>, vector<16x32xf32>
    %c0_76 = arith.constant 0 : index
    %c0_77 = arith.constant 0 : index
    %c0_78 = arith.constant 0 : index
    %257 = vector.load %arg7[%c0_76, %c0_77, %c0_78] : memref<2x1x32xf32, #tpu.memory_space<vmem>>, vector<1x1x32xf32>
    %258 = vector.shape_cast %257 : vector<1x1x32xf32> to vector<1x32xf32>
    %259 = vector.broadcast %258 : vector<1x32xf32> to vector<16x32xf32>
    %260 = arith.addf %256, %259 : vector<16x32xf32>
    %261 = arith.addf %22, %260 : vector<16x32xf32>
    %c0_79 = arith.constant 0 : index
    %c0_80 = arith.constant 0 : index
    %c0_81 = arith.constant 0 : index
    %262 = vector.load %arg8[%c0_79, %c0_80, %c0_81] : memref<2x1x32xf32, #tpu.memory_space<vmem>>, vector<1x1x32xf32>
    %263 = vector.shape_cast %262 : vector<1x1x32xf32> to vector<1x32xf32>
    %c0_82 = arith.constant 0 : index
    %c0_83 = arith.constant 0 : index
    %c0_84 = arith.constant 0 : index
    %264 = vector.load %arg9[%c0_82, %c0_83, %c0_84] : memref<2x1x32xf32, #tpu.memory_space<vmem>>, vector<1x1x32xf32>
    %265 = vector.shape_cast %264 : vector<1x1x32xf32> to vector<1x32xf32>
    %cst_85 = arith.constant dense<0.000000e+00> : vector<16xf32>
    %266 = vector.multi_reduction <add>, %261, %cst_85 [1] : vector<16x32xf32> to vector<16xf32>
    %267 = vector.shape_cast %266 : vector<16xf32> to vector<16x1xf32>
    %cst_86 = arith.constant 3.200000e+01 : f32
    %268 = vector.broadcast %cst_86 : f32 to vector<16x1xf32>
    %269 = arith.divf %267, %268 : vector<16x1xf32>
    %270 = vector.broadcast %269 : vector<16x1xf32> to vector<16x32xf32>
    %271 = arith.subf %261, %270 : vector<16x32xf32>
    %272 = arith.mulf %271, %271 : vector<16x32xf32>
    %cst_87 = arith.constant dense<0.000000e+00> : vector<16xf32>
    %273 = vector.multi_reduction <add>, %272, %cst_87 [1] : vector<16x32xf32> to vector<16xf32>
    %274 = vector.shape_cast %273 : vector<16xf32> to vector<16x1xf32>
    %cst_88 = arith.constant 3.200000e+01 : f32
    %275 = vector.broadcast %cst_88 : f32 to vector<16x1xf32>
    %276 = arith.divf %274, %275 : vector<16x1xf32>
    %cst_89 = arith.constant 9.99999996E-13 : f32
    %277 = vector.broadcast %cst_89 : f32 to vector<16x1xf32>
    %278 = arith.addf %276, %277 : vector<16x1xf32>
    %279 = math.rsqrt %278 : vector<16x1xf32>
    %280 = vector.broadcast %279 : vector<16x1xf32> to vector<16x32xf32>
    %281 = arith.mulf %271, %280 : vector<16x32xf32>
    %282 = vector.broadcast %263 : vector<1x32xf32> to vector<16x32xf32>
    %283 = arith.mulf %281, %282 : vector<16x32xf32>
    %284 = vector.broadcast %265 : vector<1x32xf32> to vector<16x32xf32>
    %285 = arith.addf %283, %284 : vector<16x32xf32>
    %c0_90 = arith.constant 0 : index
    %c0_91 = arith.constant 0 : index
    %c0_92 = arith.constant 0 : index
    %286 = vector.load %arg10[%c0_90, %c0_91, %c0_92] : memref<2x32x64xbf16, #tpu.memory_space<vmem>>, vector<1x32x64xbf16>
    %287 = vector.shape_cast %286 : vector<1x32x64xbf16> to vector<32x64xbf16>
    %c0_93 = arith.constant 0 : index
    %c0_94 = arith.constant 0 : index
    %c0_95 = arith.constant 0 : index
    %288 = vector.load %arg11[%c0_93, %c0_94, %c0_95] : memref<2x1x64xf32, #tpu.memory_space<vmem>>, vector<1x1x64xf32>
    %289 = vector.shape_cast %288 : vector<1x1x64xf32> to vector<1x64xf32>
    %290 = arith.truncf %285 : vector<16x32xf32> to vector<16x32xbf16>
    %cst_96 = arith.constant dense<0.000000e+00> : vector<16x64xf32>
    %291 = tpu.matmul %290, %287, %cst_96 {dimension_numbers = #tpu.dot_dimension_numbers<[1], [0], [0], [1], [0, 0, 1, 1], [], []>} : vector<16x32xbf16>, vector<32x64xbf16>, vector<16x64xf32> -> vector<16x64xf32>
    %292 = vector.broadcast %289 : vector<1x64xf32> to vector<16x64xf32>
    %293 = arith.addf %291, %292 : vector<16x64xf32>
    %cst_97 = arith.constant 5.000000e-01 : f32
    %294 = vector.broadcast %cst_97 : f32 to vector<16x64xf32>
    %295 = arith.mulf %294, %293 : vector<16x64xf32>
    %cst_98 = arith.constant 4.471500e-02 : f32
    %296 = vector.broadcast %cst_98 : f32 to vector<16x64xf32>
    %297 = arith.mulf %296, %293 : vector<16x64xf32>
    %298 = arith.mulf %297, %293 : vector<16x64xf32>
    %299 = arith.mulf %298, %293 : vector<16x64xf32>
    %300 = arith.addf %293, %299 : vector<16x64xf32>
    %cst_99 = arith.constant 0.797884583 : f32
    %301 = vector.broadcast %cst_99 : f32 to vector<16x64xf32>
    %302 = arith.mulf %301, %300 : vector<16x64xf32>
    %303 = math.tanh %302 : vector<16x64xf32>
    %cst_100 = arith.constant 1.000000e+00 : f32
    %304 = vector.broadcast %cst_100 : f32 to vector<16x64xf32>
    %305 = arith.addf %304, %303 : vector<16x64xf32>
    %306 = arith.mulf %295, %305 : vector<16x64xf32>
    %c0_101 = arith.constant 0 : index
    %c0_102 = arith.constant 0 : index
    %c0_103 = arith.constant 0 : index
    %307 = vector.load %arg12[%c0_101, %c0_102, %c0_103] : memref<2x64x32xbf16, #tpu.memory_space<vmem>>, vector<1x64x32xbf16>
    %308 = vector.shape_cast %307 : vector<1x64x32xbf16> to vector<64x32xbf16>
    %c0_104 = arith.constant 0 : index
    %c0_105 = arith.constant 0 : index
    %c0_106 = arith.constant 0 : index
    %309 = vector.load %arg13[%c0_104, %c0_105, %c0_106] : memref<2x1x32xf32, #tpu.memory_space<vmem>>, vector<1x1x32xf32>
    %310 = vector.shape_cast %309 : vector<1x1x32xf32> to vector<1x32xf32>
    %311 = arith.truncf %306 : vector<16x64xf32> to vector<16x64xbf16>
    %cst_107 = arith.constant dense<0.000000e+00> : vector<16x32xf32>
    %312 = tpu.matmul %311, %308, %cst_107 {dimension_numbers = #tpu.dot_dimension_numbers<[1], [0], [0], [1], [0, 0, 1, 1], [], []>} : vector<16x64xbf16>, vector<64x32xbf16>, vector<16x32xf32> -> vector<16x32xf32>
    %313 = vector.broadcast %310 : vector<1x32xf32> to vector<16x32xf32>
    %314 = arith.addf %312, %313 : vector<16x32xf32>
    %315 = arith.addf %285, %314 : vector<16x32xf32>
    %c0_108 = arith.constant 0 : index
    %c0_109 = arith.constant 0 : index
    %c0_110 = arith.constant 0 : index
    %316 = vector.load %arg14[%c0_108, %c0_109, %c0_110] : memref<2x1x32xf32, #tpu.memory_space<vmem>>, vector<1x1x32xf32>
    %317 = vector.shape_cast %316 : vector<1x1x32xf32> to vector<1x32xf32>
    %c0_111 = arith.constant 0 : index
    %c0_112 = arith.constant 0 : index
    %c0_113 = arith.constant 0 : index
    %318 = vector.load %arg15[%c0_111, %c0_112, %c0_113] : memref<2x1x32xf32, #tpu.memory_space<vmem>>, vector<1x1x32xf32>
    %319 = vector.shape_cast %318 : vector<1x1x32xf32> to vector<1x32xf32>
    %cst_114 = arith.constant dense<0.000000e+00> : vector<16xf32>
    %320 = vector.multi_reduction <add>, %315, %cst_114 [1] : vector<16x32xf32> to vector<16xf32>
    %321 = vector.shape_cast %320 : vector<16xf32> to vector<16x1xf32>
    %cst_115 = arith.constant 3.200000e+01 : f32
    %322 = vector.broadcast %cst_115 : f32 to vector<16x1xf32>
    %323 = arith.divf %321, %322 : vector<16x1xf32>
    %324 = vector.broadcast %323 : vector<16x1xf32> to vector<16x32xf32>
    %325 = arith.subf %315, %324 : vector<16x32xf32>
    %326 = arith.mulf %325, %325 : vector<16x32xf32>
    %cst_116 = arith.constant dense<0.000000e+00> : vector<16xf32>
    %327 = vector.multi_reduction <add>, %326, %cst_116 [1] : vector<16x32xf32> to vector<16xf32>
    %328 = vector.shape_cast %327 : vector<16xf32> to vector<16x1xf32>
    %cst_117 = arith.constant 3.200000e+01 : f32
    %329 = vector.broadcast %cst_117 : f32 to vector<16x1xf32>
    %330 = arith.divf %328, %329 : vector<16x1xf32>
    %cst_118 = arith.constant 9.99999996E-13 : f32
    %331 = vector.broadcast %cst_118 : f32 to vector<16x1xf32>
    %332 = arith.addf %330, %331 : vector<16x1xf32>
    %333 = math.rsqrt %332 : vector<16x1xf32>
    %334 = vector.broadcast %333 : vector<16x1xf32> to vector<16x32xf32>
    %335 = arith.mulf %325, %334 : vector<16x32xf32>
    %336 = vector.broadcast %317 : vector<1x32xf32> to vector<16x32xf32>
    %337 = arith.mulf %335, %336 : vector<16x32xf32>
    %338 = vector.broadcast %319 : vector<1x32xf32> to vector<16x32xf32>
    %339 = arith.addf %337, %338 : vector<16x32xf32>
    %c1 = arith.constant 1 : index
    %c0_119 = arith.constant 0 : index
    %c0_120 = arith.constant 0 : index
    %340 = vector.load %arg4[%c1, %c0_119, %c0_120] : memref<2x32x96xbf16, #tpu.memory_space<vmem>>, vector<1x32x96xbf16>
    %341 = vector.shape_cast %340 : vector<1x32x96xbf16> to vector<32x96xbf16>
    %c1_121 = arith.constant 1 : index
    %c0_122 = arith.constant 0 : index
    %c0_123 = arith.constant 0 : index
    %342 = vector.load %arg5[%c1_121, %c0_122, %c0_123] : memref<2x1x96xf32, #tpu.memory_space<vmem>>, vector<1x1x96xf32>
    %343 = vector.shape_cast %342 : vector<1x1x96xf32> to vector<1x96xf32>
    %344 = arith.truncf %339 : vector<16x32xf32> to vector<16x32xbf16>
    %cst_124 = arith.constant dense<0.000000e+00> : vector<16x96xf32>
    %345 = tpu.matmul %344, %341, %cst_124 {dimension_numbers = #tpu.dot_dimension_numbers<[1], [0], [0], [1], [0, 0, 1, 1], [], []>} : vector<16x32xbf16>, vector<32x96xbf16>, vector<16x96xf32> -> vector<16x96xf32>
    %346 = vector.broadcast %343 : vector<1x96xf32> to vector<16x96xf32>
    %347 = arith.addf %345, %346 : vector<16x96xf32>
    %c1_125 = arith.constant 1 : index
    %c0_126 = arith.constant 0 : index
    %c0_127 = arith.constant 0 : index
    %348 = vector.load %arg6[%c1_125, %c0_126, %c0_127] : memref<2x32x32xbf16, #tpu.memory_space<vmem>>, vector<1x32x32xbf16>
    %349 = vector.shape_cast %348 : vector<1x32x32xbf16> to vector<32x32xbf16>
    %350 = vector.extract_strided_slice %23 {offsets = [0, 0], sizes = [1, 8], strides = [1, 1]} : vector<2x8xf32> to vector<1x8xf32>
    %cst_128 = arith.constant 0.000000e+00 : f32
    %351 = vector.broadcast %cst_128 : f32 to vector<8x32xf32>
    %352 = vector.extract_strided_slice %347 {offsets = [0, 0], sizes = [8, 8], strides = [1, 1]} : vector<16x96xf32> to vector<8x8xf32>
    %353 = arith.truncf %352 : vector<8x8xf32> to vector<8x8xbf16>
    %354 = vector.extract_strided_slice %347 {offsets = [0, 32], sizes = [8, 8], strides = [1, 1]} : vector<16x96xf32> to vector<8x8xf32>
    %355 = arith.truncf %354 : vector<8x8xf32> to vector<8x8xbf16>
    %356 = vector.extract_strided_slice %347 {offsets = [0, 64], sizes = [8, 8], strides = [1, 1]} : vector<16x96xf32> to vector<8x8xf32>
    %357 = arith.truncf %356 : vector<8x8xf32> to vector<8x8xbf16>
    %cst_129 = arith.constant dense<0.000000e+00> : vector<8x8xf32>
    %358 = tpu.matmul %353, %355, %cst_129 {dimension_numbers = #tpu.dot_dimension_numbers<[1], [1], [0], [0], [0, 0, 1, 0], [], []>} : vector<8x8xbf16>, vector<8x8xbf16>, vector<8x8xf32> -> vector<8x8xf32>
    %cst_130 = arith.constant 0.353553385 : f32
    %359 = vector.broadcast %cst_130 : f32 to vector<8x8xf32>
    %360 = arith.mulf %358, %359 : vector<8x8xf32>
    %361 = vector.broadcast %350 : vector<1x8xf32> to vector<8x8xf32>
    %362 = arith.addf %360, %361 : vector<8x8xf32>
    %cst_131 = arith.constant dense<0xFF800000> : vector<8xf32>
    %363 = vector.multi_reduction <maximumf>, %362, %cst_131 [1] : vector<8x8xf32> to vector<8xf32>
    %364 = vector.shape_cast %363 : vector<8xf32> to vector<8x1xf32>
    %365 = vector.broadcast %364 : vector<8x1xf32> to vector<8x8xf32>
    %366 = arith.subf %362, %365 : vector<8x8xf32>
    %367 = math.exp %366 : vector<8x8xf32>
    %cst_132 = arith.constant dense<0.000000e+00> : vector<8xf32>
    %368 = vector.multi_reduction <add>, %367, %cst_132 [1] : vector<8x8xf32> to vector<8xf32>
    %369 = vector.shape_cast %368 : vector<8xf32> to vector<8x1xf32>
    %370 = tpu.reciprocal %369 {approx = true} : vector<8x1xf32> -> vector<8x1xf32>
    %371 = vector.broadcast %370 : vector<8x1xf32> to vector<8x8xf32>
    %372 = arith.mulf %367, %371 : vector<8x8xf32>
    %373 = arith.truncf %372 : vector<8x8xf32> to vector<8x8xbf16>
    %cst_133 = arith.constant dense<0.000000e+00> : vector<8x8xf32>
    %374 = tpu.matmul %373, %357, %cst_133 {dimension_numbers = #tpu.dot_dimension_numbers<[1], [0], [0], [1], [0, 0, 1, 1], [], []>} : vector<8x8xbf16>, vector<8x8xbf16>, vector<8x8xf32> -> vector<8x8xf32>
    %375 = arith.truncf %374 : vector<8x8xf32> to vector<8x8xbf16>
    %376 = vector.extract_strided_slice %349 {offsets = [0, 0], sizes = [8, 32], strides = [1, 1]} : vector<32x32xbf16> to vector<8x32xbf16>
    %cst_134 = arith.constant dense<0.000000e+00> : vector<8x32xf32>
    %377 = tpu.matmul %375, %376, %cst_134 {dimension_numbers = #tpu.dot_dimension_numbers<[1], [0], [0], [1], [0, 0, 1, 1], [], []>} : vector<8x8xbf16>, vector<8x32xbf16>, vector<8x32xf32> -> vector<8x32xf32>
    %378 = arith.addf %351, %377 : vector<8x32xf32>
    %379 = vector.extract_strided_slice %347 {offsets = [0, 8], sizes = [8, 8], strides = [1, 1]} : vector<16x96xf32> to vector<8x8xf32>
    %380 = arith.truncf %379 : vector<8x8xf32> to vector<8x8xbf16>
    %381 = vector.extract_strided_slice %347 {offsets = [0, 40], sizes = [8, 8], strides = [1, 1]} : vector<16x96xf32> to vector<8x8xf32>
    %382 = arith.truncf %381 : vector<8x8xf32> to vector<8x8xbf16>
    %383 = vector.extract_strided_slice %347 {offsets = [0, 72], sizes = [8, 8], strides = [1, 1]} : vector<16x96xf32> to vector<8x8xf32>
    %384 = arith.truncf %383 : vector<8x8xf32> to vector<8x8xbf16>
    %cst_135 = arith.constant dense<0.000000e+00> : vector<8x8xf32>
    %385 = tpu.matmul %380, %382, %cst_135 {dimension_numbers = #tpu.dot_dimension_numbers<[1], [1], [0], [0], [0, 0, 1, 0], [], []>} : vector<8x8xbf16>, vector<8x8xbf16>, vector<8x8xf32> -> vector<8x8xf32>
    %cst_136 = arith.constant 0.353553385 : f32
    %386 = vector.broadcast %cst_136 : f32 to vector<8x8xf32>
    %387 = arith.mulf %385, %386 : vector<8x8xf32>
    %388 = vector.broadcast %350 : vector<1x8xf32> to vector<8x8xf32>
    %389 = arith.addf %387, %388 : vector<8x8xf32>
    %cst_137 = arith.constant dense<0xFF800000> : vector<8xf32>
    %390 = vector.multi_reduction <maximumf>, %389, %cst_137 [1] : vector<8x8xf32> to vector<8xf32>
    %391 = vector.shape_cast %390 : vector<8xf32> to vector<8x1xf32>
    %392 = vector.broadcast %391 : vector<8x1xf32> to vector<8x8xf32>
    %393 = arith.subf %389, %392 : vector<8x8xf32>
    %394 = math.exp %393 : vector<8x8xf32>
    %cst_138 = arith.constant dense<0.000000e+00> : vector<8xf32>
    %395 = vector.multi_reduction <add>, %394, %cst_138 [1] : vector<8x8xf32> to vector<8xf32>
    %396 = vector.shape_cast %395 : vector<8xf32> to vector<8x1xf32>
    %397 = tpu.reciprocal %396 {approx = true} : vector<8x1xf32> -> vector<8x1xf32>
    %398 = vector.broadcast %397 : vector<8x1xf32> to vector<8x8xf32>
    %399 = arith.mulf %394, %398 : vector<8x8xf32>
    %400 = arith.truncf %399 : vector<8x8xf32> to vector<8x8xbf16>
    %cst_139 = arith.constant dense<0.000000e+00> : vector<8x8xf32>
    %401 = tpu.matmul %400, %384, %cst_139 {dimension_numbers = #tpu.dot_dimension_numbers<[1], [0], [0], [1], [0, 0, 1, 1], [], []>} : vector<8x8xbf16>, vector<8x8xbf16>, vector<8x8xf32> -> vector<8x8xf32>
    %402 = arith.truncf %401 : vector<8x8xf32> to vector<8x8xbf16>
    %403 = vector.extract_strided_slice %349 {offsets = [8, 0], sizes = [8, 32], strides = [1, 1]} : vector<32x32xbf16> to vector<8x32xbf16>
    %cst_140 = arith.constant dense<0.000000e+00> : vector<8x32xf32>
    %404 = tpu.matmul %402, %403, %cst_140 {dimension_numbers = #tpu.dot_dimension_numbers<[1], [0], [0], [1], [0, 0, 1, 1], [], []>} : vector<8x8xbf16>, vector<8x32xbf16>, vector<8x32xf32> -> vector<8x32xf32>
    %405 = arith.addf %378, %404 : vector<8x32xf32>
    %406 = vector.extract_strided_slice %347 {offsets = [0, 16], sizes = [8, 8], strides = [1, 1]} : vector<16x96xf32> to vector<8x8xf32>
    %407 = arith.truncf %406 : vector<8x8xf32> to vector<8x8xbf16>
    %408 = vector.extract_strided_slice %347 {offsets = [0, 48], sizes = [8, 8], strides = [1, 1]} : vector<16x96xf32> to vector<8x8xf32>
    %409 = arith.truncf %408 : vector<8x8xf32> to vector<8x8xbf16>
    %410 = vector.extract_strided_slice %347 {offsets = [0, 80], sizes = [8, 8], strides = [1, 1]} : vector<16x96xf32> to vector<8x8xf32>
    %411 = arith.truncf %410 : vector<8x8xf32> to vector<8x8xbf16>
    %cst_141 = arith.constant dense<0.000000e+00> : vector<8x8xf32>
    %412 = tpu.matmul %407, %409, %cst_141 {dimension_numbers = #tpu.dot_dimension_numbers<[1], [1], [0], [0], [0, 0, 1, 0], [], []>} : vector<8x8xbf16>, vector<8x8xbf16>, vector<8x8xf32> -> vector<8x8xf32>
    %cst_142 = arith.constant 0.353553385 : f32
    %413 = vector.broadcast %cst_142 : f32 to vector<8x8xf32>
    %414 = arith.mulf %412, %413 : vector<8x8xf32>
    %415 = vector.broadcast %350 : vector<1x8xf32> to vector<8x8xf32>
    %416 = arith.addf %414, %415 : vector<8x8xf32>
    %cst_143 = arith.constant dense<0xFF800000> : vector<8xf32>
    %417 = vector.multi_reduction <maximumf>, %416, %cst_143 [1] : vector<8x8xf32> to vector<8xf32>
    %418 = vector.shape_cast %417 : vector<8xf32> to vector<8x1xf32>
    %419 = vector.broadcast %418 : vector<8x1xf32> to vector<8x8xf32>
    %420 = arith.subf %416, %419 : vector<8x8xf32>
    %421 = math.exp %420 : vector<8x8xf32>
    %cst_144 = arith.constant dense<0.000000e+00> : vector<8xf32>
    %422 = vector.multi_reduction <add>, %421, %cst_144 [1] : vector<8x8xf32> to vector<8xf32>
    %423 = vector.shape_cast %422 : vector<8xf32> to vector<8x1xf32>
    %424 = tpu.reciprocal %423 {approx = true} : vector<8x1xf32> -> vector<8x1xf32>
    %425 = vector.broadcast %424 : vector<8x1xf32> to vector<8x8xf32>
    %426 = arith.mulf %421, %425 : vector<8x8xf32>
    %427 = arith.truncf %426 : vector<8x8xf32> to vector<8x8xbf16>
    %cst_145 = arith.constant dense<0.000000e+00> : vector<8x8xf32>
    %428 = tpu.matmul %427, %411, %cst_145 {dimension_numbers = #tpu.dot_dimension_numbers<[1], [0], [0], [1], [0, 0, 1, 1], [], []>} : vector<8x8xbf16>, vector<8x8xbf16>, vector<8x8xf32> -> vector<8x8xf32>
    %429 = arith.truncf %428 : vector<8x8xf32> to vector<8x8xbf16>
    %430 = vector.extract_strided_slice %349 {offsets = [16, 0], sizes = [8, 32], strides = [1, 1]} : vector<32x32xbf16> to vector<8x32xbf16>
    %cst_146 = arith.constant dense<0.000000e+00> : vector<8x32xf32>
    %431 = tpu.matmul %429, %430, %cst_146 {dimension_numbers = #tpu.dot_dimension_numbers<[1], [0], [0], [1], [0, 0, 1, 1], [], []>} : vector<8x8xbf16>, vector<8x32xbf16>, vector<8x32xf32> -> vector<8x32xf32>
    %432 = arith.addf %405, %431 : vector<8x32xf32>
    %433 = vector.extract_strided_slice %347 {offsets = [0, 24], sizes = [8, 8], strides = [1, 1]} : vector<16x96xf32> to vector<8x8xf32>
    %434 = arith.truncf %433 : vector<8x8xf32> to vector<8x8xbf16>
    %435 = vector.extract_strided_slice %347 {offsets = [0, 56], sizes = [8, 8], strides = [1, 1]} : vector<16x96xf32> to vector<8x8xf32>
    %436 = arith.truncf %435 : vector<8x8xf32> to vector<8x8xbf16>
    %437 = vector.extract_strided_slice %347 {offsets = [0, 88], sizes = [8, 8], strides = [1, 1]} : vector<16x96xf32> to vector<8x8xf32>
    %438 = arith.truncf %437 : vector<8x8xf32> to vector<8x8xbf16>
    %cst_147 = arith.constant dense<0.000000e+00> : vector<8x8xf32>
    %439 = tpu.matmul %434, %436, %cst_147 {dimension_numbers = #tpu.dot_dimension_numbers<[1], [1], [0], [0], [0, 0, 1, 0], [], []>} : vector<8x8xbf16>, vector<8x8xbf16>, vector<8x8xf32> -> vector<8x8xf32>
    %cst_148 = arith.constant 0.353553385 : f32
    %440 = vector.broadcast %cst_148 : f32 to vector<8x8xf32>
    %441 = arith.mulf %439, %440 : vector<8x8xf32>
    %442 = vector.broadcast %350 : vector<1x8xf32> to vector<8x8xf32>
    %443 = arith.addf %441, %442 : vector<8x8xf32>
    %cst_149 = arith.constant dense<0xFF800000> : vector<8xf32>
    %444 = vector.multi_reduction <maximumf>, %443, %cst_149 [1] : vector<8x8xf32> to vector<8xf32>
    %445 = vector.shape_cast %444 : vector<8xf32> to vector<8x1xf32>
    %446 = vector.broadcast %445 : vector<8x1xf32> to vector<8x8xf32>
    %447 = arith.subf %443, %446 : vector<8x8xf32>
    %448 = math.exp %447 : vector<8x8xf32>
    %cst_150 = arith.constant dense<0.000000e+00> : vector<8xf32>
    %449 = vector.multi_reduction <add>, %448, %cst_150 [1] : vector<8x8xf32> to vector<8xf32>
    %450 = vector.shape_cast %449 : vector<8xf32> to vector<8x1xf32>
    %451 = tpu.reciprocal %450 {approx = true} : vector<8x1xf32> -> vector<8x1xf32>
    %452 = vector.broadcast %451 : vector<8x1xf32> to vector<8x8xf32>
    %453 = arith.mulf %448, %452 : vector<8x8xf32>
    %454 = arith.truncf %453 : vector<8x8xf32> to vector<8x8xbf16>
    %cst_151 = arith.constant dense<0.000000e+00> : vector<8x8xf32>
    %455 = tpu.matmul %454, %438, %cst_151 {dimension_numbers = #tpu.dot_dimension_numbers<[1], [0], [0], [1], [0, 0, 1, 1], [], []>} : vector<8x8xbf16>, vector<8x8xbf16>, vector<8x8xf32> -> vector<8x8xf32>
    %456 = arith.truncf %455 : vector<8x8xf32> to vector<8x8xbf16>
    %457 = vector.extract_strided_slice %349 {offsets = [24, 0], sizes = [8, 32], strides = [1, 1]} : vector<32x32xbf16> to vector<8x32xbf16>
    %cst_152 = arith.constant dense<0.000000e+00> : vector<8x32xf32>
    %458 = tpu.matmul %456, %457, %cst_152 {dimension_numbers = #tpu.dot_dimension_numbers<[1], [0], [0], [1], [0, 0, 1, 1], [], []>} : vector<8x8xbf16>, vector<8x32xbf16>, vector<8x32xf32> -> vector<8x32xf32>
    %459 = arith.addf %432, %458 : vector<8x32xf32>
    %c0_153 = arith.constant 0 : index
    %c0_154 = arith.constant 0 : index
    %460 = vector.load %arg20[%c0_153, %c0_154] : memref<16x32xf32, #tpu.memory_space<vmem>>, vector<8x32xf32>
    tpu.vector_store %arg20[%c0_153, %c0_154], %459 {strides = array<i32>} : memref<16x32xf32, #tpu.memory_space<vmem>>, vector<8x32xf32>,
    %461 = vector.extract_strided_slice %23 {offsets = [1, 0], sizes = [1, 8], strides = [1, 1]} : vector<2x8xf32> to vector<1x8xf32>
    %cst_155 = arith.constant 0.000000e+00 : f32
    %462 = vector.broadcast %cst_155 : f32 to vector<8x32xf32>
    %463 = vector.extract_strided_slice %347 {offsets = [8, 0], sizes = [8, 8], strides = [1, 1]} : vector<16x96xf32> to vector<8x8xf32>
    %464 = arith.truncf %463 : vector<8x8xf32> to vector<8x8xbf16>
    %465 = vector.extract_strided_slice %347 {offsets = [8, 32], sizes = [8, 8], strides = [1, 1]} : vector<16x96xf32> to vector<8x8xf32>
    %466 = arith.truncf %465 : vector<8x8xf32> to vector<8x8xbf16>
    %467 = vector.extract_strided_slice %347 {offsets = [8, 64], sizes = [8, 8], strides = [1, 1]} : vector<16x96xf32> to vector<8x8xf32>
    %468 = arith.truncf %467 : vector<8x8xf32> to vector<8x8xbf16>
    %cst_156 = arith.constant dense<0.000000e+00> : vector<8x8xf32>
    %469 = tpu.matmul %464, %466, %cst_156 {dimension_numbers = #tpu.dot_dimension_numbers<[1], [1], [0], [0], [0, 0, 1, 0], [], []>} : vector<8x8xbf16>, vector<8x8xbf16>, vector<8x8xf32> -> vector<8x8xf32>
    %cst_157 = arith.constant 0.353553385 : f32
    %470 = vector.broadcast %cst_157 : f32 to vector<8x8xf32>
    %471 = arith.mulf %469, %470 : vector<8x8xf32>
    %472 = vector.broadcast %461 : vector<1x8xf32> to vector<8x8xf32>
    %473 = arith.addf %471, %472 : vector<8x8xf32>
    %cst_158 = arith.constant dense<0xFF800000> : vector<8xf32>
    %474 = vector.multi_reduction <maximumf>, %473, %cst_158 [1] : vector<8x8xf32> to vector<8xf32>
    %475 = vector.shape_cast %474 : vector<8xf32> to vector<8x1xf32>
    %476 = vector.broadcast %475 : vector<8x1xf32> to vector<8x8xf32>
    %477 = arith.subf %473, %476 : vector<8x8xf32>
    %478 = math.exp %477 : vector<8x8xf32>
    %cst_159 = arith.constant dense<0.000000e+00> : vector<8xf32>
    %479 = vector.multi_reduction <add>, %478, %cst_159 [1] : vector<8x8xf32> to vector<8xf32>
    %480 = vector.shape_cast %479 : vector<8xf32> to vector<8x1xf32>
    %481 = tpu.reciprocal %480 {approx = true} : vector<8x1xf32> -> vector<8x1xf32>
    %482 = vector.broadcast %481 : vector<8x1xf32> to vector<8x8xf32>
    %483 = arith.mulf %478, %482 : vector<8x8xf32>
    %484 = arith.truncf %483 : vector<8x8xf32> to vector<8x8xbf16>
    %cst_160 = arith.constant dense<0.000000e+00> : vector<8x8xf32>
    %485 = tpu.matmul %484, %468, %cst_160 {dimension_numbers = #tpu.dot_dimension_numbers<[1], [0], [0], [1], [0, 0, 1, 1], [], []>} : vector<8x8xbf16>, vector<8x8xbf16>, vector<8x8xf32> -> vector<8x8xf32>
    %486 = arith.truncf %485 : vector<8x8xf32> to vector<8x8xbf16>
    %487 = vector.extract_strided_slice %349 {offsets = [0, 0], sizes = [8, 32], strides = [1, 1]} : vector<32x32xbf16> to vector<8x32xbf16>
    %cst_161 = arith.constant dense<0.000000e+00> : vector<8x32xf32>
    %488 = tpu.matmul %486, %487, %cst_161 {dimension_numbers = #tpu.dot_dimension_numbers<[1], [0], [0], [1], [0, 0, 1, 1], [], []>} : vector<8x8xbf16>, vector<8x32xbf16>, vector<8x32xf32> -> vector<8x32xf32>
    %489 = arith.addf %462, %488 : vector<8x32xf32>
    %490 = vector.extract_strided_slice %347 {offsets = [8, 8], sizes = [8, 8], strides = [1, 1]} : vector<16x96xf32> to vector<8x8xf32>
    %491 = arith.truncf %490 : vector<8x8xf32> to vector<8x8xbf16>
    %492 = vector.extract_strided_slice %347 {offsets = [8, 40], sizes = [8, 8], strides = [1, 1]} : vector<16x96xf32> to vector<8x8xf32>
    %493 = arith.truncf %492 : vector<8x8xf32> to vector<8x8xbf16>
    %494 = vector.extract_strided_slice %347 {offsets = [8, 72], sizes = [8, 8], strides = [1, 1]} : vector<16x96xf32> to vector<8x8xf32>
    %495 = arith.truncf %494 : vector<8x8xf32> to vector<8x8xbf16>
    %cst_162 = arith.constant dense<0.000000e+00> : vector<8x8xf32>
    %496 = tpu.matmul %491, %493, %cst_162 {dimension_numbers = #tpu.dot_dimension_numbers<[1], [1], [0], [0], [0, 0, 1, 0], [], []>} : vector<8x8xbf16>, vector<8x8xbf16>, vector<8x8xf32> -> vector<8x8xf32>
    %cst_163 = arith.constant 0.353553385 : f32
    %497 = vector.broadcast %cst_163 : f32 to vector<8x8xf32>
    %498 = arith.mulf %496, %497 : vector<8x8xf32>
    %499 = vector.broadcast %461 : vector<1x8xf32> to vector<8x8xf32>
    %500 = arith.addf %498, %499 : vector<8x8xf32>
    %cst_164 = arith.constant dense<0xFF800000> : vector<8xf32>
    %501 = vector.multi_reduction <maximumf>, %500, %cst_164 [1] : vector<8x8xf32> to vector<8xf32>
    %502 = vector.shape_cast %501 : vector<8xf32> to vector<8x1xf32>
    %503 = vector.broadcast %502 : vector<8x1xf32> to vector<8x8xf32>
    %504 = arith.subf %500, %503 : vector<8x8xf32>
    %505 = math.exp %504 : vector<8x8xf32>
    %cst_165 = arith.constant dense<0.000000e+00> : vector<8xf32>
    %506 = vector.multi_reduction <add>, %505, %cst_165 [1] : vector<8x8xf32> to vector<8xf32>
    %507 = vector.shape_cast %506 : vector<8xf32> to vector<8x1xf32>
    %508 = tpu.reciprocal %507 {approx = true} : vector<8x1xf32> -> vector<8x1xf32>
    %509 = vector.broadcast %508 : vector<8x1xf32> to vector<8x8xf32>
    %510 = arith.mulf %505, %509 : vector<8x8xf32>
    %511 = arith.truncf %510 : vector<8x8xf32> to vector<8x8xbf16>
    %cst_166 = arith.constant dense<0.000000e+00> : vector<8x8xf32>
    %512 = tpu.matmul %511, %495, %cst_166 {dimension_numbers = #tpu.dot_dimension_numbers<[1], [0], [0], [1], [0, 0, 1, 1], [], []>} : vector<8x8xbf16>, vector<8x8xbf16>, vector<8x8xf32> -> vector<8x8xf32>
    %513 = arith.truncf %512 : vector<8x8xf32> to vector<8x8xbf16>
    %514 = vector.extract_strided_slice %349 {offsets = [8, 0], sizes = [8, 32], strides = [1, 1]} : vector<32x32xbf16> to vector<8x32xbf16>
    %cst_167 = arith.constant dense<0.000000e+00> : vector<8x32xf32>
    %515 = tpu.matmul %513, %514, %cst_167 {dimension_numbers = #tpu.dot_dimension_numbers<[1], [0], [0], [1], [0, 0, 1, 1], [], []>} : vector<8x8xbf16>, vector<8x32xbf16>, vector<8x32xf32> -> vector<8x32xf32>
    %516 = arith.addf %489, %515 : vector<8x32xf32>
    %517 = vector.extract_strided_slice %347 {offsets = [8, 16], sizes = [8, 8], strides = [1, 1]} : vector<16x96xf32> to vector<8x8xf32>
    %518 = arith.truncf %517 : vector<8x8xf32> to vector<8x8xbf16>
    %519 = vector.extract_strided_slice %347 {offsets = [8, 48], sizes = [8, 8], strides = [1, 1]} : vector<16x96xf32> to vector<8x8xf32>
    %520 = arith.truncf %519 : vector<8x8xf32> to vector<8x8xbf16>
    %521 = vector.extract_strided_slice %347 {offsets = [8, 80], sizes = [8, 8], strides = [1, 1]} : vector<16x96xf32> to vector<8x8xf32>
    %522 = arith.truncf %521 : vector<8x8xf32> to vector<8x8xbf16>
    %cst_168 = arith.constant dense<0.000000e+00> : vector<8x8xf32>
    %523 = tpu.matmul %518, %520, %cst_168 {dimension_numbers = #tpu.dot_dimension_numbers<[1], [1], [0], [0], [0, 0, 1, 0], [], []>} : vector<8x8xbf16>, vector<8x8xbf16>, vector<8x8xf32> -> vector<8x8xf32>
    %cst_169 = arith.constant 0.353553385 : f32
    %524 = vector.broadcast %cst_169 : f32 to vector<8x8xf32>
    %525 = arith.mulf %523, %524 : vector<8x8xf32>
    %526 = vector.broadcast %461 : vector<1x8xf32> to vector<8x8xf32>
    %527 = arith.addf %525, %526 : vector<8x8xf32>
    %cst_170 = arith.constant dense<0xFF800000> : vector<8xf32>
    %528 = vector.multi_reduction <maximumf>, %527, %cst_170 [1] : vector<8x8xf32> to vector<8xf32>
    %529 = vector.shape_cast %528 : vector<8xf32> to vector<8x1xf32>
    %530 = vector.broadcast %529 : vector<8x1xf32> to vector<8x8xf32>
    %531 = arith.subf %527, %530 : vector<8x8xf32>
    %532 = math.exp %531 : vector<8x8xf32>
    %cst_171 = arith.constant dense<0.000000e+00> : vector<8xf32>
    %533 = vector.multi_reduction <add>, %532, %cst_171 [1] : vector<8x8xf32> to vector<8xf32>
    %534 = vector.shape_cast %533 : vector<8xf32> to vector<8x1xf32>
    %535 = tpu.reciprocal %534 {approx = true} : vector<8x1xf32> -> vector<8x1xf32>
    %536 = vector.broadcast %535 : vector<8x1xf32> to vector<8x8xf32>
    %537 = arith.mulf %532, %536 : vector<8x8xf32>
    %538 = arith.truncf %537 : vector<8x8xf32> to vector<8x8xbf16>
    %cst_172 = arith.constant dense<0.000000e+00> : vector<8x8xf32>
    %539 = tpu.matmul %538, %522, %cst_172 {dimension_numbers = #tpu.dot_dimension_numbers<[1], [0], [0], [1], [0, 0, 1, 1], [], []>} : vector<8x8xbf16>, vector<8x8xbf16>, vector<8x8xf32> -> vector<8x8xf32>
    %540 = arith.truncf %539 : vector<8x8xf32> to vector<8x8xbf16>
    %541 = vector.extract_strided_slice %349 {offsets = [16, 0], sizes = [8, 32], strides = [1, 1]} : vector<32x32xbf16> to vector<8x32xbf16>
    %cst_173 = arith.constant dense<0.000000e+00> : vector<8x32xf32>
    %542 = tpu.matmul %540, %541, %cst_173 {dimension_numbers = #tpu.dot_dimension_numbers<[1], [0], [0], [1], [0, 0, 1, 1], [], []>} : vector<8x8xbf16>, vector<8x32xbf16>, vector<8x32xf32> -> vector<8x32xf32>
    %543 = arith.addf %516, %542 : vector<8x32xf32>
    %544 = vector.extract_strided_slice %347 {offsets = [8, 24], sizes = [8, 8], strides = [1, 1]} : vector<16x96xf32> to vector<8x8xf32>
    %545 = arith.truncf %544 : vector<8x8xf32> to vector<8x8xbf16>
    %546 = vector.extract_strided_slice %347 {offsets = [8, 56], sizes = [8, 8], strides = [1, 1]} : vector<16x96xf32> to vector<8x8xf32>
    %547 = arith.truncf %546 : vector<8x8xf32> to vector<8x8xbf16>
    %548 = vector.extract_strided_slice %347 {offsets = [8, 88], sizes = [8, 8], strides = [1, 1]} : vector<16x96xf32> to vector<8x8xf32>
    %549 = arith.truncf %548 : vector<8x8xf32> to vector<8x8xbf16>
    %cst_174 = arith.constant dense<0.000000e+00> : vector<8x8xf32>
    %550 = tpu.matmul %545, %547, %cst_174 {dimension_numbers = #tpu.dot_dimension_numbers<[1], [1], [0], [0], [0, 0, 1, 0], [], []>} : vector<8x8xbf16>, vector<8x8xbf16>, vector<8x8xf32> -> vector<8x8xf32>
    %cst_175 = arith.constant 0.353553385 : f32
    %551 = vector.broadcast %cst_175 : f32 to vector<8x8xf32>
    %552 = arith.mulf %550, %551 : vector<8x8xf32>
    %553 = vector.broadcast %461 : vector<1x8xf32> to vector<8x8xf32>
    %554 = arith.addf %552, %553 : vector<8x8xf32>
    %cst_176 = arith.constant dense<0xFF800000> : vector<8xf32>
    %555 = vector.multi_reduction <maximumf>, %554, %cst_176 [1] : vector<8x8xf32> to vector<8xf32>
    %556 = vector.shape_cast %555 : vector<8xf32> to vector<8x1xf32>
    %557 = vector.broadcast %556 : vector<8x1xf32> to vector<8x8xf32>
    %558 = arith.subf %554, %557 : vector<8x8xf32>
    %559 = math.exp %558 : vector<8x8xf32>
    %cst_177 = arith.constant dense<0.000000e+00> : vector<8xf32>
    %560 = vector.multi_reduction <add>, %559, %cst_177 [1] : vector<8x8xf32> to vector<8xf32>
    %561 = vector.shape_cast %560 : vector<8xf32> to vector<8x1xf32>
    %562 = tpu.reciprocal %561 {approx = true} : vector<8x1xf32> -> vector<8x1xf32>
    %563 = vector.broadcast %562 : vector<8x1xf32> to vector<8x8xf32>
    %564 = arith.mulf %559, %563 : vector<8x8xf32>
    %565 = arith.truncf %564 : vector<8x8xf32> to vector<8x8xbf16>
    %cst_178 = arith.constant dense<0.000000e+00> : vector<8x8xf32>
    %566 = tpu.matmul %565, %549, %cst_178 {dimension_numbers = #tpu.dot_dimension_numbers<[1], [0], [0], [1], [0, 0, 1, 1], [], []>} : vector<8x8xbf16>, vector<8x8xbf16>, vector<8x8xf32> -> vector<8x8xf32>
    %567 = arith.truncf %566 : vector<8x8xf32> to vector<8x8xbf16>
    %568 = vector.extract_strided_slice %349 {offsets = [24, 0], sizes = [8, 32], strides = [1, 1]} : vector<32x32xbf16> to vector<8x32xbf16>
    %cst_179 = arith.constant dense<0.000000e+00> : vector<8x32xf32>
    %569 = tpu.matmul %567, %568, %cst_179 {dimension_numbers = #tpu.dot_dimension_numbers<[1], [0], [0], [1], [0, 0, 1, 1], [], []>} : vector<8x8xbf16>, vector<8x32xbf16>, vector<8x32xf32> -> vector<8x32xf32>
    %570 = arith.addf %543, %569 : vector<8x32xf32>
    %c8_180 = arith.constant 8 : index
    %c0_181 = arith.constant 0 : index
    %571 = vector.load %arg20[%c8_180, %c0_181] : memref<16x32xf32, #tpu.memory_space<vmem>>, vector<8x32xf32>
    tpu.vector_store %arg20[%c8_180, %c0_181], %570 {strides = array<i32>} : memref<16x32xf32, #tpu.memory_space<vmem>>, vector<8x32xf32>,
    %c0_182 = arith.constant 0 : index
    %c0_183 = arith.constant 0 : index
    %572 = vector.load %arg20[%c0_182, %c0_183] : memref<16x32xf32, #tpu.memory_space<vmem>>, vector<16x32xf32>
    %c1_184 = arith.constant 1 : index
    %c0_185 = arith.constant 0 : index
    %c0_186 = arith.constant 0 : index
    %573 = vector.load %arg7[%c1_184, %c0_185, %c0_186] : memref<2x1x32xf32, #tpu.memory_space<vmem>>, vector<1x1x32xf32>
    %574 = vector.shape_cast %573 : vector<1x1x32xf32> to vector<1x32xf32>
    %575 = vector.broadcast %574 : vector<1x32xf32> to vector<16x32xf32>
    %576 = arith.addf %572, %575 : vector<16x32xf32>
    %577 = arith.addf %339, %576 : vector<16x32xf32>
    %c1_187 = arith.constant 1 : index
    %c0_188 = arith.constant 0 : index
    %c0_189 = arith.constant 0 : index
    %578 = vector.load %arg8[%c1_187, %c0_188, %c0_189] : memref<2x1x32xf32, #tpu.memory_space<vmem>>, vector<1x1x32xf32>
    %579 = vector.shape_cast %578 : vector<1x1x32xf32> to vector<1x32xf32>
    %c1_190 = arith.constant 1 : index
    %c0_191 = arith.constant 0 : index
    %c0_192 = arith.constant 0 : index
    %580 = vector.load %arg9[%c1_190, %c0_191, %c0_192] : memref<2x1x32xf32, #tpu.memory_space<vmem>>, vector<1x1x32xf32>
    %581 = vector.shape_cast %580 : vector<1x1x32xf32> to vector<1x32xf32>
    %cst_193 = arith.constant dense<0.000000e+00> : vector<16xf32>
    %582 = vector.multi_reduction <add>, %577, %cst_193 [1] : vector<16x32xf32> to vector<16xf32>
    %583 = vector.shape_cast %582 : vector<16xf32> to vector<16x1xf32>
    %cst_194 = arith.constant 3.200000e+01 : f32
    %584 = vector.broadcast %cst_194 : f32 to vector<16x1xf32>
    %585 = arith.divf %583, %584 : vector<16x1xf32>
    %586 = vector.broadcast %585 : vector<16x1xf32> to vector<16x32xf32>
    %587 = arith.subf %577, %586 : vector<16x32xf32>
    %588 = arith.mulf %587, %587 : vector<16x32xf32>
    %cst_195 = arith.constant dense<0.000000e+00> : vector<16xf32>
    %589 = vector.multi_reduction <add>, %588, %cst_195 [1] : vector<16x32xf32> to vector<16xf32>
    %590 = vector.shape_cast %589 : vector<16xf32> to vector<16x1xf32>
    %cst_196 = arith.constant 3.200000e+01 : f32
    %591 = vector.broadcast %cst_196 : f32 to vector<16x1xf32>
    %592 = arith.divf %590, %591 : vector<16x1xf32>
    %cst_197 = arith.constant 9.99999996E-13 : f32
    %593 = vector.broadcast %cst_197 : f32 to vector<16x1xf32>
    %594 = arith.addf %592, %593 : vector<16x1xf32>
    %595 = math.rsqrt %594 : vector<16x1xf32>
    %596 = vector.broadcast %595 : vector<16x1xf32> to vector<16x32xf32>
    %597 = arith.mulf %587, %596 : vector<16x32xf32>
    %598 = vector.broadcast %579 : vector<1x32xf32> to vector<16x32xf32>
    %599 = arith.mulf %597, %598 : vector<16x32xf32>
    %600 = vector.broadcast %581 : vector<1x32xf32> to vector<16x32xf32>
    %601 = arith.addf %599, %600 : vector<16x32xf32>
    %c1_198 = arith.constant 1 : index
    %c0_199 = arith.constant 0 : index
    %c0_200 = arith.constant 0 : index
    %602 = vector.load %arg10[%c1_198, %c0_199, %c0_200] : memref<2x32x64xbf16, #tpu.memory_space<vmem>>, vector<1x32x64xbf16>
    %603 = vector.shape_cast %602 : vector<1x32x64xbf16> to vector<32x64xbf16>
    %c1_201 = arith.constant 1 : index
    %c0_202 = arith.constant 0 : index
    %c0_203 = arith.constant 0 : index
    %604 = vector.load %arg11[%c1_201, %c0_202, %c0_203] : memref<2x1x64xf32, #tpu.memory_space<vmem>>, vector<1x1x64xf32>
    %605 = vector.shape_cast %604 : vector<1x1x64xf32> to vector<1x64xf32>
    %606 = arith.truncf %601 : vector<16x32xf32> to vector<16x32xbf16>
    %cst_204 = arith.constant dense<0.000000e+00> : vector<16x64xf32>
    %607 = tpu.matmul %606, %603, %cst_204 {dimension_numbers = #tpu.dot_dimension_numbers<[1], [0], [0], [1], [0, 0, 1, 1], [], []>} : vector<16x32xbf16>, vector<32x64xbf16>, vector<16x64xf32> -> vector<16x64xf32>
    %608 = vector.broadcast %605 : vector<1x64xf32> to vector<16x64xf32>
    %609 = arith.addf %607, %608 : vector<16x64xf32>
    %cst_205 = arith.constant 5.000000e-01 : f32
    %610 = vector.broadcast %cst_205 : f32 to vector<16x64xf32>
    %611 = arith.mulf %610, %609 : vector<16x64xf32>
    %cst_206 = arith.constant 4.471500e-02 : f32
    %612 = vector.broadcast %cst_206 : f32 to vector<16x64xf32>
    %613 = arith.mulf %612, %609 : vector<16x64xf32>
    %614 = arith.mulf %613, %609 : vector<16x64xf32>
    %615 = arith.mulf %614, %609 : vector<16x64xf32>
    %616 = arith.addf %609, %615 : vector<16x64xf32>
    %cst_207 = arith.constant 0.797884583 : f32
    %617 = vector.broadcast %cst_207 : f32 to vector<16x64xf32>
    %618 = arith.mulf %617, %616 : vector<16x64xf32>
    %619 = math.tanh %618 : vector<16x64xf32>
    %cst_208 = arith.constant 1.000000e+00 : f32
    %620 = vector.broadcast %cst_208 : f32 to vector<16x64xf32>
    %621 = arith.addf %620, %619 : vector<16x64xf32>
    %622 = arith.mulf %611, %621 : vector<16x64xf32>
    %c1_209 = arith.constant 1 : index
    %c0_210 = arith.constant 0 : index
    %c0_211 = arith.constant 0 : index
    %623 = vector.load %arg12[%c1_209, %c0_210, %c0_211] : memref<2x64x32xbf16, #tpu.memory_space<vmem>>, vector<1x64x32xbf16>
    %624 = vector.shape_cast %623 : vector<1x64x32xbf16> to vector<64x32xbf16>
    %c1_212 = arith.constant 1 : index
    %c0_213 = arith.constant 0 : index
    %c0_214 = arith.constant 0 : index
    %625 = vector.load %arg13[%c1_212, %c0_213, %c0_214] : memref<2x1x32xf32, #tpu.memory_space<vmem>>, vector<1x1x32xf32>
    %626 = vector.shape_cast %625 : vector<1x1x32xf32> to vector<1x32xf32>
    %627 = arith.truncf %622 : vector<16x64xf32> to vector<16x64xbf16>
    %cst_215 = arith.constant dense<0.000000e+00> : vector<16x32xf32>
    %628 = tpu.matmul %627, %624, %cst_215 {dimension_numbers = #tpu.dot_dimension_numbers<[1], [0], [0], [1], [0, 0, 1, 1], [], []>} : vector<16x64xbf16>, vector<64x32xbf16>, vector<16x32xf32> -> vector<16x32xf32>
    %629 = vector.broadcast %626 : vector<1x32xf32> to vector<16x32xf32>
    %630 = arith.addf %628, %629 : vector<16x32xf32>
    %631 = arith.addf %601, %630 : vector<16x32xf32>
    %c1_216 = arith.constant 1 : index
    %c0_217 = arith.constant 0 : index
    %c0_218 = arith.constant 0 : index
    %632 = vector.load %arg14[%c1_216, %c0_217, %c0_218] : memref<2x1x32xf32, #tpu.memory_space<vmem>>, vector<1x1x32xf32>
    %633 = vector.shape_cast %632 : vector<1x1x32xf32> to vector<1x32xf32>
    %c1_219 = arith.constant 1 : index
    %c0_220 = arith.constant 0 : index
    %c0_221 = arith.constant 0 : index
    %634 = vector.load %arg15[%c1_219, %c0_220, %c0_221] : memref<2x1x32xf32, #tpu.memory_space<vmem>>, vector<1x1x32xf32>
    %635 = vector.shape_cast %634 : vector<1x1x32xf32> to vector<1x32xf32>
    %cst_222 = arith.constant dense<0.000000e+00> : vector<16xf32>
    %636 = vector.multi_reduction <add>, %631, %cst_222 [1] : vector<16x32xf32> to vector<16xf32>
    %637 = vector.shape_cast %636 : vector<16xf32> to vector<16x1xf32>
    %cst_223 = arith.constant 3.200000e+01 : f32
    %638 = vector.broadcast %cst_223 : f32 to vector<16x1xf32>
    %639 = arith.divf %637, %638 : vector<16x1xf32>
    %640 = vector.broadcast %639 : vector<16x1xf32> to vector<16x32xf32>
    %641 = arith.subf %631, %640 : vector<16x32xf32>
    %642 = arith.mulf %641, %641 : vector<16x32xf32>
    %cst_224 = arith.constant dense<0.000000e+00> : vector<16xf32>
    %643 = vector.multi_reduction <add>, %642, %cst_224 [1] : vector<16x32xf32> to vector<16xf32>
    %644 = vector.shape_cast %643 : vector<16xf32> to vector<16x1xf32>
    %cst_225 = arith.constant 3.200000e+01 : f32
    %645 = vector.broadcast %cst_225 : f32 to vector<16x1xf32>
    %646 = arith.divf %644, %645 : vector<16x1xf32>
    %cst_226 = arith.constant 9.99999996E-13 : f32
    %647 = vector.broadcast %cst_226 : f32 to vector<16x1xf32>
    %648 = arith.addf %646, %647 : vector<16x1xf32>
    %649 = math.rsqrt %648 : vector<16x1xf32>
    %650 = vector.broadcast %649 : vector<16x1xf32> to vector<16x32xf32>
    %651 = arith.mulf %641, %650 : vector<16x32xf32>
    %652 = vector.broadcast %633 : vector<1x32xf32> to vector<16x32xf32>
    %653 = arith.mulf %651, %652 : vector<16x32xf32>
    %654 = vector.broadcast %635 : vector<1x32xf32> to vector<16x32xf32>
    %655 = arith.addf %653, %654 : vector<16x32xf32>
    %c0_227 = arith.constant 0 : index
    %c0_228 = arith.constant 0 : index
    %656 = vector.load %arg18[%c0_227, %c0_228] : memref<16x32xf32, #tpu.memory_space<vmem>>, vector<16x32xf32>
    tpu.vector_store %arg18[%c0_227, %c0_228], %655 {strides = array<i32>} : memref<16x32xf32, #tpu.memory_space<vmem>>, vector<16x32xf32>,
    %c0_229 = arith.constant 0 : index
    %c0_230 = arith.constant 0 : index
    %657 = vector.load %arg16[%c0_229, %c0_230] : memref<32x32xbf16, #tpu.memory_space<vmem>>, vector<32x32xbf16>
    %c0_231 = arith.constant 0 : index
    %c0_232 = arith.constant 0 : index
    %658 = vector.load %arg17[%c0_231, %c0_232] : memref<1x32xf32, #tpu.memory_space<vmem>>, vector<1x32xf32>
    %659 = arith.truncf %655 : vector<16x32xf32> to vector<16x32xbf16>
    %cst_233 = arith.constant dense<0.000000e+00> : vector<16x32xf32>
    %660 = tpu.matmul %659, %657, %cst_233 {dimension_numbers = #tpu.dot_dimension_numbers<[1], [0], [0], [1], [0, 0, 1, 1], [], []>} : vector<16x32xbf16>, vector<32x32xbf16>, vector<16x32xf32> -> vector<16x32xf32>
    %661 = vector.broadcast %658 : vector<1x32xf32> to vector<16x32xf32>
    %662 = arith.addf %660, %661 : vector<16x32xf32>
    %663 = math.tanh %662 : vector<16x32xf32>
    %664 = vector.extract_strided_slice %663 {offsets = [0, 0], sizes = [1, 32], strides = [1, 1]} : vector<16x32xf32> to vector<1x32xf32>
    %c0_234 = arith.constant 0 : index
    %c0_235 = arith.constant 0 : index
    %665 = vector.load %arg19[%c0_234, %c0_235] : memref<2x32xf32, #tpu.memory_space<vmem>>, vector<1x32xf32>
    tpu.vector_store %arg19[%c0_234, %c0_235], %664 {strides = array<i32>} : memref<2x32xf32, #tpu.memory_space<vmem>>, vector<1x32xf32>,
    %666 = vector.extract_strided_slice %663 {offsets = [8, 0], sizes = [1, 32], strides = [1, 1]} : vector<16x32xf32> to vector<1x32xf32>
    %c1_236 = arith.constant 1 : index
    %c0_237 = arith.constant 0 : index
    %667 = vector.load %arg19[%c1_236, %c0_237] : memref<2x32xf32, #tpu.memory_space<vmem>>, vector<1x32xf32>
    tpu.vector_store %arg19[%c1_236, %c0_237], %666 {strides = array<i32>} : memref<2x32xf32, #tpu.memory_space<vmem>>, vector<1x32xf32>,
    return
  }
}

</mosaic_0001>

<bundles_post_ra>
// kernel: bert_forward.1
= control target key start
LH: loop header
LB: loop body
LE: loop exit
PB: predicated region body
PF: predicated region fallthrough
CT: control target
= control target key end

     0   :  { %s5081_s0 = inlined_call_operand.vmem [shape: f32[16,32], index: 0, kind: input, shape index: {}]   ;;  %s5082_s1 = inlined_call_operand.vmem [shape: f32[2,8], index: 1, kind: input, shape index: {}]   ;;  %s5083_s2 = inlined_call_operand.vmem [shape: f32[1,32], index: 2, kind: input, shape index: {}]   ;;  %s5084_s3 = inlined_call_operand.vmem [shape: f32[1,32], index: 3, kind: input, shape index: {}]   ;;  %s5085_s4 = inlined_call_operand.vmem [shape: bf16[2,32,96], index: 4, kind: input, shape index: {}]   ;;  %s5086_s5 = inlined_call_operand.vmem [shape: f32[2,1,96], index: 5, kind: input, shape index: {}]   ;;  %s5087_s6 = inlined_call_operand.vmem [shape: bf16[2,32,32], index: 6, kind: input, shape index: {}]   ;;  %s5088_s7 = inlined_call_operand.vmem [shape: f32[2,1,32], index: 7, kind: input, shape index: {}]   ;;  %s5089_s8 = inlined_call_operand.vmem [shape: f32[2,1,32], index: 8, kind: input, shape index: {}]   ;;  %s5090_s9 = inlined_call_operand.vmem [shape: f32[2,1,32], index: 9, kind: input, shape index: {}]   ;;  %s5091_s10 = inlined_call_operand.vmem [shape: bf16[2,32,64], index: 10, kind: input, shape index: {}]   ;;  %s5092_s11 = inlined_call_operand.vmem [shape: f32[2,1,64], index: 11, kind: input, shape index: {}]   ;;  %s5093_s12 = inlined_call_operand.vmem [shape: bf16[2,64,32], index: 12, kind: input, shape index: {}]   ;;  %s5094_s13 = inlined_call_operand.vmem [shape: f32[2,1,32], index: 13, kind: input, shape index: {}]   ;;  %s5095_s14 = inlined_call_operand.vmem [shape: f32[2,1,32], index: 14, kind: input, shape index: {}]   ;;  %s5096_s15 = inlined_call_operand.vmem [shape: f32[2,1,32], index: 15, kind: input, shape index: {}]   ;;  %s5097_s16 = inlined_call_operand.vmem [shape: bf16[32,32], index: 16, kind: input, shape index: {}]   ;;  %s5098_s17 = inlined_call_operand.vmem [shape: f32[1,32], index: 17, kind: input, shape index: {}]   ;;  %s5099_s18 = inlined_call_operand.hbm [shape: f32[16,32], index: 18, kind: output, shape index: {0}]   ;;  %s5100_s19 = inlined_call_operand.hbm [shape: f32[2,32], index: 19, kind: output, shape index: {1}]  }
   0x1   :  { %5110 = sst [smem:[#allocation9_spill]] %s5081_s0 }
   0x2   :  { %5111 = sst [smem:[#allocation10_spill]] %s5082_s1 }
   0x3   :  { %5112 = sst [smem:[#allocation11_spill]] %s5083_s2 }
   0x4   :  { %5113 = sst [smem:[#allocation12_spill]] %s5084_s3 }
   0x5   :  { %25 = vsyncpa [#allocation4], 0  ;;  %s5114_s20 = sld [smem:[#allocation9_spill]]  ;;  %vm68_vm0 = vcmask 261120  }
   0xb   :  { %v64_v0 = vld [vmem:[%s5114_s20] sm:$0xff]  ;;  %v65_v1 = vld [vmem:[%s5114_s20 + $0x8] sm:$0xff] }
   0xc   :  { %v69_v2 = vsel %vm68_vm0, %v64_v0, 0.0  ;;  %v72_v3 = vsel %vm68_vm0, %v65_v1, 0.0 }
   0xd   :  { %70 = vadd.xlane.f32.xlu0 %v69_v2 }
  0x11   :  { %73 = vadd.xlane.f32.xlu0 %v72_v3 }
  0x12   :  { %26 = vsyncpa [#allocation6], 0  ;;  %v4121_v14 = vld [vmem:[%s5085_s4] sm:$0xff]   ;;  %v4283_v15 = vmov 0.0   ;;  %vm4284_vm1 = vmmov 0   ;;  %v4122_v16 = vld [vmem:[%s5085_s4 + $0x8] sm:$0xff]   ;;  %v237_v47 = vlaneseq }
  0x13   :  { %3704 = vmatprep.subr.bf16.mxu0 %v4283_v15  ;;  %3708 = vmatprep.mubr.msk.bf16.mxu0 %vm4284_vm1, %v4283_v15  ;;  %s5115_s26 = sld [smem:[#allocation11_spill]]  ;;  %s5116_s29 = sld [smem:[#allocation12_spill]]  ;;  %v3465_v34 = vld [vmem:[%s5086_s5] ss:$0 sm:$0xff]  ;;  %vm189_vm2 = vcmask 64512   ;;  %vm259_vm3 = vcmask 1043456  }
  0x14   :  { %3705 = vmatpush3.bf16.msra.mxu0 %v4121_v14  ;;  %3712 = vmatprep.subr.bf16.mxu1 %v4283_v15  ;;  %s4285_s20 = smov 88   ;;  %s4286_s21 = smov 96   ;;  %v4463_v48 = vshrl.u32 %v237_v47, 7  ;;  %vm1644_vm4 = vcmask 523264  }
  0x15   :  { %3706 = vmatprep.subr.bf16.mxu0 %v4283_v15  ;;  %3714 = vmatprep.mubr.msk.bf16.mxu1 %vm4284_vm1, %v4283_v15  ;;  %s4287_s1 = smov 120   ;;  %s5117_s23 = sld [smem:[#allocation10_spill]] }
  0x16   :  { %v239_v49 = vsub.s32 0, %v4463_v48  ;;  %s4288_s24 = smov 64   ;;  %s4289_s25 = smov 80  }
  0x17   :  { %s4290_s3 = smov 112   ;;  %s5104_s30 = smov 72  }
  0x18   :  { %3707 = vmatpush3.bf16.msra.mxu0 %v4122_v16  ;;  %s5106_s22 = smov 104   ;;  %s5108_s2 = smov 48  }
  0x19   :  { %3718 = vmatprep.subr.bf16.mxu0 %v4283_v15  ;;  %v3463_v25 = vld [vmem:[%s5115_s26] ss:$0 sm:$0xff]  ;;  %s4291_s26 = smov 56   ;;  %s5102_s28 = smov 40  }
  0x1a   :  { %v3464_v29 = vld [vmem:[%s5116_s29] ss:$0 sm:$0xff] }
  0x1b   :  { %v4469_v50 = vld [vmem:[%s5117_s23] sm:$0x3] }
  0x1c   :  { %v4472_v51 = vrot.slane %v4469_v50, %v239_v49 }
  0x9a   :  { %v71_v4 = vpop.xlane.xlu0 %70 }
  0x9b   :  { %v76_v5 = vmul.f32 0.03125, %v71_v4 }
  0x9d   :  { %v78_v6 = vsub.f32 %v64_v0, %v76_v5 }
  0x9e   :  { %v74_v7 = vpop.xlane.xlu0 %73 }
  0x9f   :  { %v77_v8 = vmul.f32 0.03125, %v74_v7  ;;  %v80_v9 = vmul.f32 %v78_v6, %v78_v6 }
  0xa1   :  { %v79_v10 = vsub.f32 %v65_v1, %v77_v8  ;;  %v82_v11 = vsel %vm68_vm0, %v80_v9, 0.0 }
  0xa2   :  { %83 = vadd.xlane.f32.xlu1 %v82_v11 }
  0xa3   :  { %v81_v12 = vmul.f32 %v79_v10, %v79_v10 }
  0xa5   :  { %v85_v13 = vsel %vm68_vm0, %v81_v12, 0.0 }
  0xa6   :  { %86 = vadd.xlane.f32.xlu1 %v85_v13 }
 0x12f   :  { %v84_v17 = vpop.xlane.xlu1 %83 }
 0x130   :  { %v88_v18 = vmul.f32 0.03125, %v84_v17 }
 0x132   :  { %v90_v19 = vadd.f32 1e-12, %v88_v18 }
 0x133   :  { %v87_v20 = vpop.xlane.xlu1 %86 }
 0x134   :  { %4139 = vrsqrt.f32 %v90_v19  ;;  %v89_v21 = vmul.f32 0.03125, %v87_v20 }
 0x136   :  { %v91_v22 = vadd.f32 1e-12, %v89_v21 }
 0x138   :  { %4141 = vrsqrt.f32 %v91_v22 }
 0x13e   :  { %v4140_v23 = vpop.eup %4139 }
 0x13f   :  { %v94_v24 = vmul.f32 %v4140_v23, %v78_v6 }
 0x141   :  { %v102_v28 = vmul.f32 %v3463_v25, %v94_v24 }
 0x142   :  { %v4142_v26 = vpop.eup %4141 }
 0x143   :  { %v95_v27 = vmul.f32 %v4142_v26, %v79_v10  ;;  %v4430_v31 = vadd.f32 %v3464_v29, %v102_v28  ;;  %v182_v28 = vld [vmem:[%s5087_s6 + $0x4] sm:$0xf] }
 0x145   :  { %v103_v30 = vmul.f32 %v3463_v25, %v95_v27 }
 0x147   :  { %v4432_v32 = vadd.f32 %v3464_v29, %v103_v30  ;;  %v4507_v29 = vsel %vm259_vm3, %v182_v28, 0 }
 0x149   :  { %v118_v33 = vpack.c.bf16 %v4432_v32, %v4430_v31 }
 0x14b   :  { %3709 = vmatmul.mubr.msk.bf16.vlgmr.msra.gmra.mrb[0].mxu0 %vm68_vm0, %v118_v33 }
 0x14c   :  { %3720 = vmatprep.mubr.msk.bf16.mxu0 %vm4284_vm1, %v4283_v15 }
 0x21e   :  { %v174_v35 = vpop.f32.mrb[0].mxu0 }
 0x21f   :  { %v175_v36 = vadd.f32 %v3465_v34, %v174_v35  ;;  %v3710_v37 = vpop.f32.mrb[1].mxu0 }
 0x220   :  { %v177_v38 = vpop.f32.mrb[2].mxu0 }
 0x221   :  { %v4442_v39 = vpack.c.bf16 %v175_v36, %v175_v36  ;;  %v4444_v40 = vadd.f32 %v3465_v34, %v177_v38  ;;  %v3711_v41 = vpop.f32.mrb[3].mxu0  ;;  %v181_v36 = vld [vmem:[%s5087_s6] sm:$0xf] }
 0x223   :  { %306 = vrot.lane.b32.xlu1 %v4442_v39, %s4285_s20  ;;  %187 = vrot.lane.b32.xlu0 %v4442_v39, %s4286_s21 }
 0x227   :  { %304 = vrot.lane.b32.xlu1 %v4442_v39, %s4287_s1 }
 0x295   :  { %v188_v42 = vpop.permute.xlu0 %187  ;;  %v307_v44 = vpop.permute.xlu1 %306 }
 0x296   :  { %v194_v43 = vsel %vm189_vm2, %v188_v42, 0  ;;  %v312_v45 = vsel %vm189_vm2, %v307_v44, 0  ;;  %v4515_v42 = vsel %vm259_vm3, %v181_v36, 0 }
 0x297   :  { %3713 = vmatpush3.bf16.xpose.msra.mxu1 %v194_v43 }
 0x298   :  { %3724 = vmatprep.subr.bf16.mxu1 %v4283_v15 }
 0x299   :  { %v305_v46 = vpop.permute.xlu1 %304 }
 0x29e   :  { %3715 = vmatmul.mubr.msk.bf16.vlgmr.msra.gmra.mrb[0].mxu1 %vm189_vm2, %v4442_v39 }
 0x29f   :  { %3725 = vmatpush3.bf16.xpose.msra.mxu1 %v312_v45  ;;  %3726 = vmatprep.mubr.msk.bf16.mxu1 %vm4284_vm1, %v4283_v15 }
 0x2a0   :  { %3736 = vmatprep.subr.bf16.mxu1 %v4283_v15 }
 0x2a6   :  { %3727 = vmatmul.mubr.msk.bf16.vlgmr.msra.gmra.mrb[4].mxu1 %vm189_vm2, %v305_v46 }
 0x2a7   :  { %3738 = vmatprep.mubr.msk.bf16.mxu1 %vm4284_vm1, %v4283_v15  ;;  %3737 = vmatpush3.bf16.msra.mxu1 %v4507_v29 }
 0x2a8   :  { %3742 = vmatprep.subr.bf16.mxu1 %v4283_v15 }
 0x371   :  { %v230_v52 = vpop.f32.mrb[0].mxu1 }
 0x372   :  { %v236_v53 = vmul.f32 0.35355338, %v230_v52  ;;  %v3716_v54 = vpop.f32.mrb[1].mxu1 }
 0x373   :  { %v233_v55 = vpop.f32.mrb[2].mxu1 }
 0x374   :  { %v3717_v56 = vpop.f32.mrb[3].mxu1  ;;  %v241_v57 = vadd.f32 %v4472_v51, %v236_v53 }
 0x376   :  { %v242_v58 = vsel %vm189_vm2, %v241_v57, -inf }
 0x377   :  { %243 = vmax.xlane.f32.xlu1 %v242_v58 }
 0x379   :  { %v348_v59 = vpop.f32.mrb[4].mxu1 }
 0x37a   :  { %v354_v60 = vmul.f32 0.35355338, %v348_v59  ;;  %v3728_v61 = vpop.f32.mrb[5].mxu1 }
 0x37b   :  { %v351_v62 = vpop.f32.mrb[6].mxu1 }
 0x37c   :  { %v3729_v63 = vpop.f32.mrb[7].mxu1  ;;  %v355_v0 = vadd.f32 %v354_v60, %v4472_v51 }
 0x37e   :  { %v356_v1 = vsel %vm189_vm2, %v355_v0, -inf }
 0x37f   :  { %357 = vmax.xlane.f32.xlu0 %v356_v1 }
 0x388   :  { %254 = vrot.lane.b32.xlu1 %v4442_v39, %s4288_s24 }
 0x38c   :  { %511 = vrot.lane.b32.xlu1 %v4442_v39, %s4289_s25 }
 0x390   :  { %509 = vrot.lane.b32.xlu1 %v4442_v39, %s4290_s3 }
 0x404   :  { %v244_v2 = vpop.xlane.xlu1 %243 }
 0x405   :  { %v245_v3 = vsub.f32 %v241_v57, %v244_v2 }
 0x407   :  { %v246_v4 = vmul.f32 1.442695, %v245_v3 }
 0x408   :  { %v255_v5 = vpop.permute.xlu1 %254 }
 0x409   :  { %4143 = vpow2.f32 %v246_v4  ;;  %v261_v6 = vsel %vm259_vm3, %v255_v5, 0 }
 0x40a   :  { %3719 = vmatpush3.bf16.msra.mxu0 %v261_v6  ;;  %v183_v6 = vld [vmem:[%s5087_s6 + $0x8] sm:$0xf] }
 0x40b   :  { %3730 = vmatprep.subr.bf16.mxu0 %v4283_v15 }
 0x40c   :  { %v358_v7 = vpop.xlane.xlu0 %357  ;;  %v512_v24 = vpop.permute.xlu1 %511 }
 0x40d   :  { %v359_v8 = vsub.f32 %v355_v0, %v358_v7  ;;  %v517_v26 = vsel %vm189_vm2, %v512_v24, 0  ;;  %v4548_v7 = vsel %vm259_vm3, %v183_v6, 0 }
 0x40f   :  { %v360_v9 = vmul.f32 1.442695, %v359_v8 }
 0x410   :  { %v510_v27 = vpop.permute.xlu1 %509 }
 0x411   :  { %4145 = vpow2.f32 %v360_v9 }
 0x413   :  { %v4144_v10 = vpop.eup %4143 }
 0x414   :  { %v248_v11 = vsel %vm189_vm2, %v4144_v10, 0.0 }
 0x415   :  { %249 = vadd.xlane.f32.xlu0 %v248_v11 }
 0x41b   :  { %v4146_v12 = vpop.eup %4145 }
 0x41c   :  { %v362_v13 = vsel %vm189_vm2, %v4146_v12, 0.0 }
 0x41d   :  { %363 = vadd.xlane.f32.xlu0 %v362_v13 }
 0x433   :  { %368 = vrot.lane.b32.xlu0 %v4442_v39, %s4291_s26 }
 0x4a2   :  { %v250_v14 = vpop.xlane.xlu0 %249 }
 0x4a3   :  { %4147 = vrcp.f32 %v250_v14 }
 0x4aa   :  { %v364_v16 = vpop.xlane.xlu0 %363 }
 0x4ab   :  { %4149 = vrcp.f32 %v364_v16 }
 0x4ad   :  { %v4148_v17 = vpop.eup %4147 }
 0x4ae   :  { %v252_v18 = vmul.f32 %v4148_v17, %v4144_v10  ;;  %v369_v19 = vpop.permute.xlu0 %368 }
 0x4af   :  { %v374_v21 = vsel %vm259_vm3, %v369_v19, 0 }
 0x4b0   :  { %v253_v20 = vpack.c.bf16 %v252_v18, %v252_v18 }
 0x4b2   :  { %3721 = vmatmul.mubr.msk.bf16.vlgmr.msra.gmra.mrb[4].mxu0 %vm189_vm2, %v253_v20 }
 0x4b3   :  { %3731 = vmatpush3.bf16.msra.mxu0 %v374_v21  ;;  %3732 = vmatprep.mubr.msk.bf16.mxu0 %vm4284_vm1, %v4283_v15  ;;  %v4561_v21 = vpack.c.bf16 %v4444_v40, %v4444_v40 }
 0x4b4   :  { %3748 = vmatprep.subr.bf16.mxu0 %v4283_v15 }
 0x4b5   :  { %v4150_v22 = vpop.eup %4149 }
 0x4b6   :  { %v366_v23 = vmul.f32 %v4150_v22, %v4146_v12 }
 0x4b8   :  { %v367_v25 = vpack.c.bf16 %v366_v23, %v366_v23 }
 0x4ba   :  { %3733 = vmatmul.mubr.msk.bf16.vlgmr.msra.gmra.mrb[8].mxu0 %vm189_vm2, %v367_v25 }
 0x4bb   :  { %3750 = vmatprep.mubr.msk.bf16.mxu0 %vm4284_vm1, %v4283_v15 }
 0x4bc   :  { %3749 = vmatpush3.bf16.xpose.msra.mxu0 %v517_v26 }
 0x4bd   :  { %3754 = vmatprep.subr.bf16.mxu0 %v4283_v15 }
 0x4c3   :  { %3751 = vmatmul.mubr.msk.bf16.vlgmr.msra.gmra.mrb[12].mxu0 %vm189_vm2, %v510_v27 }
 0x4c4   :  { %3756 = vmatprep.mubr.msk.bf16.mxu0 %vm4284_vm1, %v4283_v15 }
 0x585   :  { %v297_v30 = vpop.f32.mrb[4].mxu0 }
 0x586   :  { %v3722_v33 = vpop.f32.mrb[5].mxu0  ;;  %v303_v54 = vpack.c.bf16 %v297_v30, %v297_v30 }
 0x587   :  { %v300_v34 = vpop.f32.mrb[6].mxu0 }
 0x588   :  { %v3723_v35 = vpop.f32.mrb[7].mxu0  ;;  %v184_v34 = vld [vmem:[%s5087_s6 + $0xc] sm:$0xf] }
 0x58d   :  { %v410_v37 = vpop.f32.mrb[8].mxu0 }
 0x58e   :  { %v416_v38 = vpack.c.bf16 %v410_v37, %v410_v37  ;;  %v3734_v41 = vpop.f32.mrb[9].mxu0  ;;  %v4580_v37 = vsel %vm259_vm3, %v184_v34, 0 }
 0x58f   :  { %v413_v43 = vpop.f32.mrb[10].mxu0 }
 0x590   :  { %v3735_v44 = vpop.f32.mrb[11].mxu0  ;;  %3739 = vmatmul.mubr.msk.bf16.vlgmr.msra.gmra.mrb[8].mxu1 %vm189_vm2, %v416_v38  ;;  %v883_v38 = vsub.s32 1, %v4463_v48 }
 0x591   :  { %3743 = vmatpush3.bf16.msra.mxu1 %v4515_v42  ;;  %3744 = vmatprep.mubr.msk.bf16.mxu1 %vm4284_vm1, %v4283_v15 }
 0x592   :  { %3760 = vmatprep.subr.bf16.mxu1 %v4283_v15  ;;  %v4591_v41 = vrot.slane %v4469_v50, %v883_v38 }
 0x596   :  { %v553_v45 = vpop.f32.mrb[12].mxu0 }
 0x597   :  { %v559_v46 = vmul.f32 0.35355338, %v553_v45  ;;  %v3752_v47 = vpop.f32.mrb[13].mxu0 }
 0x598   :  { %v556_v49 = vpop.f32.mrb[14].mxu0 }
 0x599   :  { %v3753_v52 = vpop.f32.mrb[15].mxu0  ;;  %v560_v53 = vadd.f32 %v559_v46, %v4472_v51 }
 0x59b   :  { %v561_v55 = vsel %vm189_vm2, %v560_v53, -inf }
 0x59c   :  { %562 = vmax.xlane.f32.xlu1 %v561_v55  ;;  %3745 = vmatmul.mubr.msk.bf16.vlgmr.msra.gmra.mrb[8].mxu1 %vm189_vm2, %v303_v54 }
 0x59d   :  { %3762 = vmatprep.mubr.msk.bf16.mxu1 %vm4284_vm1, %v4283_v15  ;;  %3761 = vmatpush3.bf16.msra.mxu1 %v4548_v7 }
 0x59e   :  { %3772 = vmatprep.subr.bf16.mxu1 %v4283_v15 }
 0x5ad   :  { %671 = vrot.lane.b32.xlu1 %v4442_v39, %s5104_s30 }
 0x5b1   :  { %669 = vrot.lane.b32.xlu1 %v4442_v39, %s5106_s22 }
 0x629   :  { %v563_v56 = vpop.xlane.xlu1 %562 }
 0x62a   :  { %v564_v57 = vsub.f32 %v560_v53, %v563_v56 }
 0x62c   :  { %v565_v58 = vmul.f32 1.442695, %v564_v57 }
 0x62d   :  { %v672_v2 = vpop.permute.xlu1 %671 }
 0x62e   :  { %4151 = vpow2.f32 %v565_v58  ;;  %v677_v4 = vsel %vm189_vm2, %v672_v2, 0 }
 0x631   :  { %v670_v5 = vpop.permute.xlu1 %669 }
 0x638   :  { %v4152_v59 = vpop.eup %4151 }
 0x639   :  { %v567_v60 = vsel %vm189_vm2, %v4152_v59, 0.0 }
 0x63a   :  { %568 = vadd.xlane.f32.xlu0 %v567_v60 }
 0x650   :  { %573 = vrot.lane.b32.xlu0 %v4442_v39, %s5108_s2 }
 0x6c7   :  { %v569_v61 = vpop.xlane.xlu0 %568 }
 0x6c8   :  { %4153 = vrcp.f32 %v569_v61 }
 0x6cb   :  { %v574_v62 = vpop.permute.xlu0 %573 }
 0x6cc   :  { %v579_v63 = vsel %vm259_vm3, %v574_v62, 0 }
 0x6cd   :  { %3755 = vmatpush3.bf16.msra.mxu0 %v579_v63 }
 0x6ce   :  { %3766 = vmatprep.subr.bf16.mxu0 %v4283_v15 }
 0x6d2   :  { %v4154_v0 = vpop.eup %4153 }
 0x6d3   :  { %v571_v1 = vmul.f32 %v4154_v0, %v4152_v59 }
 0x6d5   :  { %v572_v3 = vpack.c.bf16 %v571_v1, %v571_v1 }
 0x6d7   :  { %3757 = vmatmul.mubr.msk.bf16.vlgmr.msra.gmra.mrb[16].mxu0 %vm189_vm2, %v572_v3 }
 0x6d8   :  { %3767 = vmatpush3.bf16.xpose.msra.mxu0 %v677_v4  ;;  %3768 = vmatprep.mubr.msk.bf16.mxu0 %vm4284_vm1, %v4283_v15 }
 0x6d9   :  { %3784 = vmatprep.subr.bf16.mxu0 %v4283_v15 }
 0x6df   :  { %3769 = vmatmul.mubr.msk.bf16.vlgmr.msra.gmra.mrb[20].mxu0 %vm189_vm2, %v670_v5 }
 0x6e0   :  { %3786 = vmatprep.mubr.msk.bf16.mxu0 %vm4284_vm1, %v4283_v15 }
 0x7aa   :  { %v615_v8 = vpop.f32.mrb[16].mxu0 }
 0x7ab   :  { %v621_v9 = vpack.c.bf16 %v615_v8, %v615_v8  ;;  %v3758_v10 = vpop.f32.mrb[17].mxu0 }
 0x7ac   :  { %v618_v11 = vpop.f32.mrb[18].mxu0 }
 0x7ad   :  { %v3759_v12 = vpop.f32.mrb[19].mxu0  ;;  %3763 = vmatmul.mubr.msk.bf16.vlgmr.msra.gmra.mrb[8].mxu1 %vm189_vm2, %v621_v9 }
 0x7ae   :  { %3774 = vmatprep.mubr.msk.bf16.mxu1 %vm4284_vm1, %v4283_v15 }
 0x7b2   :  { %v713_v13 = vpop.f32.mrb[20].mxu0 }
 0x7b3   :  { %v719_v14 = vmul.f32 0.35355338, %v713_v13  ;;  %v3770_v16 = vpop.f32.mrb[21].mxu0 }
 0x7b4   :  { %v716_v17 = vpop.f32.mrb[22].mxu0 }
 0x7b5   :  { %v3771_v18 = vpop.f32.mrb[23].mxu0  ;;  %v720_v19 = vadd.f32 %v719_v14, %v4472_v51 }
 0x7b7   :  { %v721_v20 = vsel %vm189_vm2, %v720_v19, -inf }
 0x7b8   :  { %722 = vmax.xlane.f32.xlu0 %v721_v20 }
 0x7ce   :  { %733 = vrot.lane.b32.xlu0 %v4442_v39, %s5102_s28 }
 0x7d2   :  { %949 = vrot.lane.b32.xlu0 %v4561_v21, %s4285_s20 }
 0x845   :  { %v723_v22 = vpop.xlane.xlu0 %722 }
 0x846   :  { %v724_v23 = vsub.f32 %v720_v19, %v723_v22 }
 0x848   :  { %v725_v24 = vmul.f32 1.442695, %v724_v23 }
 0x849   :  { %v734_v25 = vpop.permute.xlu0 %733 }
 0x84a   :  { %4155 = vpow2.f32 %v725_v24  ;;  %v739_v26 = vsel %vm259_vm3, %v734_v25, 0 }
 0x84b   :  { %3773 = vmatpush3.bf16.msra.mxu1 %v739_v26 }
 0x84c   :  { %3778 = vmatprep.subr.bf16.mxu1 %v4283_v15 }
 0x84d   :  { %v950_v46 = vpop.permute.xlu0 %949 }
 0x84e   :  { %v955_v58 = vsel %vm189_vm2, %v950_v46, 0 }
 0x854   :  { %v4156_v27 = vpop.eup %4155 }
 0x855   :  { %v727_v39 = vsel %vm189_vm2, %v4156_v27, 0.0 }
 0x856   :  { %728 = vadd.xlane.f32.xlu1 %v727_v39 }
 0x867   :  { %832 = vrot.lane.b32.xlu1 %v4561_v21, %s4286_s21 }
 0x86b   :  { %947 = vrot.lane.b32.xlu1 %v4561_v21, %s4287_s1 }
 0x8e3   :  { %v729_v40 = vpop.xlane.xlu1 %728 }
 0x8e4   :  { %4157 = vrcp.f32 %v729_v40 }
 0x8e7   :  { %v833_v28 = vpop.permute.xlu1 %832 }
 0x8e8   :  { %v838_v30 = vsel %vm189_vm2, %v833_v28, 0 }
 0x8e9   :  { %3785 = vmatpush3.bf16.xpose.msra.mxu0 %v838_v30 }
 0x8ea   :  { %3790 = vmatprep.subr.bf16.mxu0 %v4283_v15 }
 0x8eb   :  { %v948_v50 = vpop.permute.xlu1 %947 }
 0x8ee   :  { %v4158_v33 = vpop.eup %4157 }
 0x8ef   :  { %v731_v35 = vmul.f32 %v4158_v33, %v4156_v27 }
 0x8f0   :  { %3787 = vmatmul.mubr.msk.bf16.vlgmr.msra.gmra.mrb[24].mxu0 %vm189_vm2, %v4561_v21 }
 0x8f1   :  { %v732_v36 = vpack.c.bf16 %v731_v35, %v731_v35  ;;  %3792 = vmatprep.mubr.msk.bf16.mxu0 %vm4284_vm1, %v4283_v15 }
 0x8f3   :  { %3775 = vmatmul.mubr.msk.bf16.vlgmr.msra.gmra.mrb[12].mxu1 %vm189_vm2, %v732_v36 }
 0x8f4   :  { %3779 = vmatpush3.bf16.msra.mxu1 %v4580_v37  ;;  %3780 = vmatprep.mubr.msk.bf16.mxu1 %vm4284_vm1, %v4283_v15 }
 0x8f5   :  { %3796 = vmatprep.subr.bf16.mxu1 %v4283_v15 }
 0x9c3   :  { %v874_v43 = vpop.f32.mrb[24].mxu0 }
 0x9c4   :  { %v880_v44 = vmul.f32 0.35355338, %v874_v43  ;;  %v3788_v45 = vpop.f32.mrb[25].mxu0 }
 0x9c5   :  { %v877_v47 = vpop.f32.mrb[26].mxu0 }
 0x9c6   :  { %v775_v49 = vpop.f32.mrb[12].mxu1  ;;  %v3789_v52 = vpop.f32.mrb[27].mxu0  ;;  %v885_v53 = vadd.f32 %v4591_v41, %v880_v44 }
 0x9c7   :  { %v781_v54 = vpack.c.bf16 %v775_v49, %v775_v49  ;;  %v3776_v55 = vpop.f32.mrb[13].mxu1 }
 0x9c8   :  { %v778_v56 = vpop.f32.mrb[14].mxu1  ;;  %v886_v57 = vsel %vm189_vm2, %v885_v53, -inf }
 0x9c9   :  { %v3777_v48 = vpop.f32.mrb[15].mxu1  ;;  %3781 = vmatmul.mubr.msk.bf16.vlgmr.msra.gmra.mrb[8].mxu1 %vm189_vm2, %v781_v54  ;;  %887 = vmax.xlane.f32.xlu0 %v886_v57 }
 0x9ca   :  { %3797 = vmatpush3.bf16.xpose.msra.mxu1 %v955_v58  ;;  %3798 = vmatprep.mubr.msk.bf16.mxu1 %vm4284_vm1, %v4283_v15 }
 0x9cb   :  { %3808 = vmatprep.subr.bf16.mxu1 %v4283_v15 }
 0x9d1   :  { %3799 = vmatmul.mubr.msk.bf16.vlgmr.msra.gmra.mrb[16].mxu1 %vm189_vm2, %v948_v50 }
 0x9d2   :  { %3809 = vmatpush3.bf16.msra.mxu1 %v4507_v29  ;;  %3810 = vmatprep.mubr.msk.bf16.mxu1 %vm4284_vm1, %v4283_v15 }
 0x9d3   :  { %3814 = vmatprep.subr.bf16.mxu1 %v4283_v15 }
 0xa56   :  { %v888_v59 = vpop.xlane.xlu0 %887 }
 0xa57   :  { %v889_v60 = vsub.f32 %v885_v53, %v888_v59 }
 0xa59   :  { %v890_v61 = vmul.f32 1.442695, %v889_v60 }
 0xa5b   :  { %4159 = vpow2.f32 %v890_v61 }
 0xa65   :  { %v4160_v62 = vpop.eup %4159 }
 0xa66   :  { %v892_v63 = vsel %vm189_vm2, %v4160_v62, 0.0 }
 0xa67   :  { %893 = vadd.xlane.f32.xlu0 %v892_v63 }
 0xa9c   :  { %v822_v0 = vpop.f32.mrb[8].mxu1 }
 0xa9d   :  { %829 = vst.msk [vmem:[#allocation2] sm:$0xff] %vm68_vm0, %v822_v0  ;;  %v3782_v1 = vpop.f32.mrb[9].mxu1 }
 0xa9e   :  { %v825_v2 = vpop.f32.mrb[10].mxu1 }
 0xa9f   :  { %v3783_v3 = vpop.f32.mrb[11].mxu1 }
 0xaa4   :  { %v991_v29 = vpop.f32.mrb[16].mxu1 }
 0xaa5   :  { %v997_v4 = vmul.f32 0.35355338, %v991_v29  ;;  %v3800_v5 = vpop.f32.mrb[17].mxu1 }
 0xaa6   :  { %v994_v6 = vpop.f32.mrb[18].mxu1 }
 0xaa7   :  { %v3801_v8 = vpop.f32.mrb[19].mxu1  ;;  %v998_v9 = vadd.f32 %v997_v4, %v4591_v41 }
 0xaa9   :  { %v999_v10 = vsel %vm189_vm2, %v998_v9, -inf }
 0xaaa   :  { %1000 = vmax.xlane.f32.xlu1 %v999_v10  ;;  %v1461_v10 = vld [vmem:[#allocation2] sm:$0xff] }
 0xabb   :  { %1011 = vrot.lane.b32.xlu1 %v4561_v21, %s4291_s26 }
 0xabf   :  { %1148 = vrot.lane.b32.xlu1 %v4561_v21, %s4289_s25 }
 0xac3   :  { %1146 = vrot.lane.b32.xlu1 %v4561_v21, %s4290_s3 }
 0xaf4   :  { %v894_v17 = vpop.xlane.xlu0 %893 }
 0xb37   :  { %v1001_v11 = vpop.xlane.xlu1 %1000 }
 0xb38   :  { %v1002_v12 = vsub.f32 %v998_v9, %v1001_v11  ;;  %v3493_v11 = vld [vmem:[%s5088_s7] ss:$0 sm:$0xff] }
 0xb3a   :  { %v1003_v13 = vmul.f32 1.442695, %v1002_v12 }
 0xb3b   :  { %v1012_v24 = vpop.permute.xlu1 %1011 }
 0xb3c   :  { %4161 = vpow2.f32 %v1003_v13  ;;  %v1017_v26 = vsel %vm259_vm3, %v1012_v24, 0 }
 0xb3d   :  { %4163 = vrcp.f32 %v894_v17 }
 0xb3f   :  { %v1149_v28 = vpop.permute.xlu1 %1148 }
 0xb40   :  { %v1154_v30 = vsel %vm189_vm2, %v1149_v28, 0 }
 0xb43   :  { %v1147_v33 = vpop.permute.xlu1 %1146 }
 0xb46   :  { %v4162_v14 = vpop.eup %4161 }
 0xb47   :  { %v1005_v16 = vsel %vm189_vm2, %v4162_v14, 0.0  ;;  %v4164_v18 = vpop.eup %4163 }
 0xb48   :  { %1006 = vadd.xlane.f32.xlu0 %v1005_v16  ;;  %v896_v20 = vmul.f32 %v4164_v18, %v4160_v62  ;;  %v1470_v16 = vadd.f32 %v3493_v11, %v1461_v10 }
 0xb4a   :  { %v897_v25 = vpack.c.bf16 %v896_v20, %v896_v20 }
 0xb5e   :  { %898 = vrot.lane.b32.xlu0 %v4561_v21, %s4288_s24 }
 0xbd5   :  { %v1007_v19 = vpop.xlane.xlu0 %1006 }
 0xbd6   :  { %4165 = vrcp.f32 %v1007_v19 }
 0xbd9   :  { %v899_v22 = vpop.permute.xlu0 %898 }
 0xbda   :  { %v904_v23 = vsel %vm259_vm3, %v899_v22, 0  ;;  %v1472_v22 = vadd.f32 %v1470_v16, %v4430_v31  ;;  %v4126_v16 = vld [vmem:[%s5093_s12 + $0x8] sm:$0xff]  }
 0xbdb   :  { %3791 = vmatpush3.bf16.msra.mxu0 %v904_v23 }
 0xbdc   :  { %3802 = vmatprep.subr.bf16.mxu0 %v4283_v15  ;;  %v1476_v23 = vsel %vm68_vm0, %v1472_v22, 0.0 }
 0xbde   :  { %3793 = vmatmul.mubr.msk.bf16.vlgmr.msra.gmra.mrb[28].mxu0 %vm189_vm2, %v897_v25 }
 0xbdf   :  { %3803 = vmatpush3.bf16.msra.mxu0 %v1017_v26  ;;  %3804 = vmatprep.mubr.msk.bf16.mxu0 %vm4284_vm1, %v4283_v15 }
 0xbe0   :  { %v4166_v27 = vpop.eup %4165  ;;  %3820 = vmatprep.subr.bf16.mxu0 %v4283_v15 }
 0xbe1   :  { %v1009_v39 = vmul.f32 %v4166_v27, %v4162_v14 }
 0xbe3   :  { %v1010_v40 = vpack.c.bf16 %v1009_v39, %v1009_v39 }
 0xbe6   :  { %3805 = vmatmul.mubr.msk.bf16.vlgmr.msra.gmra.mrb[32].mxu0 %vm189_vm2, %v1010_v40 }
 0xbe7   :  { %3822 = vmatprep.mubr.msk.bf16.mxu0 %vm4284_vm1, %v4283_v15 }
 0xbe8   :  { %3821 = vmatpush3.bf16.xpose.msra.mxu0 %v1154_v30 }
 0xbe9   :  { %3826 = vmatprep.subr.bf16.mxu0 %v4283_v15 }
 0xbef   :  { %3823 = vmatmul.mubr.msk.bf16.vlgmr.msra.gmra.mrb[36].mxu0 %vm189_vm2, %v1147_v33 }
 0xbf0   :  { %3828 = vmatprep.mubr.msk.bf16.mxu0 %vm4284_vm1, %v4283_v15 }
 0xcb1   :  { %v940_v34 = vpop.f32.mrb[28].mxu0 }
 0xcb2   :  { %v3794_v35 = vpop.f32.mrb[29].mxu0  ;;  %v946_v57 = vpack.c.bf16 %v940_v34, %v940_v34 }
 0xcb3   :  { %v943_v36 = vpop.f32.mrb[30].mxu0 }
 0xcb4   :  { %v3795_v38 = vpop.f32.mrb[31].mxu0 }
 0xcb9   :  { %v1053_v43 = vpop.f32.mrb[32].mxu0 }
 0xcba   :  { %v1059_v44 = vpack.c.bf16 %v1053_v43, %v1053_v43  ;;  %v3806_v45 = vpop.f32.mrb[33].mxu0 }
 0xcbb   :  { %v1056_v46 = vpop.f32.mrb[34].mxu0 }
 0xcbc   :  { %v3807_v47 = vpop.f32.mrb[35].mxu0  ;;  %3811 = vmatmul.mubr.msk.bf16.vlgmr.msra.gmra.mrb[20].mxu1 %vm189_vm2, %v1059_v44 }
 0xcbd   :  { %3815 = vmatpush3.bf16.msra.mxu1 %v4515_v42  ;;  %3816 = vmatprep.mubr.msk.bf16.mxu1 %vm4284_vm1, %v4283_v15 }
 0xcbe   :  { %3832 = vmatprep.subr.bf16.mxu1 %v4283_v15 }
 0xcc2   :  { %v1190_v49 = vpop.f32.mrb[36].mxu0 }
 0xcc3   :  { %v1196_v52 = vmul.f32 0.35355338, %v1190_v49  ;;  %v3824_v53 = vpop.f32.mrb[37].mxu0 }
 0xcc4   :  { %v1193_v54 = vpop.f32.mrb[38].mxu0 }
 0xcc5   :  { %v3825_v55 = vpop.f32.mrb[39].mxu0  ;;  %v1197_v56 = vadd.f32 %v1196_v52, %v4591_v41 }
 0xcc7   :  { %v1198_v58 = vsel %vm189_vm2, %v1197_v56, -inf }
 0xcc8   :  { %3817 = vmatmul.mubr.msk.bf16.vlgmr.msra.gmra.mrb[20].mxu1 %vm189_vm2, %v946_v57  ;;  %1199 = vmax.xlane.f32.xlu0 %v1198_v58 }
 0xcc9   :  { %3833 = vmatpush3.bf16.msra.mxu1 %v4548_v7  ;;  %3834 = vmatprep.mubr.msk.bf16.mxu1 %vm4284_vm1, %v4283_v15 }
 0xcca   :  { %3844 = vmatprep.subr.bf16.mxu1 %v4283_v15 }
 0xcde   :  { %1210 = vrot.lane.b32.xlu0 %v4561_v21, %s5108_s2 }
 0xce2   :  { %1303 = vrot.lane.b32.xlu0 %v4561_v21, %s5106_s22 }
 0xd55   :  { %v1200_v42 = vpop.xlane.xlu0 %1199 }
 0xd56   :  { %v1201_v48 = vsub.f32 %v1197_v56, %v1200_v42 }
 0xd58   :  { %v1202_v50 = vmul.f32 1.442695, %v1201_v48 }
 0xd59   :  { %v1211_v59 = vpop.permute.xlu0 %1210 }
 0xd5a   :  { %4167 = vpow2.f32 %v1202_v50  ;;  %v1216_v60 = vsel %vm259_vm3, %v1211_v59, 0 }
 0xd5b   :  { %3827 = vmatpush3.bf16.msra.mxu0 %v1216_v60 }
 0xd5c   :  { %3838 = vmatprep.subr.bf16.mxu0 %v4283_v15 }
 0xd5d   :  { %v1304_v29 = vpop.permute.xlu0 %1303 }
 0xd64   :  { %v4168_v7 = vpop.eup %4167 }
 0xd65   :  { %v1204_v61 = vsel %vm189_vm2, %v4168_v7, 0.0 }
 0xd66   :  { %1205 = vadd.xlane.f32.xlu1 %v1204_v61 }
 0xd77   :  { %1305 = vrot.lane.b32.xlu1 %v4561_v21, %s5104_s30  ;;  %s5118_s30 = smov 48  }
 0xdf3   :  { %v1206_v62 = vpop.xlane.xlu1 %1205 }
 0xdf4   :  { %4169 = vrcp.f32 %v1206_v62 }
 0xdf7   :  { %v1306_v1 = vpop.permute.xlu1 %1305 }
 0xdf8   :  { %v1311_v3 = vsel %vm189_vm2, %v1306_v1, 0 }
 0xdfe   :  { %v4170_v63 = vpop.eup %4169 }
 0xdff   :  { %v1208_v0 = vmul.f32 %v4170_v63, %v4168_v7  ;;  %v4123_v7 = vld [vmem:[%s5091_s10] sm:$0xff]  }
 0xe01   :  { %v1209_v2 = vpack.c.bf16 %v1208_v0, %v1208_v0 }
 0xe03   :  { %3829 = vmatmul.mubr.msk.bf16.vlgmr.msra.gmra.mrb[40].mxu0 %vm189_vm2, %v1209_v2 }
 0xe04   :  { %3839 = vmatpush3.bf16.xpose.msra.mxu0 %v1311_v3  ;;  %3840 = vmatprep.mubr.msk.bf16.mxu0 %vm4284_vm1, %v4283_v15 }
 0xe05   :  { %3856 = vmatprep.subr.bf16.mxu0 %v4283_v15 }
 0xe0b   :  { %3841 = vmatmul.mubr.msk.bf16.vlgmr.msra.gmra.mrb[44].mxu0 %vm189_vm2, %v1304_v29 }
 0xe0c   :  { %3860 = vmatprep.mubr.msk.bf16.mxu0 %vm4284_vm1, %v4283_v15  ;;  %3857 = vmatpush3.bf16.msra.mxu0 %v4123_v7 }
 0xe0d   :  { %3858 = vmatprep.subr.bf16.mxu0 %v4283_v15 }
 0xed6   :  { %v1252_v4 = vpop.f32.mrb[40].mxu0 }
 0xed7   :  { %v1258_v5 = vpack.c.bf16 %v1252_v4, %v1252_v4  ;;  %v3830_v6 = vpop.f32.mrb[41].mxu0  ;;  %v3494_v4 = vld [vmem:[%s5089_s8] ss:$0 sm:$0xff] }
 0xed8   :  { %v1255_v8 = vpop.f32.mrb[42].mxu0 }
 0xed9   :  { %v3831_v9 = vpop.f32.mrb[43].mxu0  ;;  %3835 = vmatmul.mubr.msk.bf16.vlgmr.msra.gmra.mrb[20].mxu1 %vm189_vm2, %v1258_v5 }
 0xeda   :  { %3846 = vmatprep.mubr.msk.bf16.mxu1 %vm4284_vm1, %v4283_v15  ;;  %v3495_v9 = vld [vmem:[%s5090_s9] ss:$0 sm:$0xff] }
 0xede   :  { %v1347_v12 = vpop.f32.mrb[44].mxu0 }
 0xedf   :  { %v1353_v13 = vmul.f32 0.35355338, %v1347_v12  ;;  %v3842_v14 = vpop.f32.mrb[45].mxu0 }
 0xee0   :  { %v1350_v17 = vpop.f32.mrb[46].mxu0  ;;  %v4125_v14 = vld [vmem:[%s5093_s12] sm:$0xff]  }
 0xee1   :  { %v3843_v18 = vpop.f32.mrb[47].mxu0  ;;  %v1354_v19 = vadd.f32 %v1353_v13, %v4591_v41  ;;  %v4127_v17 = vld [vmem:[%s5093_s12 + $0x10] sm:$0xff]  }
 0xee2   :  { %v4128_v18 = vld [vmem:[%s5093_s12 + $0x18] sm:$0xff]  }
 0xee3   :  { %v1355_v20 = vsel %vm189_vm2, %v1354_v19, -inf }
 0xee4   :  { %1356 = vmax.xlane.f32.xlu1 %v1355_v20 }
 0xee8   :  { %1477 = vadd.xlane.f32.xlu1 %v1476_v23 }
 0xf71   :  { %v1357_v24 = vpop.xlane.xlu1 %1356 }
 0xf72   :  { %v1358_v25 = vsub.f32 %v1354_v19, %v1357_v24  ;;  %v3496_v19 = vld [vmem:[%s5092_s11] ss:$0 sm:$0xff] }
 0xf74   :  { %v1359_v26 = vmul.f32 1.442695, %v1358_v25 }
 0xf76   :  { %4171 = vpow2.f32 %v1359_v26 }
 0xf80   :  { %v4172_v27 = vpop.eup %4171 }
 0xf81   :  { %v1361_v39 = vsel %vm189_vm2, %v4172_v27, 0.0 }
 0xf82   :  { %1362 = vadd.xlane.f32.xlu0 %v1361_v39 }
 0xf98   :  { %1367 = vrot.lane.b32.xlu0 %v4561_v21, %s5102_s28  ;;  %s5119_s28 = smov 104  }
0x100f   :  { %v1363_v40 = vpop.xlane.xlu0 %1362 }
0x1010   :  { %4173 = vrcp.f32 %v1363_v40 }
0x1013   :  { %v1368_v28 = vpop.permute.xlu0 %1367 }
0x1014   :  { %v1373_v31 = vsel %vm259_vm3, %v1368_v28, 0 }
0x1015   :  { %3845 = vmatpush3.bf16.msra.mxu1 %v1373_v31 }
0x1016   :  { %3850 = vmatprep.subr.bf16.mxu1 %v4283_v15 }
0x101a   :  { %v4174_v30 = vpop.eup %4173 }
0x101b   :  { %v1365_v33 = vmul.f32 %v4174_v30, %v4172_v27 }
0x101d   :  { %v1366_v34 = vpack.c.bf16 %v1365_v33, %v1365_v33 }
0x101f   :  { %3847 = vmatmul.mubr.msk.bf16.vlgmr.msra.gmra.mrb[24].mxu1 %vm189_vm2, %v1366_v34 }
0x1020   :  { %3851 = vmatpush3.bf16.msra.mxu1 %v4580_v37  ;;  %3852 = vmatprep.mubr.msk.bf16.mxu1 %vm4284_vm1, %v4283_v15  ;;  %v1478_v37 = vpop.xlane.xlu1 %1477 }
0x1021   :  { %3876 = vmatprep.subr.bf16.mxu1 %v4283_v15  ;;  %v1482_v49 = vmul.f32 0.03125, %v1478_v37 }
0x1023   :  { %v1484_v53 = vsub.f32 %v1472_v22, %v1482_v49 }
0x1025   :  { %v1486_v57 = vmul.f32 %v1484_v53, %v1484_v53 }
0x1027   :  { %v1488_v58 = vsel %vm68_vm0, %v1486_v57, 0.0 }
0x10f2   :  { %v1409_v21 = vpop.f32.mrb[24].mxu1 }
0x10f3   :  { %v1415_v35 = vpack.c.bf16 %v1409_v21, %v1409_v21  ;;  %v3848_v36 = vpop.f32.mrb[25].mxu1 }
0x10f4   :  { %v1412_v38 = vpop.f32.mrb[26].mxu1 }
0x10f5   :  { %v3849_v43 = vpop.f32.mrb[27].mxu1  ;;  %3853 = vmatmul.mubr.msk.bf16.vlgmr.msra.gmra.mrb[20].mxu1 %vm189_vm2, %v1415_v35 }
0x10f6   :  { %3880 = vmatprep.mubr.msk.bf16.mxu1 %vm4284_vm1, %v4283_v15 }
0x11c8   :  { %v1453_v44 = vpop.f32.mrb[20].mxu1 }
0x11c9   :  { %1460 = vst.msk [vmem:[#allocation2 + $0x8] sm:$0xff] %vm68_vm0, %v1453_v44  ;;  %v3854_v45 = vpop.f32.mrb[21].mxu1 }
0x11ca   :  { %v1456_v46 = vpop.f32.mrb[22].mxu1 }
0x11cb   :  { %v3855_v47 = vpop.f32.mrb[23].mxu1 }
0x11d0   :  { %v1462_v52 = vld [vmem:[#allocation2 + $0x8] sm:$0xff] }
0x11d1   :  { %v1471_v54 = vadd.f32 %v3493_v11, %v1462_v52  ;;  %v3500_v52 = vld [vmem:[%s5094_s13] ss:$0 sm:$0xff] }
0x11d3   :  { %v1473_v55 = vadd.f32 %v1471_v54, %v4432_v32  ;;  %v4124_v32 = vld [vmem:[%s5091_s10 + $0x8] sm:$0xff]  }
0x11d4   :  { %3859 = vmatpush3.bf16.msra.mxu0 %v4124_v32 }
0x11d5   :  { %v1479_v56 = vsel %vm68_vm0, %v1473_v55, 0.0  ;;  %3864 = vmatprep.subr.bf16.mxu0 %v4283_v15 }
0x11d6   :  { %1480 = vadd.xlane.f32.xlu1 %v1479_v56 }
0x11da   :  { %1489 = vadd.xlane.f32.xlu1 %v1488_v58 }
0x1263   :  { %v1481_v42 = vpop.xlane.xlu1 %1480 }
0x1264   :  { %v1483_v48 = vmul.f32 0.03125, %v1481_v42 }
0x1266   :  { %v1485_v50 = vsub.f32 %v1473_v55, %v1483_v48 }
0x1267   :  { %v1490_v61 = vpop.xlane.xlu1 %1489 }
0x1268   :  { %v1487_v59 = vmul.f32 %v1485_v50, %v1485_v50  ;;  %v1494_v62 = vmul.f32 0.03125, %v1490_v61 }
0x126a   :  { %v1491_v60 = vsel %vm68_vm0, %v1487_v59, 0.0  ;;  %v1496_v63 = vadd.f32 1e-12, %v1494_v62 }
0x126b   :  { %1492 = vadd.xlane.f32.xlu1 %v1491_v60 }
0x126c   :  { %4175 = vrsqrt.f32 %v1496_v63 }
0x1276   :  { %v4176_v3 = vpop.eup %4175 }
0x1277   :  { %v1500_v29 = vmul.f32 %v4176_v3, %v1484_v53 }
0x1279   :  { %v1508_v6 = vmul.f32 %v3494_v4, %v1500_v29  ;;  %v4129_v29 = vld [vmem:[%s5085_s4 + $0x10] sm:$0xff]  }
0x127a   :  { %3877 = vmatpush3.bf16.msra.mxu1 %v4129_v29 }
0x127b   :  { %v1516_v11 = vadd.f32 %v3495_v9, %v1508_v6  ;;  %3878 = vmatprep.subr.bf16.mxu1 %v4283_v15 }
0x12f8   :  { %v1493_v0 = vpop.xlane.xlu1 %1492 }
0x12f9   :  { %v1495_v1 = vmul.f32 0.03125, %v1493_v0 }
0x12fb   :  { %v1497_v2 = vadd.f32 1e-12, %v1495_v1 }
0x12fd   :  { %4177 = vrsqrt.f32 %v1497_v2 }
0x1307   :  { %v4178_v5 = vpop.eup %4177 }
0x1308   :  { %v1501_v8 = vmul.f32 %v4178_v5, %v1485_v50 }
0x130a   :  { %v1509_v10 = vmul.f32 %v3494_v4, %v1501_v8  ;;  %v4130_v4 = vld [vmem:[%s5085_s4 + $0x18] sm:$0xff]   ;;  %s5120_s4 = smov 72  }
0x130b   :  { %3879 = vmatpush3.bf16.msra.mxu1 %v4130_v4 }
0x130c   :  { %v1517_v12 = vadd.f32 %v3495_v9, %v1509_v10  ;;  %3884 = vmatprep.subr.bf16.mxu1 %v4283_v15 }
0x130e   :  { %v1523_v13 = vpack.c.bf16 %v1517_v12, %v1516_v11 }
0x1310   :  { %3861 = vmatmul.mubr.msk.bf16.vlgmr.msra.gmra.mrb[48].mxu0 %vm68_vm0, %v1523_v13 }
0x1311   :  { %3872 = vmatprep.mubr.msk.bf16.mxu0 %vm4284_vm1, %v4283_v15  ;;  %3865 = vmatpush3.bf16.msra.mxu0 %v4125_v14  ;;  %v3506_v14 = vld [vmem:[%s5095_s14] ss:$0 sm:$0xff] }
0x1312   :  { %3866 = vmatprep.subr.bf16.mxu0 %v4283_v15 }
0x1315   :  { %3867 = vmatpush3.bf16.msra.mxu0 %v4126_v16 }
0x1316   :  { %3868 = vmatprep.subr.bf16.mxu0 %v4283_v15 }
0x1319   :  { %3869 = vmatpush3.bf16.msra.mxu0 %v4127_v17 }
0x131a   :  { %3870 = vmatprep.subr.bf16.mxu0 %v4283_v15 }
0x131d   :  { %3871 = vmatpush3.bf16.msra.mxu0 %v4128_v18 }
0x131e   :  { %3890 = vmatprep.subr.bf16.mxu0 %v4283_v15 }
0x13e3   :  { %v1579_v20 = vpop.f32.mrb[48].mxu0 }
0x13e4   :  { %v1580_v22 = vadd.f32 %v3496_v19, %v1579_v20  ;;  %v3862_v23 = vpop.f32.mrb[49].mxu0 }
0x13e5   :  { %v1582_v24 = vpop.f32.mrb[50].mxu0 }
0x13e6   :  { %v1588_v25 = vmul.f32 0.044715, %v1580_v22  ;;  %v1583_v26 = vadd.f32 %v3496_v19, %v1582_v24  ;;  %v3863_v27 = vpop.f32.mrb[51].mxu0  ;;  %v1586_v44 = vmul.f32 0.5, %v1580_v22  ;;  %v3507_v19 = vld [vmem:[%s5096_s15] ss:$0 sm:$0xff] }
0x13e8   :  { %v1590_v39 = vmul.f32 %v1588_v25, %v1580_v22  ;;  %v1589_v40 = vmul.f32 0.044715, %v1583_v26  ;;  %v1587_v45 = vmul.f32 0.5, %v1583_v26  ;;  %v3513_v25 = vld [vmem:[%s5086_s5 + $0x1] ss:$0 sm:$0xff] }
0x13ea   :  { %v1592_v28 = vmul.f32 %v1590_v39, %v1580_v22  ;;  %v1591_v31 = vmul.f32 %v1589_v40, %v1583_v26 }
0x13ec   :  { %v1594_v30 = vadd.f32 %v1592_v28, %v1580_v22  ;;  %v1593_v33 = vmul.f32 %v1591_v31, %v1583_v26 }
0x13ee   :  { %v1596_v34 = vmul.f32 0.7978846, %v1594_v30  ;;  %v1595_v21 = vadd.f32 %v1593_v33, %v1583_v26 }
0x13f0   :  { %4179 = vtanh.f32 %v1596_v34  ;;  %v1597_v35 = vmul.f32 0.7978846, %v1595_v21 }
0x13f2   :  { %4181 = vtanh.f32 %v1597_v35 }
0x13fa   :  { %v4180_v36 = vpop.eup %4179 }
0x13fb   :  { %v1600_v38 = vadd.f32 1.0, %v4180_v36 }
0x13fc   :  { %v4182_v43 = vpop.eup %4181 }
0x13fd   :  { %v1601_v37 = vadd.f32 1.0, %v4182_v43  ;;  %v1602_v46 = vmul.f32 %v1600_v38, %v1586_v44 }
0x13ff   :  { %v1603_v47 = vmul.f32 %v1601_v37, %v1587_v45 }
0x1401   :  { %v1613_v49 = vpack.c.bf16 %v1603_v47, %v1602_v46 }
0x1403   :  { %3873 = vmatmul.mubr.msk.bf16.vlgmr.msra.gmra.mrb[52].mxu0 %vm1644_vm4, %v1613_v49 }
0x1404   :  { %3892 = vmatprep.mubr.msk.bf16.mxu0 %vm4284_vm1, %v4283_v15 }
0x14d6   :  { %v1682_v53 = vpop.f32.mrb[52].mxu0 }
0x14d7   :  { %v1683_v54 = vadd.f32 %v3500_v52, %v1682_v53  ;;  %v3874_v55 = vpop.f32.mrb[53].mxu0 }
0x14d8   :  { %v1685_v56 = vpop.f32.mrb[54].mxu0 }
0x14d9   :  { %v1686_v57 = vadd.f32 %v3500_v52, %v1685_v56  ;;  %v3875_v58 = vpop.f32.mrb[55].mxu0  ;;  %v1689_v42 = vadd.f32 %v1683_v54, %v1516_v11 }
0x14db   :  { %v1693_v48 = vsel %vm68_vm0, %v1689_v42, 0.0  ;;  %v1690_v50 = vadd.f32 %v1686_v57, %v1517_v12 }
0x14dc   :  { %1694 = vadd.xlane.f32.xlu1 %v1693_v48 }
0x14dd   :  { %v1696_v59 = vsel %vm68_vm0, %v1690_v50, 0.0 }
0x14de   :  { %1697 = vadd.xlane.f32.xlu0 %v1696_v59 }
0x1569   :  { %v1695_v60 = vpop.xlane.xlu1 %1694 }
0x156a   :  { %v1699_v7 = vmul.f32 0.03125, %v1695_v60 }
0x156b   :  { %v1698_v32 = vpop.xlane.xlu0 %1697 }
0x156c   :  { %v1701_v61 = vsub.f32 %v1689_v42, %v1699_v7  ;;  %v1700_v62 = vmul.f32 0.03125, %v1698_v32 }
0x156e   :  { %v1702_v63 = vsub.f32 %v1690_v50, %v1700_v62  ;;  %v1703_v0 = vmul.f32 %v1701_v61, %v1701_v61 }
0x1570   :  { %v1705_v1 = vsel %vm68_vm0, %v1703_v0, 0.0  ;;  %v1704_v2 = vmul.f32 %v1702_v63, %v1702_v63 }
0x1571   :  { %1706 = vadd.xlane.f32.xlu1 %v1705_v1 }
0x1572   :  { %v1708_v3 = vsel %vm68_vm0, %v1704_v2, 0.0 }
0x1575   :  { %1709 = vadd.xlane.f32.xlu1 %v1708_v3 }
0x15fe   :  { %v1707_v5 = vpop.xlane.xlu1 %1706 }
0x15ff   :  { %v1711_v6 = vmul.f32 0.03125, %v1707_v5 }
0x1601   :  { %v1713_v8 = vadd.f32 1e-12, %v1711_v6 }
0x1602   :  { %v1710_v9 = vpop.xlane.xlu1 %1709 }
0x1603   :  { %4183 = vrsqrt.f32 %v1713_v8  ;;  %v1712_v10 = vmul.f32 0.03125, %v1710_v9 }
0x1605   :  { %v1714_v11 = vadd.f32 1e-12, %v1712_v10 }
0x1607   :  { %4185 = vrsqrt.f32 %v1714_v11 }
0x160d   :  { %v4184_v12 = vpop.eup %4183 }
0x160e   :  { %v1717_v13 = vmul.f32 %v4184_v12, %v1701_v61 }
0x1610   :  { %v1725_v17 = vmul.f32 %v3506_v14, %v1717_v13 }
0x1611   :  { %v4186_v16 = vpop.eup %4185 }
0x1612   :  { %v1718_v18 = vmul.f32 %v4186_v16, %v1702_v63  ;;  %v4750_v22 = vadd.f32 %v3507_v19, %v1725_v17 }
0x1614   :  { %v1726_v20 = vmul.f32 %v3506_v14, %v1718_v18  ;;  %v3518_v14 = vld [vmem:[%s5087_s6 + $0x14] sm:$0xf] }
0x1615   :  { %v4816_v16 = vsel %vm259_vm3, %v3518_v14, 0 }
0x1616   :  { %v4752_v23 = vadd.f32 %v3507_v19, %v1726_v20 }
0x1618   :  { %v1742_v24 = vpack.c.bf16 %v4752_v23, %v4750_v22 }
0x161a   :  { %3881 = vmatmul.mubr.msk.bf16.vlgmr.msra.gmra.mrb[28].mxu1 %vm68_vm0, %v1742_v24  ;;  %v3517_v24 = vld [vmem:[%s5087_s6 + $0x10] sm:$0xf] }
0x161b   :  { %3886 = vmatprep.mubr.msk.bf16.mxu1 %vm4284_vm1, %v4283_v15 }
0x16ed   :  { %v1798_v26 = vpop.f32.mrb[28].mxu1 }
0x16ee   :  { %v1799_v27 = vadd.f32 %v3513_v25, %v1798_v26  ;;  %v3882_v39 = vpop.f32.mrb[29].mxu1 }
0x16ef   :  { %v1801_v40 = vpop.f32.mrb[30].mxu1  ;;  %v4824_v39 = vsel %vm259_vm3, %v3517_v24, 0 }
0x16f0   :  { %v4762_v28 = vpack.c.bf16 %v1799_v27, %v1799_v27  ;;  %v4764_v31 = vadd.f32 %v3513_v25, %v1801_v40  ;;  %v3883_v30 = vpop.f32.mrb[31].mxu1 }
0x16f2   :  { %1923 = vrot.lane.b32.xlu0 %v4762_v28, %s4287_s1  ;;  %1812 = vrot.lane.b32.xlu1 %v4762_v28, %s4286_s21 }
0x16f6   :  { %1925 = vrot.lane.b32.xlu1 %v4762_v28, %s4285_s20 }
0x1764   :  { %v1813_v33 = vpop.permute.xlu1 %1812  ;;  %v1924_v36 = vpop.permute.xlu0 %1923 }
0x1765   :  { %v1818_v34 = vsel %vm189_vm2, %v1813_v33, 0 }
0x1766   :  { %3885 = vmatpush3.bf16.xpose.msra.mxu1 %v1818_v34 }
0x1767   :  { %3896 = vmatprep.subr.bf16.mxu1 %v4283_v15 }
0x1768   :  { %v1926_v21 = vpop.permute.xlu1 %1925 }
0x1769   :  { %v1931_v35 = vsel %vm189_vm2, %v1926_v21, 0 }
0x176d   :  { %3887 = vmatmul.mubr.msk.bf16.vlgmr.msra.gmra.mrb[32].mxu1 %vm189_vm2, %v4762_v28 }
0x176e   :  { %3897 = vmatpush3.bf16.xpose.msra.mxu1 %v1931_v35  ;;  %3898 = vmatprep.mubr.msk.bf16.mxu1 %vm4284_vm1, %v4283_v15 }
0x176f   :  { %3908 = vmatprep.subr.bf16.mxu1 %v4283_v15 }
0x1775   :  { %3899 = vmatmul.mubr.msk.bf16.vlgmr.msra.gmra.mrb[36].mxu1 %vm189_vm2, %v1924_v36 }
0x1776   :  { %3910 = vmatprep.mubr.msk.bf16.mxu1 %vm4284_vm1, %v4283_v15  ;;  %3909 = vmatpush3.bf16.msra.mxu1 %v4816_v16 }
0x1777   :  { %3914 = vmatprep.subr.bf16.mxu1 %v4283_v15 }
0x1840   :  { %v1854_v38 = vpop.f32.mrb[32].mxu1 }
0x1841   :  { %v1860_v43 = vmul.f32 0.35355338, %v1854_v38  ;;  %v3888_v44 = vpop.f32.mrb[33].mxu1 }
0x1842   :  { %v1857_v45 = vpop.f32.mrb[34].mxu1 }
0x1843   :  { %v3889_v37 = vpop.f32.mrb[35].mxu1  ;;  %v1861_v46 = vadd.f32 %v1860_v43, %v4472_v51 }
0x1845   :  { %v1862_v47 = vsel %vm189_vm2, %v1861_v46, -inf }
0x1846   :  { %1863 = vmax.xlane.f32.xlu1 %v1862_v47 }
0x1848   :  { %v1967_v49 = vpop.f32.mrb[36].mxu1 }
0x1849   :  { %v1973_v52 = vmul.f32 0.35355338, %v1967_v49  ;;  %v3900_v53 = vpop.f32.mrb[37].mxu1 }
0x184a   :  { %v1970_v54 = vpop.f32.mrb[38].mxu1 }
0x184b   :  { %v3901_v55 = vpop.f32.mrb[39].mxu1  ;;  %v1974_v56 = vadd.f32 %v1973_v52, %v4472_v51 }
0x184d   :  { %v1975_v57 = vsel %vm189_vm2, %v1974_v56, -inf }
0x184e   :  { %1976 = vmax.xlane.f32.xlu0 %v1975_v57 }
0x1857   :  { %1874 = vrot.lane.b32.xlu1 %v4762_v28, %s4288_s24 }
0x1864   :  { %1987 = vrot.lane.b32.xlu0 %v4762_v28, %s4291_s26 }
0x18d3   :  { %v1864_v58 = vpop.xlane.xlu1 %1863 }
0x18d4   :  { %v1865_v42 = vsub.f32 %v1861_v46, %v1864_v58 }
0x18d6   :  { %v1866_v48 = vmul.f32 1.442695, %v1865_v42 }
0x18d7   :  { %v1875_v50 = vpop.permute.xlu1 %1874 }
0x18d8   :  { %4187 = vpow2.f32 %v1866_v48  ;;  %v1880_v59 = vsel %vm259_vm3, %v1875_v50, 0  ;;  %v3519_v50 = vld [vmem:[%s5087_s6 + $0x18] sm:$0xf] }
0x18d9   :  { %3891 = vmatpush3.bf16.msra.mxu0 %v1880_v59  ;;  %v4857_v59 = vsel %vm259_vm3, %v3519_v50, 0 }
0x18da   :  { %3902 = vmatprep.subr.bf16.mxu0 %v4283_v15 }
0x18db   :  { %v1977_v60 = vpop.xlane.xlu0 %1976 }
0x18dc   :  { %v1978_v7 = vsub.f32 %v1974_v56, %v1977_v60 }
0x18de   :  { %v1979_v32 = vmul.f32 1.442695, %v1978_v7 }
0x18df   :  { %v1988_v4 = vpop.permute.xlu0 %1987 }
0x18e0   :  { %4189 = vpow2.f32 %v1979_v32  ;;  %v1993_v6 = vsel %vm259_vm3, %v1988_v4, 0 }
0x18e2   :  { %v4188_v61 = vpop.eup %4187 }
0x18e3   :  { %v1868_v62 = vsel %vm189_vm2, %v4188_v61, 0.0 }
0x18e4   :  { %1869 = vadd.xlane.f32.xlu1 %v1868_v62 }
0x18ea   :  { %v4190_v63 = vpop.eup %4189 }
0x18eb   :  { %v1981_v0 = vsel %vm189_vm2, %v4190_v63, 0.0 }
0x18ec   :  { %1982 = vadd.xlane.f32.xlu1 %v1981_v0 }
0x18fd   :  { %2130 = vrot.lane.b32.xlu1 %v4762_v28, %s4289_s25 }
0x1901   :  { %2128 = vrot.lane.b32.xlu1 %v4762_v28, %s4290_s3 }
0x1971   :  { %v1870_v1 = vpop.xlane.xlu1 %1869 }
0x1972   :  { %4191 = vrcp.f32 %v1870_v1 }
0x1979   :  { %v1983_v2 = vpop.xlane.xlu1 %1982 }
0x197a   :  { %4193 = vrcp.f32 %v1983_v2 }
0x197c   :  { %v4192_v3 = vpop.eup %4191 }
0x197d   :  { %v1872_v29 = vmul.f32 %v4192_v3, %v4188_v61  ;;  %v2131_v10 = vpop.permute.xlu1 %2130 }
0x197e   :  { %v2136_v12 = vsel %vm189_vm2, %v2131_v10, 0 }
0x197f   :  { %v1873_v5 = vpack.c.bf16 %v1872_v29, %v1872_v29 }
0x1981   :  { %3893 = vmatmul.mubr.msk.bf16.vlgmr.msra.gmra.mrb[56].mxu0 %vm189_vm2, %v1873_v5  ;;  %v2129_v13 = vpop.permute.xlu1 %2128  ;;  %v4868_v5 = vpack.c.bf16 %v4764_v31, %v4764_v31 }
0x1982   :  { %3903 = vmatpush3.bf16.msra.mxu0 %v1993_v6  ;;  %3904 = vmatprep.mubr.msk.bf16.mxu0 %vm4284_vm1, %v4283_v15 }
0x1983   :  { %3920 = vmatprep.subr.bf16.mxu0 %v4283_v15 }
0x1984   :  { %v4194_v8 = vpop.eup %4193 }
0x1985   :  { %v1985_v9 = vmul.f32 %v4194_v8, %v4190_v63 }
0x1987   :  { %v1986_v11 = vpack.c.bf16 %v1985_v9, %v1985_v9 }
0x1989   :  { %3905 = vmatmul.mubr.msk.bf16.vlgmr.msra.gmra.mrb[60].mxu0 %vm189_vm2, %v1986_v11 }
0x198a   :  { %3922 = vmatprep.mubr.msk.bf16.mxu0 %vm4284_vm1, %v4283_v15 }
0x198b   :  { %3921 = vmatpush3.bf16.xpose.msra.mxu0 %v2136_v12 }
0x198c   :  { %3926 = vmatprep.subr.bf16.mxu0 %v4283_v15 }
0x1992   :  { %3923 = vmatmul.mubr.msk.bf16.vlgmr.msra.gmra.mrb[64].mxu0 %vm189_vm2, %v2129_v13 }
0x1993   :  { %3928 = vmatprep.mubr.msk.bf16.mxu0 %vm4284_vm1, %v4283_v15 }
0x1a54   :  { %v1916_v17 = vpop.f32.mrb[56].mxu0 }
0x1a55   :  { %v3894_v18 = vpop.f32.mrb[57].mxu0  ;;  %v1922_v43 = vpack.c.bf16 %v1916_v17, %v1916_v17 }
0x1a56   :  { %v1919_v19 = vpop.f32.mrb[58].mxu0 }
0x1a57   :  { %v3895_v20 = vpop.f32.mrb[59].mxu0 }
0x1a5c   :  { %v2029_v25 = vpop.f32.mrb[60].mxu0 }
0x1a5d   :  { %v2035_v26 = vpack.c.bf16 %v2029_v25, %v2029_v25  ;;  %v3906_v27 = vpop.f32.mrb[61].mxu0 }
0x1a5e   :  { %v2032_v40 = vpop.f32.mrb[62].mxu0 }
0x1a5f   :  { %v3907_v30 = vpop.f32.mrb[63].mxu0  ;;  %3911 = vmatmul.mubr.msk.bf16.vlgmr.msra.gmra.mrb[40].mxu1 %vm189_vm2, %v2035_v26 }
0x1a60   :  { %3915 = vmatpush3.bf16.msra.mxu1 %v4824_v39  ;;  %3916 = vmatprep.mubr.msk.bf16.mxu1 %vm4284_vm1, %v4283_v15  ;;  %v3520_v30 = vld [vmem:[%s5087_s6 + $0x1c] sm:$0xf] }
0x1a61   :  { %3932 = vmatprep.subr.bf16.mxu1 %v4283_v15 }
0x1a65   :  { %v2172_v33 = vpop.f32.mrb[64].mxu0 }
0x1a66   :  { %v2178_v34 = vmul.f32 0.35355338, %v2172_v33  ;;  %v3924_v21 = vpop.f32.mrb[65].mxu0  ;;  %v4898_v33 = vsel %vm259_vm3, %v3520_v30, 0 }
0x1a67   :  { %v2175_v35 = vpop.f32.mrb[66].mxu0 }
0x1a68   :  { %v3925_v36 = vpop.f32.mrb[67].mxu0  ;;  %v2179_v38 = vadd.f32 %v2178_v34, %v4472_v51 }
0x1a6a   :  { %v2180_v44 = vsel %vm189_vm2, %v2179_v38, -inf }
0x1a6b   :  { %2181 = vmax.xlane.f32.xlu1 %v2180_v44  ;;  %3917 = vmatmul.mubr.msk.bf16.vlgmr.msra.gmra.mrb[40].mxu1 %vm189_vm2, %v1922_v43 }
0x1a6c   :  { %3934 = vmatprep.mubr.msk.bf16.mxu1 %vm4284_vm1, %v4283_v15  ;;  %3933 = vmatpush3.bf16.msra.mxu1 %v4857_v59 }
0x1a6d   :  { %3944 = vmatprep.subr.bf16.mxu1 %v4283_v15 }
0x1a7c   :  { %2192 = vrot.lane.b32.xlu1 %v4762_v28, %s5118_s30 }
0x1a80   :  { %2288 = vrot.lane.b32.xlu1 %v4762_v28, %s5119_s28 }
0x1af8   :  { %v2182_v45 = vpop.xlane.xlu1 %2181 }
0x1af9   :  { %v2183_v37 = vsub.f32 %v2179_v38, %v2182_v45 }
0x1afb   :  { %v2184_v46 = vmul.f32 1.442695, %v2183_v37 }
0x1afc   :  { %v2193_v47 = vpop.permute.xlu1 %2192 }
0x1afd   :  { %4195 = vpow2.f32 %v2184_v46  ;;  %v2198_v49 = vsel %vm259_vm3, %v2193_v47, 0 }
0x1afe   :  { %3927 = vmatpush3.bf16.msra.mxu0 %v2198_v49 }
0x1aff   :  { %3938 = vmatprep.subr.bf16.mxu0 %v4283_v15 }
0x1b00   :  { %v2289_v48 = vpop.permute.xlu1 %2288 }
0x1b07   :  { %v4196_v52 = vpop.eup %4195 }
0x1b08   :  { %v2186_v53 = vsel %vm189_vm2, %v4196_v52, 0.0 }
0x1b09   :  { %2187 = vadd.xlane.f32.xlu0 %v2186_v53 }
0x1b1f   :  { %2290 = vrot.lane.b32.xlu0 %v4762_v28, %s5120_s4 }
0x1b96   :  { %v2188_v54 = vpop.xlane.xlu0 %2187 }
0x1b97   :  { %4197 = vrcp.f32 %v2188_v54 }
0x1b9a   :  { %v2291_v57 = vpop.permute.xlu0 %2290 }
0x1b9b   :  { %v2296_v42 = vsel %vm189_vm2, %v2291_v57, 0 }
0x1ba1   :  { %v4198_v55 = vpop.eup %4197 }
0x1ba2   :  { %v2190_v56 = vmul.f32 %v4198_v55, %v4196_v52 }
0x1ba4   :  { %v2191_v58 = vpack.c.bf16 %v2190_v56, %v2190_v56 }
0x1ba6   :  { %3929 = vmatmul.mubr.msk.bf16.vlgmr.msra.gmra.mrb[68].mxu0 %vm189_vm2, %v2191_v58 }
0x1ba7   :  { %3939 = vmatpush3.bf16.xpose.msra.mxu0 %v2296_v42  ;;  %3940 = vmatprep.mubr.msk.bf16.mxu0 %vm4284_vm1, %v4283_v15 }
0x1ba8   :  { %3956 = vmatprep.subr.bf16.mxu0 %v4283_v15 }
0x1bae   :  { %3941 = vmatmul.mubr.msk.bf16.vlgmr.msra.gmra.mrb[72].mxu0 %vm189_vm2, %v2289_v48 }
0x1baf   :  { %3958 = vmatprep.mubr.msk.bf16.mxu0 %vm4284_vm1, %v4283_v15 }
0x1c79   :  { %v2234_v60 = vpop.f32.mrb[68].mxu0 }
0x1c7a   :  { %v2240_v7 = vpack.c.bf16 %v2234_v60, %v2234_v60  ;;  %v3930_v32 = vpop.f32.mrb[69].mxu0 }
0x1c7b   :  { %v2237_v61 = vpop.f32.mrb[70].mxu0 }
0x1c7c   :  { %v3931_v62 = vpop.f32.mrb[71].mxu0  ;;  %3935 = vmatmul.mubr.msk.bf16.vlgmr.msra.gmra.mrb[40].mxu1 %vm189_vm2, %v2240_v7 }
0x1c7d   :  { %3946 = vmatprep.mubr.msk.bf16.mxu1 %vm4284_vm1, %v4283_v15 }
0x1c81   :  { %v2332_v63 = vpop.f32.mrb[72].mxu0 }
0x1c82   :  { %v2338_v0 = vmul.f32 0.35355338, %v2332_v63  ;;  %v3942_v1 = vpop.f32.mrb[73].mxu0 }
0x1c83   :  { %v2335_v2 = vpop.f32.mrb[74].mxu0 }
0x1c84   :  { %v3943_v3 = vpop.f32.mrb[75].mxu0  ;;  %v2339_v29 = vadd.f32 %v2338_v0, %v4472_v51 }
0x1c86   :  { %v2340_v4 = vsel %vm189_vm2, %v2339_v29, -inf }
0x1c87   :  { %2341 = vmax.xlane.f32.xlu1 %v2340_v4 }
0x1c98   :  { %2451 = vrot.lane.b32.xlu1 %v4868_v5, %s4286_s21 }
0x1c9c   :  { %2564 = vrot.lane.b32.xlu1 %v4868_v5, %s4285_s20  ;;  %s5121_s20 = smov 40  }
0x1d14   :  { %v2342_v6 = vpop.xlane.xlu1 %2341 }
0x1d15   :  { %v2343_v8 = vsub.f32 %v2339_v29, %v2342_v6 }
0x1d17   :  { %v2344_v9 = vmul.f32 1.442695, %v2343_v8 }
0x1d18   :  { %v2452_v10 = vpop.permute.xlu1 %2451 }
0x1d19   :  { %4199 = vpow2.f32 %v2344_v9  ;;  %v2457_v51 = vsel %vm189_vm2, %v2452_v10, 0 }
0x1d1a   :  { %3957 = vmatpush3.bf16.xpose.msra.mxu0 %v2457_v51 }
0x1d1b   :  { %3962 = vmatprep.subr.bf16.mxu0 %v4283_v15 }
0x1d1c   :  { %v2565_v34 = vpop.permute.xlu1 %2564 }
0x1d1d   :  { %v2570_v43 = vsel %vm189_vm2, %v2565_v34, 0 }
0x1d21   :  { %3959 = vmatmul.mubr.msk.bf16.vlgmr.msra.gmra.mrb[76].mxu0 %vm189_vm2, %v4868_v5 }
0x1d22   :  { %3964 = vmatprep.mubr.msk.bf16.mxu0 %vm4284_vm1, %v4283_v15 }
0x1d23   :  { %v4200_v31 = vpop.eup %4199 }
0x1d24   :  { %v2346_v11 = vsel %vm189_vm2, %v4200_v31, 0.0 }
0x1d25   :  { %2347 = vadd.xlane.f32.xlu0 %v2346_v11 }
0x1d3b   :  { %2352 = vrot.lane.b32.xlu0 %v4762_v28, %s5121_s20 }
0x1d3f   :  { %2562 = vrot.lane.b32.xlu0 %v4868_v5, %s4287_s1 }
0x1db2   :  { %v2348_v12 = vpop.xlane.xlu0 %2347 }
0x1db3   :  { %4201 = vrcp.f32 %v2348_v12 }
0x1db6   :  { %v2353_v13 = vpop.permute.xlu0 %2352 }
0x1db7   :  { %v2358_v14 = vsel %vm259_vm3, %v2353_v13, 0 }
0x1db8   :  { %3945 = vmatpush3.bf16.msra.mxu1 %v2358_v14 }
0x1db9   :  { %3950 = vmatprep.subr.bf16.mxu1 %v4283_v15 }
0x1dba   :  { %v2563_v45 = vpop.permute.xlu0 %2562 }
0x1dbd   :  { %v4202_v17 = vpop.eup %4201 }
0x1dbe   :  { %v2350_v18 = vmul.f32 %v4202_v17, %v4200_v31 }
0x1dc0   :  { %v2351_v19 = vpack.c.bf16 %v2350_v18, %v2350_v18 }
0x1dc2   :  { %3947 = vmatmul.mubr.msk.bf16.vlgmr.msra.gmra.mrb[44].mxu1 %vm189_vm2, %v2351_v19 }
0x1dc3   :  { %3952 = vmatprep.mubr.msk.bf16.mxu1 %vm4284_vm1, %v4283_v15  ;;  %3951 = vmatpush3.bf16.msra.mxu1 %v4898_v33 }
0x1dc4   :  { %3968 = vmatprep.subr.bf16.mxu1 %v4283_v15 }
0x1df4   :  { %v2493_v28 = vpop.f32.mrb[76].mxu0 }
0x1df5   :  { %v2499_v20 = vmul.f32 0.35355338, %v2493_v28  ;;  %v3960_v24 = vpop.f32.mrb[77].mxu0 }
0x1df6   :  { %v2496_v25 = vpop.f32.mrb[78].mxu0 }
0x1df7   :  { %v3961_v26 = vpop.f32.mrb[79].mxu0  ;;  %v2500_v27 = vadd.f32 %v2499_v20, %v4591_v41 }
0x1df9   :  { %v2501_v40 = vsel %vm189_vm2, %v2500_v27, -inf }
0x1dfa   :  { %2502 = vmax.xlane.f32.xlu1 %v2501_v40 }
0x1e0b   :  { %2626 = vrot.lane.b32.xlu1 %v4868_v5, %s4291_s26 }
0x1e87   :  { %v2503_v37 = vpop.xlane.xlu1 %2502 }
0x1e88   :  { %v2504_v46 = vsub.f32 %v2500_v27, %v2503_v37 }
0x1e8a   :  { %v2505_v47 = vmul.f32 1.442695, %v2504_v46 }
0x1e8b   :  { %v2627_v4 = vpop.permute.xlu1 %2626 }
0x1e8c   :  { %4203 = vpow2.f32 %v2505_v47  ;;  %v2632_v8 = vsel %vm259_vm3, %v2627_v4, 0 }
0x1e95   :  { %v2394_v21 = vpop.f32.mrb[44].mxu1 }
0x1e96   :  { %v2400_v35 = vpack.c.bf16 %v2394_v21, %v2394_v21  ;;  %v3948_v36 = vpop.f32.mrb[45].mxu1  ;;  %v4204_v50 = vpop.eup %4203 }
0x1e97   :  { %v2397_v38 = vpop.f32.mrb[46].mxu1  ;;  %v2507_v60 = vsel %vm189_vm2, %v4204_v50, 0.0 }
0x1e98   :  { %v3949_v44 = vpop.f32.mrb[47].mxu1  ;;  %3953 = vmatmul.mubr.msk.bf16.vlgmr.msra.gmra.mrb[40].mxu1 %vm189_vm2, %v2400_v35 }
0x1e99   :  { %3969 = vmatpush3.bf16.xpose.msra.mxu1 %v2570_v43  ;;  %3970 = vmatprep.mubr.msk.bf16.mxu1 %vm4284_vm1, %v4283_v15 }
0x1e9a   :  { %3980 = vmatprep.subr.bf16.mxu1 %v4283_v15 }
0x1ea0   :  { %3971 = vmatmul.mubr.msk.bf16.vlgmr.msra.gmra.mrb[48].mxu1 %vm189_vm2, %v2563_v45 }
0x1ea1   :  { %3981 = vmatpush3.bf16.msra.mxu1 %v4816_v16  ;;  %3982 = vmatprep.mubr.msk.bf16.mxu1 %vm4284_vm1, %v4283_v15 }
0x1ea2   :  { %3986 = vmatprep.subr.bf16.mxu1 %v4283_v15 }
0x1f6b   :  { %v2441_v49 = vpop.f32.mrb[40].mxu1 }
0x1f6c   :  { %2448 = vst.msk [vmem:[#allocation2] sm:$0xff] %vm68_vm0, %v2441_v49  ;;  %v3954_v52 = vpop.f32.mrb[41].mxu1 }
0x1f6d   :  { %v2444_v53 = vpop.f32.mrb[42].mxu1 }
0x1f6e   :  { %v3955_v54 = vpop.f32.mrb[43].mxu1 }
0x1f73   :  { %v2606_v55 = vpop.f32.mrb[48].mxu1  ;;  %v3076_v4 = vld [vmem:[#allocation2] sm:$0xff] }
0x1f74   :  { %v2612_v56 = vmul.f32 0.35355338, %v2606_v55  ;;  %v3972_v57 = vpop.f32.mrb[49].mxu1 }
0x1f75   :  { %v2609_v58 = vpop.f32.mrb[50].mxu1 }
0x1f76   :  { %v3973_v16 = vpop.f32.mrb[51].mxu1  ;;  %v2613_v42 = vadd.f32 %v2612_v56, %v4591_v41 }
0x1f78   :  { %v2614_v48 = vsel %vm189_vm2, %v2613_v42, -inf }
0x1f79   :  { %2615 = vmax.xlane.f32.xlu0 %v2614_v48 }
0x1f7d   :  { %2508 = vadd.xlane.f32.xlu0 %v2507_v60 }
0x1f93   :  { %2513 = vrot.lane.b32.xlu0 %v4868_v5, %s4288_s24 }
0x1f97   :  { %2761 = vrot.lane.b32.xlu0 %v4868_v5, %s4290_s3 }
0x2006   :  { %v2616_v7 = vpop.xlane.xlu0 %2615 }
0x2007   :  { %v2617_v32 = vsub.f32 %v2613_v42, %v2616_v7 }
0x2009   :  { %v2618_v61 = vmul.f32 1.442695, %v2617_v32 }
0x200a   :  { %v2509_v62 = vpop.xlane.xlu0 %2508 }
0x200b   :  { %4205 = vpow2.f32 %v2618_v61 }
0x200c   :  { %4207 = vrcp.f32 %v2509_v62 }
0x200e   :  { %v2514_v63 = vpop.permute.xlu0 %2513 }
0x200f   :  { %v2519_v0 = vsel %vm259_vm3, %v2514_v63, 0 }
0x2010   :  { %3963 = vmatpush3.bf16.msra.mxu0 %v2519_v0 }
0x2011   :  { %3974 = vmatprep.subr.bf16.mxu0 %v4283_v15 }
0x2012   :  { %v2762_v13 = vpop.permute.xlu0 %2761 }
0x2015   :  { %v4206_v1 = vpop.eup %4205 }
0x2016   :  { %v4208_v2 = vpop.eup %4207  ;;  %v2620_v3 = vsel %vm189_vm2, %v4206_v1, 0.0 }
0x2017   :  { %v2511_v29 = vmul.f32 %v4208_v2, %v4204_v50  ;;  %2621 = vadd.xlane.f32.xlu1 %v2620_v3 }
0x2019   :  { %v2512_v6 = vpack.c.bf16 %v2511_v29, %v2511_v29 }
0x201b   :  { %3965 = vmatmul.mubr.msk.bf16.vlgmr.msra.gmra.mrb[80].mxu0 %vm189_vm2, %v2512_v6 }
0x201c   :  { %3975 = vmatpush3.bf16.msra.mxu0 %v2632_v8  ;;  %3976 = vmatprep.mubr.msk.bf16.mxu0 %vm4284_vm1, %v4283_v15 }
0x201d   :  { %3992 = vmatprep.subr.bf16.mxu0 %v4283_v15 }
0x2028   :  { %2763 = vrot.lane.b32.xlu1 %v4868_v5, %s4289_s25 }
0x20a4   :  { %v2622_v9 = vpop.xlane.xlu1 %2621 }
0x20a5   :  { %4209 = vrcp.f32 %v2622_v9 }
0x20a8   :  { %v2764_v31 = vpop.permute.xlu1 %2763 }
0x20a9   :  { %v2769_v12 = vsel %vm189_vm2, %v2764_v31, 0 }
0x20af   :  { %v4210_v10 = vpop.eup %4209 }
0x20b0   :  { %v2624_v51 = vmul.f32 %v4210_v10, %v4206_v1 }
0x20b2   :  { %v2625_v11 = vpack.c.bf16 %v2624_v51, %v2624_v51 }
0x20b4   :  { %3977 = vmatmul.mubr.msk.bf16.vlgmr.msra.gmra.mrb[84].mxu0 %vm189_vm2, %v2625_v11 }
0x20b5   :  { %3993 = vmatpush3.bf16.xpose.msra.mxu0 %v2769_v12  ;;  %3994 = vmatprep.mubr.msk.bf16.mxu0 %vm4284_vm1, %v4283_v15 }
0x20b6   :  { %3998 = vmatprep.subr.bf16.mxu0 %v4283_v15 }
0x20bc   :  { %3995 = vmatmul.mubr.msk.bf16.vlgmr.msra.gmra.mrb[88].mxu0 %vm189_vm2, %v2762_v13 }
0x20bd   :  { %4000 = vmatprep.mubr.msk.bf16.mxu0 %vm4284_vm1, %v4283_v15 }
0x20ee   :  { %v2555_v14 = vpop.f32.mrb[80].mxu0 }
0x20ef   :  { %v3966_v17 = vpop.f32.mrb[81].mxu0  ;;  %v2561_v36 = vpack.c.bf16 %v2555_v14, %v2555_v14 }
0x20f0   :  { %v2558_v18 = vpop.f32.mrb[82].mxu0 }
0x20f1   :  { %v3967_v19 = vpop.f32.mrb[83].mxu0 }
0x2187   :  { %v2668_v28 = vpop.f32.mrb[84].mxu0 }
0x2188   :  { %v2674_v20 = vpack.c.bf16 %v2668_v28, %v2668_v28  ;;  %v3978_v24 = vpop.f32.mrb[85].mxu0 }
0x2189   :  { %v2671_v25 = vpop.f32.mrb[86].mxu0 }
0x218a   :  { %v3979_v26 = vpop.f32.mrb[87].mxu0  ;;  %3983 = vmatmul.mubr.msk.bf16.vlgmr.msra.gmra.mrb[52].mxu1 %vm189_vm2, %v2674_v20 }
0x218b   :  { %3987 = vmatpush3.bf16.msra.mxu1 %v4824_v39  ;;  %3988 = vmatprep.mubr.msk.bf16.mxu1 %vm4284_vm1, %v4283_v15 }
0x218c   :  { %4004 = vmatprep.subr.bf16.mxu1 %v4283_v15 }
0x218f   :  { %v2805_v27 = vpop.f32.mrb[88].mxu0 }
0x2190   :  { %v2811_v40 = vmul.f32 0.35355338, %v2805_v27  ;;  %v3996_v30 = vpop.f32.mrb[89].mxu0 }
0x2191   :  { %v2808_v34 = vpop.f32.mrb[90].mxu0 }
0x2192   :  { %v3997_v21 = vpop.f32.mrb[91].mxu0  ;;  %v2812_v35 = vadd.f32 %v2811_v40, %v4591_v41 }
0x2194   :  { %v2813_v38 = vsel %vm189_vm2, %v2812_v35, -inf }
0x2195   :  { %2814 = vmax.xlane.f32.xlu1 %v2813_v38 }
0x2196   :  { %3989 = vmatmul.mubr.msk.bf16.vlgmr.msra.gmra.mrb[52].mxu1 %vm189_vm2, %v2561_v36 }
0x2197   :  { %4005 = vmatpush3.bf16.msra.mxu1 %v4857_v59  ;;  %4006 = vmatprep.mubr.msk.bf16.mxu1 %vm4284_vm1, %v4283_v15 }
0x2198   :  { %4016 = vmatprep.subr.bf16.mxu1 %v4283_v15 }
0x21a6   :  { %2920 = vrot.lane.b32.xlu1 %v4868_v5, %s5120_s4 }
0x21aa   :  { %2918 = vrot.lane.b32.xlu1 %v4868_v5, %s5119_s28 }
0x2222   :  { %v2815_v39 = vpop.xlane.xlu1 %2814 }
0x2223   :  { %v2816_v43 = vsub.f32 %v2812_v35, %v2815_v39 }
0x2225   :  { %v2817_v44 = vmul.f32 1.442695, %v2816_v43 }
0x2226   :  { %v2921_v53 = vpop.permute.xlu1 %2920 }
0x2227   :  { %4211 = vpow2.f32 %v2817_v44  ;;  %v2926_v55 = vsel %vm189_vm2, %v2921_v53, 0 }
0x222a   :  { %v2919_v56 = vpop.permute.xlu1 %2918 }
0x2231   :  { %v4212_v45 = vpop.eup %4211 }
0x2232   :  { %v2819_v37 = vsel %vm189_vm2, %v4212_v45, 0.0 }
0x2233   :  { %2820 = vadd.xlane.f32.xlu0 %v2819_v37 }
0x2249   :  { %2825 = vrot.lane.b32.xlu0 %v4868_v5, %s5118_s30 }
0x22c0   :  { %v2821_v59 = vpop.xlane.xlu0 %2820 }
0x22c1   :  { %4213 = vrcp.f32 %v2821_v59 }
0x22c4   :  { %v2826_v46 = vpop.permute.xlu0 %2825 }
0x22c5   :  { %v2831_v47 = vsel %vm259_vm3, %v2826_v46, 0 }
0x22c6   :  { %3999 = vmatpush3.bf16.msra.mxu0 %v2831_v47 }
0x22c7   :  { %4010 = vmatprep.subr.bf16.mxu0 %v4283_v15 }
0x22cb   :  { %v4214_v49 = vpop.eup %4213 }
0x22cc   :  { %v2823_v52 = vmul.f32 %v4214_v49, %v4212_v45  ;;  %v4131_v45 = vld [vmem:[%s5091_s10 + $0x10] sm:$0xff]  }
0x22ce   :  { %v2824_v54 = vpack.c.bf16 %v2823_v52, %v2823_v52 }
0x22d0   :  { %4001 = vmatmul.mubr.msk.bf16.vlgmr.msra.gmra.mrb[92].mxu0 %vm189_vm2, %v2824_v54 }
0x22d1   :  { %4011 = vmatpush3.bf16.xpose.msra.mxu0 %v2926_v55  ;;  %4012 = vmatprep.mubr.msk.bf16.mxu0 %vm4284_vm1, %v4283_v15  ;;  %v3549_v55 = vld [vmem:[%s5089_s8 + $0x1] ss:$0 sm:$0xff] }
0x22d2   :  { %4028 = vmatprep.subr.bf16.mxu0 %v4283_v15 }
0x22d8   :  { %4013 = vmatmul.mubr.msk.bf16.vlgmr.msra.gmra.mrb[96].mxu0 %vm189_vm2, %v2919_v56 }
0x22d9   :  { %4032 = vmatprep.mubr.msk.bf16.mxu0 %vm4284_vm1, %v4283_v15  ;;  %4029 = vmatpush3.bf16.msra.mxu0 %v4131_v45 }
0x22da   :  { %4030 = vmatprep.subr.bf16.mxu0 %v4283_v15 }
0x23a3   :  { %v2867_v57 = vpop.f32.mrb[92].mxu0 }
0x23a4   :  { %v2873_v58 = vpack.c.bf16 %v2867_v57, %v2867_v57  ;;  %v4002_v16 = vpop.f32.mrb[93].mxu0 }
0x23a5   :  { %v2870_v42 = vpop.f32.mrb[94].mxu0  ;;  %v3550_v16 = vld [vmem:[%s5090_s9 + $0x1] ss:$0 sm:$0xff] }
0x23a6   :  { %v4003_v48 = vpop.f32.mrb[95].mxu0  ;;  %4007 = vmatmul.mubr.msk.bf16.vlgmr.msra.gmra.mrb[52].mxu1 %vm189_vm2, %v2873_v58 }
0x23a7   :  { %4018 = vmatprep.mubr.msk.bf16.mxu1 %vm4284_vm1, %v4283_v15 }
0x23ab   :  { %v2962_v50 = vpop.f32.mrb[96].mxu0 }
0x23ac   :  { %v2968_v60 = vmul.f32 0.35355338, %v2962_v50  ;;  %v4014_v7 = vpop.f32.mrb[97].mxu0 }
0x23ad   :  { %v2965_v32 = vpop.f32.mrb[98].mxu0  ;;  %v4133_v7 = vld [vmem:[%s5093_s12 + $0x20] sm:$0xff]  }
0x23ae   :  { %v4015_v61 = vpop.f32.mrb[99].mxu0  ;;  %v2969_v62 = vadd.f32 %v2968_v60, %v4591_v41  ;;  %v3546_v41 = vld [vmem:[%s5088_s7 + $0x1] ss:$0 sm:$0xff]  ;;  %v4134_v32 = vld [vmem:[%s5093_s12 + $0x28] sm:$0xff]  }
0x23af   :  { %v3086_v6 = vadd.f32 %v3546_v41, %v3076_v4  ;;  %v4135_v61 = vld [vmem:[%s5093_s12 + $0x30] sm:$0xff]  }
0x23b0   :  { %v2970_v63 = vsel %vm189_vm2, %v2969_v62, -inf }
0x23b1   :  { %2971 = vmax.xlane.f32.xlu0 %v2970_v63  ;;  %v3556_v63 = vld [vmem:[%s5092_s11 + $0x1] ss:$0 sm:$0xff] }
0x23c7   :  { %2982 = vrot.lane.b32.xlu0 %v4868_v5, %s5121_s20  ;;  %v3088_v5 = vadd.f32 %v3086_v6, %v4750_v22 }
0x23c9   :  { %v3094_v10 = vsel %vm68_vm0, %v3088_v5, 0.0 }
0x243e   :  { %v2972_v0 = vpop.xlane.xlu0 %2971 }
0x243f   :  { %v2973_v1 = vsub.f32 %v2969_v62, %v2972_v0  ;;  %v4136_v62 = vld [vmem:[%s5093_s12 + $0x38] sm:$0xff]  }
0x2441   :  { %v2974_v2 = vmul.f32 1.442695, %v2973_v1 }
0x2442   :  { %v2983_v3 = vpop.permute.xlu0 %2982 }
0x2443   :  { %4215 = vpow2.f32 %v2974_v2  ;;  %v2988_v29 = vsel %vm259_vm3, %v2983_v3, 0 }
0x2444   :  { %4017 = vmatpush3.bf16.msra.mxu1 %v2988_v29 }
0x2445   :  { %4022 = vmatprep.subr.bf16.mxu1 %v4283_v15 }
0x244d   :  { %v4216_v8 = vpop.eup %4215 }
0x244e   :  { %v2976_v9 = vsel %vm189_vm2, %v4216_v8, 0.0 }
0x244f   :  { %2977 = vadd.xlane.f32.xlu1 %v2976_v9 }
0x2453   :  { %3095 = vadd.xlane.f32.xlu1 %v3094_v10 }
0x24dc   :  { %v2978_v51 = vpop.xlane.xlu1 %2977 }
0x24dd   :  { %4217 = vrcp.f32 %v2978_v51 }
0x24e7   :  { %v4218_v31 = vpop.eup %4217 }
0x24e8   :  { %v2980_v11 = vmul.f32 %v4218_v31, %v4216_v8 }
0x24ea   :  { %v2981_v12 = vpack.c.bf16 %v2980_v11, %v2980_v11 }
0x24ec   :  { %4019 = vmatmul.mubr.msk.bf16.vlgmr.msra.gmra.mrb[56].mxu1 %vm189_vm2, %v2981_v12 }
0x24ed   :  { %4023 = vmatpush3.bf16.msra.mxu1 %v4898_v33  ;;  %4024 = vmatprep.mubr.msk.bf16.mxu1 %vm4284_vm1, %v4283_v15  ;;  %v3096_v33 = vpop.xlane.xlu1 %3095 }
0x24ee   :  { %4048 = vmatprep.subr.bf16.mxu1 %v4283_v15  ;;  %v3100_v25 = vmul.f32 0.03125, %v3096_v33 }
0x24f0   :  { %v3102_v27 = vsub.f32 %v3088_v5, %v3100_v25 }
0x24f2   :  { %v3104_v21 = vmul.f32 %v3102_v27, %v3102_v27 }
0x24f4   :  { %v3106_v35 = vsel %vm68_vm0, %v3104_v21, 0.0 }
0x25bf   :  { %v3024_v13 = vpop.f32.mrb[56].mxu1 }
0x25c0   :  { %v3030_v22 = vpack.c.bf16 %v3024_v13, %v3024_v13  ;;  %v4020_v14 = vpop.f32.mrb[57].mxu1 }
0x25c1   :  { %v3027_v17 = vpop.f32.mrb[58].mxu1 }
0x25c2   :  { %v4021_v18 = vpop.f32.mrb[59].mxu1  ;;  %4025 = vmatmul.mubr.msk.bf16.vlgmr.msra.gmra.mrb[52].mxu1 %vm189_vm2, %v3030_v22 }
0x25c3   :  { %4052 = vmatprep.mubr.msk.bf16.mxu1 %vm4284_vm1, %v4283_v15 }
0x2695   :  { %v3068_v19 = vpop.f32.mrb[52].mxu1 }
0x2696   :  { %3075 = vst.msk [vmem:[#allocation2 + $0x8] sm:$0xff] %vm68_vm0, %v3068_v19  ;;  %v4026_v28 = vpop.f32.mrb[53].mxu1 }
0x2697   :  { %v3071_v20 = vpop.f32.mrb[54].mxu1 }
0x2698   :  { %v4027_v24 = vpop.f32.mrb[55].mxu1 }
0x2699   :  { %v3569_v24 = vld [vmem:[%s5094_s13 + $0x1] ss:$0 sm:$0xff] }
0x269d   :  { %v3077_v26 = vld [vmem:[#allocation2 + $0x8] sm:$0xff] }
0x269e   :  { %v3087_v40 = vadd.f32 %v3546_v41, %v3077_v26 }
0x26a0   :  { %v3089_v30 = vadd.f32 %v3087_v40, %v4752_v23  ;;  %v4132_v23 = vld [vmem:[%s5091_s10 + $0x18] sm:$0xff]  }
0x26a1   :  { %4031 = vmatpush3.bf16.msra.mxu0 %v4132_v23 }
0x26a2   :  { %v3097_v34 = vsel %vm68_vm0, %v3089_v30, 0.0  ;;  %4036 = vmatprep.subr.bf16.mxu0 %v4283_v15 }
0x26a3   :  { %3098 = vadd.xlane.f32.xlu1 %v3097_v34 }
0x26a7   :  { %3107 = vadd.xlane.f32.xlu1 %v3106_v35 }
0x2730   :  { %v3099_v36 = vpop.xlane.xlu1 %3098 }
0x2731   :  { %v3101_v38 = vmul.f32 0.03125, %v3099_v36 }
0x2733   :  { %v3103_v39 = vsub.f32 %v3089_v30, %v3101_v38 }
0x2734   :  { %v3108_v37 = vpop.xlane.xlu1 %3107 }
0x2735   :  { %v3105_v43 = vmul.f32 %v3103_v39, %v3103_v39  ;;  %v3112_v59 = vmul.f32 0.03125, %v3108_v37 }
0x2737   :  { %v3109_v44 = vsel %vm68_vm0, %v3105_v43, 0.0  ;;  %v3114_v46 = vadd.f32 1e-12, %v3112_v59 }
0x2738   :  { %3110 = vadd.xlane.f32.xlu1 %v3109_v44 }
0x2739   :  { %4219 = vrsqrt.f32 %v3114_v46 }
0x2743   :  { %v4220_v53 = vpop.eup %4219 }
0x2744   :  { %v3118_v54 = vmul.f32 %v4220_v53, %v3102_v27  ;;  %v4138_v53 = vld [vmem:[%s5097_s16 + $0x8] sm:$0xff]  }
0x2746   :  { %v3126_v57 = vmul.f32 %v3549_v55, %v3118_v54 }
0x2748   :  { %v3134_v48 = vadd.f32 %v3550_v16, %v3126_v57 }
0x27c5   :  { %v3111_v47 = vpop.xlane.xlu1 %3110 }
0x27c6   :  { %v3113_v49 = vmul.f32 0.03125, %v3111_v47 }
0x27c8   :  { %v3115_v52 = vadd.f32 1e-12, %v3113_v49 }
0x27ca   :  { %4221 = vrsqrt.f32 %v3115_v52  ;;  %v4137_v52 = vld [vmem:[%s5097_s16] sm:$0xff]   ;;  %s4296_s16 = smov [#allocation3]  }
0x27cb   :  { %4049 = vmatpush3.bf16.msra.mxu1 %v4137_v52 }
0x27cc   :  { %4050 = vmatprep.subr.bf16.mxu1 %v4283_v15 }
0x27cf   :  { %4051 = vmatpush3.bf16.msra.mxu1 %v4138_v53 }
0x27d4   :  { %v4222_v56 = vpop.eup %4221 }
0x27d5   :  { %v3119_v58 = vmul.f32 %v4222_v56, %v3103_v39 }
0x27d7   :  { %v3127_v42 = vmul.f32 %v3549_v55, %v3119_v58 }
0x27d9   :  { %v3135_v50 = vadd.f32 %v3550_v16, %v3127_v42 }
0x27db   :  { %v3143_v60 = vpack.c.bf16 %v3135_v50, %v3134_v48 }
0x27dd   :  { %4033 = vmatmul.mubr.msk.bf16.vlgmr.msra.gmra.mrb[100].mxu0 %vm68_vm0, %v3143_v60  ;;  %v3578_v60 = vld [vmem:[%s5096_s15 + $0x1] ss:$0 sm:$0xff] }
0x27de   :  { %4044 = vmatprep.mubr.msk.bf16.mxu0 %vm4284_vm1, %v4283_v15  ;;  %4037 = vmatpush3.bf16.msra.mxu0 %v4133_v7 }
0x27df   :  { %4038 = vmatprep.subr.bf16.mxu0 %v4283_v15 }
0x27e2   :  { %4039 = vmatpush3.bf16.msra.mxu0 %v4134_v32 }
0x27e3   :  { %4040 = vmatprep.subr.bf16.mxu0 %v4283_v15 }
0x27e6   :  { %4041 = vmatpush3.bf16.msra.mxu0 %v4135_v61 }
0x27e7   :  { %4042 = vmatprep.subr.bf16.mxu0 %v4283_v15 }
0x27ea   :  { %4043 = vmatpush3.bf16.msra.mxu0 %v4136_v62 }
0x28b0   :  { %v3199_v0 = vpop.f32.mrb[100].mxu0 }
0x28b1   :  { %v3200_v1 = vadd.f32 %v3556_v63, %v3199_v0  ;;  %v4034_v2 = vpop.f32.mrb[101].mxu0 }
0x28b2   :  { %v3202_v3 = vpop.f32.mrb[102].mxu0 }
0x28b3   :  { %v3208_v29 = vmul.f32 0.044715, %v3200_v1  ;;  %v3203_v4 = vadd.f32 %v3556_v63, %v3202_v3  ;;  %v4035_v41 = vpop.f32.mrb[103].mxu0  ;;  %v3206_v17 = vmul.f32 0.5, %v3200_v1 }
0x28b5   :  { %v3210_v6 = vmul.f32 %v3208_v29, %v3200_v1  ;;  %v3209_v8 = vmul.f32 0.044715, %v3203_v4  ;;  %v3207_v18 = vmul.f32 0.5, %v3203_v4 }
0x28b7   :  { %v3212_v9 = vmul.f32 %v3210_v6, %v3200_v1  ;;  %v3211_v5 = vmul.f32 %v3209_v8, %v3203_v4 }
0x28b9   :  { %v3214_v10 = vadd.f32 %v3212_v9, %v3200_v1  ;;  %v3213_v51 = vmul.f32 %v3211_v5, %v3203_v4 }
0x28bb   :  { %v3216_v31 = vmul.f32 0.7978846, %v3214_v10  ;;  %v3215_v11 = vadd.f32 %v3213_v51, %v3203_v4 }
0x28bd   :  { %4223 = vtanh.f32 %v3216_v31  ;;  %v3217_v12 = vmul.f32 0.7978846, %v3215_v11 }
0x28bf   :  { %4225 = vtanh.f32 %v3217_v12 }
0x28c7   :  { %v4224_v13 = vpop.eup %4223 }
0x28c8   :  { %v3220_v22 = vadd.f32 1.0, %v4224_v13 }
0x28c9   :  { %v4226_v14 = vpop.eup %4225 }
0x28ca   :  { %v3221_v19 = vadd.f32 1.0, %v4226_v14  ;;  %v3222_v28 = vmul.f32 %v3220_v22, %v3206_v17 }
0x28cc   :  { %v3223_v33 = vmul.f32 %v3221_v19, %v3207_v18 }
0x28ce   :  { %v3235_v20 = vpack.c.bf16 %v3223_v33, %v3222_v28 }
0x28d0   :  { %4045 = vmatmul.mubr.msk.bf16.vlgmr.msra.gmra.mrb[104].mxu0 %vm1644_vm4, %v3235_v20 }
0x29a3   :  { %v3303_v25 = vpop.f32.mrb[104].mxu0 }
0x29a4   :  { %v3304_v26 = vadd.f32 %v3569_v24, %v3303_v25  ;;  %v4046_v27 = vpop.f32.mrb[105].mxu0 }
0x29a5   :  { %v3306_v40 = vpop.f32.mrb[106].mxu0 }
0x29a6   :  { %v3307_v30 = vadd.f32 %v3569_v24, %v3306_v40  ;;  %v4047_v34 = vpop.f32.mrb[107].mxu0  ;;  %v3310_v21 = vadd.f32 %v3304_v26, %v3134_v48  ;;  %v3577_v48 = vld [vmem:[%s5095_s14 + $0x1] ss:$0 sm:$0xff]  ;;  %s3438_s14 = sshll.u32 %s4296_s16, 4  ;;  %s3439_s14 = int_to_ptr.vmem [resolvable:$true] %s3438_s14 }
0x29a7   :  { %s4235_s26 = scalar_lea.vmem %s3439_s14, 256  ;;  %p4240_p1 = scmp.lt.s32.totalorder %s3439_s14, %s3439_s14 }
0x29a8   :  { %v3311_v35 = vadd.f32 %v3307_v30, %v3135_v50  ;;  %v3316_v36 = vsel %vm68_vm0, %v3310_v21, 0.0  ;;  %p4236_p0 = scmp.ne.s32.totalorder %s3439_s14, %s4235_s26  ;;  %p4241_p2 = scmp.lt.s32.totalorder %s4235_s26, %s4235_s26 }
0x29a9   :  { %3317 = vadd.xlane.f32.xlu0 %v3316_v36 }
0x29aa   :  { %v3319_v38 = vsel %vm68_vm0, %v3311_v35, 0.0  ;;  %p4242_p3 = por %p4241_p2, %p4240_p1 }
0x29ab   :  { %3320 = vadd.xlane.f32.xlu1 %v3319_v38 }
0x29ac   :  { %p4243_p4 = pnand %p4242_p3, %p4236_p0 }
0x2a36   :  { %v3318_v39 = vpop.xlane.xlu0 %3317 }
0x2a37   :  { %v3322_v43 = vmul.f32 0.03125, %v3318_v39 }
0x2a38   :  { %v3321_v44 = vpop.xlane.xlu1 %3320 }
0x2a39   :  { %v3324_v45 = vsub.f32 %v3310_v21, %v3322_v43  ;;  %v3323_v23 = vmul.f32 0.03125, %v3321_v44 }
0x2a3b   :  { %v3325_v37 = vsub.f32 %v3311_v35, %v3323_v23  ;;  %v3326_v59 = vmul.f32 %v3324_v45, %v3324_v45 }
0x2a3d   :  { %v3328_v46 = vsel %vm68_vm0, %v3326_v59, 0.0  ;;  %v3327_v47 = vmul.f32 %v3325_v37, %v3325_v37 }
0x2a3e   :  { %3329 = vadd.xlane.f32.xlu1 %v3328_v46 }
0x2a3f   :  { %v3331_v49 = vsel %vm68_vm0, %v3327_v47, 0.0 }
0x2a42   :  { %3332 = vadd.xlane.f32.xlu1 %v3331_v49 }
0x2acb   :  { %v3330_v54 = vpop.xlane.xlu1 %3329 }
0x2acc   :  { %v3334_v55 = vmul.f32 0.03125, %v3330_v54 }
0x2ace   :  { %v3336_v56 = vadd.f32 1e-12, %v3334_v55 }
0x2acf   :  { %v3333_v57 = vpop.xlane.xlu1 %3332 }
0x2ad0   :  { %4227 = vrsqrt.f32 %v3336_v56  ;;  %v3335_v58 = vmul.f32 0.03125, %v3333_v57 }
0x2ad2   :  { %v3337_v16 = vadd.f32 1e-12, %v3335_v58 }
0x2ad4   :  { %4229 = vrsqrt.f32 %v3337_v16 }
0x2ada   :  { %v4228_v42 = vpop.eup %4227 }
0x2adb   :  { %v3340_v50 = vmul.f32 %v4228_v42, %v3324_v45 }
0x2add   :  { %v3348_v15 = vmul.f32 %v3577_v48, %v3340_v50 }
0x2ade   :  { %v4230_v7 = vpop.eup %4229 }
0x2adf   :  { %v3341_v32 = vmul.f32 %v4230_v7, %v3325_v37  ;;  %v3356_v61 = vadd.f32 %v3578_v60, %v3348_v15 }
0x2ae1   :  { %v3349_v62 = vmul.f32 %v3577_v48, %v3341_v32  ;;  %3358 = vst.msk [vmem:[#allocation3] sm:$0xff] %vm68_vm0, %v3356_v61 }
0x2ae3   :  { %v3357_v63 = vadd.f32 %v3578_v60, %v3349_v62 }
0x2ae5   :  { %v3365_v0 = vpack.c.bf16 %v3357_v63, %v3356_v61  ;;  %3359 = vst.msk [vmem:[#allocation3 + $0x8] sm:$0xff] %vm68_vm0, %v3357_v63 }
0x2ae7   :  { %4053 = vmatmul.mubr.msk.bf16.vlgmr.msra.gmra.mrb[60].mxu1 %vm68_vm0, %v3365_v0 }
0x2ae8   :  { %4246 = shalt.err (!%p4243_p4)
}
0x2ae9   :  { %s4247_s5 = scalar_lea.hbm %s5099_s18, 256 }
0x2aea   :  { %p4248_p5 = scmp.ne.s32.totalorder %s5099_s18, %s4247_s5  ;;  %p4251_p6 = scmp.lt.u32.totalorder %s4247_s5, %s5099_s18 }
0x2aec   :  { %p4253_p7 = pnand %p4251_p6, %p4248_p5 }
0x2aee   :  { %4256 = shalt.err (!%p4253_p7)
}
0x2aef   :  { %s4297_s8 = smov 128   ;;  %s4298_s30 = smov 8   ;;  %v3579_v1 = vld [vmem:[%s5098_s17] ss:$0 sm:$0xff]  ;;  %vm3430_vm5 = vcmask 253952  }
0x2af0   :  { %3444 = dma.vmem_to_hbm [thread:$0]  %s3439_s14, 256, %s5099_s18, [#allocation4], %s4297_s8, %s4297_s8, %s4298_s30  }
0x2af1   :  { %s4299_s2 = smov [#allocation5]  }
0x2af2   :  { %s3451_s20 = sshll.u32 %s4299_s2, 4  ;;  %s3452_s20 = int_to_ptr.vmem [resolvable:$true] %s3451_s20 }
0x2af3   :  { %s4257_s18 = scalar_lea.vmem %s3452_s20, 32  ;;  %p4262_p9 = scmp.lt.s32.totalorder %s3452_s20, %s3452_s20 }
0x2af4   :  { %p4258_p8 = scmp.ne.s32.totalorder %s3452_s20, %s4257_s18  ;;  %p4263_p10 = scmp.lt.s32.totalorder %s4257_s18, %s4257_s18 }
0x2af6   :  { %p4264_p11 = por %p4263_p10, %p4262_p9 }
0x2af8   :  { %p4265_p12 = pnand %p4264_p11, %p4258_p8 }
0x2bba   :  { %v3421_v2 = vpop.f32.mrb[60].mxu1 }
0x2bbb   :  { %v3422_v3 = vadd.f32 %v3579_v1, %v3421_v2  ;;  %v4054_v29 = vpop.f32.mrb[61].mxu1 }
0x2bbc   :  { %v3424_v4 = vpop.f32.mrb[62].mxu1 }
0x2bbd   :  { %4231 = vtanh.f32 %v3422_v3  ;;  %v3425_v41 = vadd.f32 %v3579_v1, %v3424_v4  ;;  %v4055_v6 = vpop.f32.mrb[63].mxu1 }
0x2bbf   :  { %4233 = vtanh.f32 %v3425_v41 }
0x2bc7   :  { %v4232_v8 = vpop.eup %4231 }
0x2bc8   :  { %3431 = vst.msk [vmem:[#allocation5] sm:$0x1] %vm3430_vm5, %v4232_v8 }
0x2bc9   :  { %v4234_v9 = vpop.eup %4233 }
0x2bca   :  { %3432 = vst.msk [vmem:[#allocation5 + $0x1] sm:$0x1] %vm3430_vm5, %v4234_v9 }
0x2bcb   :  { %4268 = shalt.err (!%p4265_p12)
}
0x2bcc   :  { %s4269_s12 = scalar_lea.hbm %s5100_s19, 32 }
0x2bcd   :  { %p4270_p13 = scmp.ne.s32.totalorder %s5100_s19, %s4269_s12  ;;  %p4273_p0 = scmp.lt.u32.totalorder %s4269_s12, %s5100_s19 }
0x2bcf   :  { %p4275_p1 = pnand %p4273_p0, %p4270_p13 }
0x2bd1   :  { %4278 = shalt.err (!%p4275_p1)
}
0x2bd2   :  { %3454 = dma.vmem_to_hbm [thread:$0]  %s3452_s20, 32, %s5100_s19, [#allocation6]  }
0x2bd3   :  { %4279 = dma.done.wait [#allocation4], 256  }
0x2bd4   :  { %4280 = vsyncadd [#allocation4], 4294967040 }
0x2bd5   :  { %4281 = dma.done.wait [#allocation6], 32  }
0x2bd6   :  { %4282 = vsyncadd [#allocation6], 4294967264 }
0x2bd7   :  { %3461 = vsyncpa [#allocation4], 1 }
0x2bd8   :  { %3462 = vsyncpa [#allocation6], 1 }

</bundles_post_ra>
